<compile_context>
chip_gen: v6e
topology: v6e:2x2x1
jax: 0.10.0
libtpu: 0.0.40
codegen_flags: <defaults>
</compile_context>

<pallas_src>
import functools

import jax
import jax.numpy as jnp
from jax import lax
from jax.experimental import pallas as pl
from jax.experimental.pallas import tpu as pltpu


def _round_up(x, m):
    return ((x + m - 1) // m) * m


def _hint_multiple(x, m):
    # pl.multiple_of wants a traced value; if the loop got fully unrolled the
    # index can already be a concrete Python int.
    if isinstance(x, int):
        return x
    return pl.multiple_of(x, m)


def _pointnet_kernel(x_ref, w1_ref, b1_ref, w2_ref, b2_ref, w3_ref, b3_ref,
                     o_ref, *, tile_n, num_points, chunk_objs):
    """One grid step: tile_n objects, (tile_n*P, D) f32 points -> (tile_n, OUT)."""
    chunk_rows = chunk_objs * num_points
    num_chunks = tile_n // chunk_objs
    out_dim = o_ref.shape[-1]

    # Weights/biases are VMEM-resident across the whole grid (constant index
    # maps); load once per step, hoisted out of the chunk loop.
    w1 = w1_ref[...]
    b1 = b1_ref[...]
    w2 = w2_ref[...]
    b2 = b2_ref[...]
    w3 = w3_ref[...]
    b3 = b3_ref[...]

    def chunk_body(c, carry):
        row0 = _hint_multiple(c * chunk_rows, chunk_rows)
        # f32 -> bf16 cast happens here (VPU filler slot); HBM only ever sees
        # the original f32 points.
        x = x_ref[pl.ds(row0, chunk_rows), :].astype(jnp.bfloat16)

        h = jnp.dot(x, w1, preferred_element_type=jnp.float32)
        h = jnp.maximum(h + b1, 0.0)

        h = jnp.dot(h.astype(jnp.bfloat16), w2,
                    preferred_element_type=jnp.float32)
        h = jnp.maximum(h + b2, 0.0)

        h = jnp.dot(h.astype(jnp.bfloat16), w3,
                    preferred_element_type=jnp.float32)
        h = h + b3

        # Tile-aligned (free) reshape: P is a multiple of 8, OUT a multiple of
        # 128.  Then symmetric max-pool over the point axis of each object and
        # store this chunk's objects straight into the output block.
        h = h.reshape(chunk_objs, num_points, out_dim)
        obj0 = _hint_multiple(c * chunk_objs, chunk_objs)
        o_ref[pl.ds(obj0, chunk_objs), :] = jnp.max(h, axis=1).astype(o_ref.dtype)
        return carry

    lax.fori_loop(0, num_chunks, chunk_body, 0, unroll=True)


def _choose_tile_n(n, max_tile=128, min_steps=4):
    """Largest multiple of 8 that divides n, <= max_tile, leaving >= min_steps steps."""
    if n % 8 != 0:
        return None
    target = max(8, min(max_tile, ((n // min_steps) // 8) * 8))
    t = target
    while t >= 8:
        if n % t == 0:
            return t
        t -= 8
    return 8  # 8 always divides n here


def _choose_chunk_objs(tile_n, num_points, target_rows=1024):
    """Objects per in-kernel chunk: ~target_rows matmul rows, divides tile_n."""
    c = max(1, min(tile_n, target_rows // max(num_points, 1)))
    if c >= 8:
        c = (c // 8) * 8
        while tile_n % c:
            c -= 8          # terminates at 8, which always divides tile_n
    else:
        while tile_n % c:
            c -= 1
    return max(c, 1)


def _vmem_limit_bytes(tile_n, num_points, d, h1, h2, out_dim, chunk_objs):
    """Rough VMEM footprint + headroom, capped at 48 MiB for v7x's 64 MiB part."""
    lane = lambda v: _round_up(v, 128)
    x_tile = 2 * tile_n * num_points * lane(d) * 4          # double-buffered f32 input (lane-padded)
    o_tile = 2 * tile_n * lane(out_dim) * 4
    rows = chunk_objs * num_points
    inter = rows * (lane(h1) + lane(h2) + lane(out_dim)) * 6  # f32 + bf16 copies
    wts = (d * lane(h1) + h1 * lane(h2) + h2 * lane(out_dim)) * 2 * 2
    est = x_tile + o_tile + inter + wts + (4 << 20)           # headroom
    return int(min(48 << 20, max(32 << 20, est)))


@jax.jit
def pointcloud_backbone_forward(obj_pcds, params):
    """obj_pcds: (B, O, P, D) float32 -> (B, O, OUT) float32."""
    w1, b1, w2, b2, w3, b3 = params
    B, O, P, D = obj_pcds.shape
    H1 = w1.shape[1]
    H2 = w2.shape[1]
    OUT = w3.shape[1]
    N = B * O

    tile_n = _choose_tile_n(N)
    if tile_n is None:
        # TODO(synk): N not a multiple of 8 -> one-off zero pad of the object
        # axis (padded objects are sliced off below; the per-object max-pool
        # keeps them from contaminating valid rows).  Ragged point counts per
        # object would additionally need -inf masking before the max.
        tile_n = 8
        n_pad = _round_up(N, tile_n)
        x = obj_pcds.reshape(N, P, D)
        x = jnp.concatenate([x, jnp.zeros((n_pad - N, P, D), x.dtype)], axis=0)
    else:
        n_pad = N
        x = obj_pcds.reshape(N, P, D)

    grid = n_pad // tile_n
    chunk_objs = _choose_chunk_objs(tile_n, P)

    # 'b o p d -> (b o) p d' flattened onto the matmul M axis.  Stays f32 —
    # the bf16 cast happens inside the kernel (saves a full HBM pass).
    x = x.reshape(n_pad * P, D)
    w1b = w1.astype(jnp.bfloat16)
    w2b = w2.astype(jnp.bfloat16)
    w3b = w3.astype(jnp.bfloat16)

    const = lambda i: (0, 0)
    kernel = functools.partial(_pointnet_kernel, tile_n=tile_n,
                               num_points=P, chunk_objs=chunk_objs)

    flops = 2 * n_pad * P * (D * H1 + H1 * H2 + H2 * OUT)
    bytes_accessed = (n_pad * P * D * 4 + n_pad * OUT * 4
                      + (D * H1 + H1 * H2 + H2 * OUT) * 2
                      + (H1 + H2 + OUT) * 4)

    out = pl.pallas_call(
        kernel,
        out_shape=jax.ShapeDtypeStruct((n_pad, OUT), jnp.float32),
        grid_spec=pltpu.PrefetchScalarGridSpec(
            num_scalar_prefetch=0,
            grid=(grid,),
            in_specs=[
                # TODO(synk): D=16 lane-pads this tile 8x in VMEM; a lane-dense
                # (tile_n, P*D) presentation is possible but needs an in-kernel
                # relayout — measure before switching.
                pl.BlockSpec((tile_n * P, D), lambda i: (i, 0)),
                pl.BlockSpec((D, H1), const),
                pl.BlockSpec((1, H1), const),
                pl.BlockSpec((H1, H2), const),
                pl.BlockSpec((1, H2), const),
                pl.BlockSpec((H2, OUT), const),
                pl.BlockSpec((1, OUT), const),
            ],
            out_specs=pl.BlockSpec((tile_n, OUT), lambda i: (i, 0)),
        ),
        compiler_params=pltpu.CompilerParams(
            dimension_semantics=("parallel",),
            vmem_limit_bytes=_vmem_limit_bytes(tile_n, P, D, H1, H2, OUT,
                                               chunk_objs)),
        cost_estimate=pl.CostEstimate(flops=flops, transcendentals=0,
                                      bytes_accessed=bytes_accessed),
    )(x, w1b, b1, w2b, b2, w3b, b3)

    return out[:N].reshape(B, O, OUT)  # '(b o) d -> b o d'


def _reference_forward(obj_pcds, params):
    """Pure-JAX reference using the same bf16-operand / f32-accum recipe."""
    w1, b1, w2, b2, w3, b3 = params
    B, O, P, D = obj_pcds.shape
    x = obj_pcds.reshape(B * O, P, D).astype(jnp.bfloat16)
    mm = functools.partial(jnp.einsum, preferred_element_type=jnp.float32)
    h = jnp.maximum(mm("npd,dh->nph", x, w1.astype(jnp.bfloat16)) + b1, 0.0)
    h = jnp.maximum(
        mm("nph,hk->npk", h.astype(jnp.bfloat16), w2.astype(jnp.bfloat16))
        + b2, 0.0)
    h = mm("npk,ko->npo", h.astype(jnp.bfloat16), w3.astype(jnp.bfloat16)) + b3
    h = jnp.max(h, axis=1)
    return h.reshape(B, O, -1)


def init_params(key, d, h1, h2, out_dim):
    ks = jax.random.split(key, 6)
    w1 = jax.random.normal(ks[0], (d, h1), jnp.float32) * (1.0 / jnp.sqrt(d))
    b1 = jax.random.normal(ks[1], (1, h1), jnp.float32) * 0.01
    w2 = jax.random.normal(ks[2], (h1, h2), jnp.float32) * (1.0 / jnp.sqrt(h1))
    b2 = jax.random.normal(ks[3], (1, h2), jnp.float32) * 0.01
    w3 = jax.random.normal(ks[4], (h2, out_dim), jnp.float32) * (1.0 / jnp.sqrt(h2))
    b3 = jax.random.normal(ks[5], (1, out_dim), jnp.float32) * 0.01
    return (w1, b1, w2, b2, w3, b3)


if __name__ == "__main__":
    # Small, forward-consistent shapes: batch B=2, objects per scene O=32,
    # points per object P=128, point feature dim D=16, out_dim=128.
    # N = 64 objects -> tile_n=16 (divides N, >=4 grid steps), 2 chunks/step.
    B, O, P, D = 2, 32, 128, 16
    H1, H2, OUT = 64, 64, 128

    key = jax.random.PRNGKey(0)
    k_x, k_p = jax.random.split(key)
    obj_pcds = jax.random.normal(k_x, (B, O, P, D), jnp.float32)
    params = init_params(k_p, D, H1, H2, OUT)

    out = pointcloud_backbone_forward(obj_pcds, params)
    out = jax.block_until_ready(out)

    ref = _reference_forward(obj_pcds, params)
    assert out.shape == (B, O, OUT), out.shape
    assert jnp.allclose(out, ref, atol=1e-2, rtol=1e-2), "mismatch vs reference"

    # TODO(synk): freeze/eval semantics (requires_grad, disabled_train) and
    # checkpoint loading are training/IO concerns with no Pallas equivalent;
    # forward math is identical.
    print("KERNEL_OK")
</pallas_src>

<mosaic_0001>
module attributes {stable_mosaic.version = 11 : i64} {
  func.func @_pointnet_kernel(%arg0: i32, %arg1: memref<2048x16xf32, #tpu.memory_space<vmem>>, %arg2: memref<16x64xbf16, #tpu.memory_space<vmem>>, %arg3: memref<1x64xf32, #tpu.memory_space<vmem>>, %arg4: memref<64x64xbf16, #tpu.memory_space<vmem>>, %arg5: memref<1x64xf32, #tpu.memory_space<vmem>>, %arg6: memref<64x128xbf16, #tpu.memory_space<vmem>>, %arg7: memref<1x128xf32, #tpu.memory_space<vmem>>, %arg8: memref<16x128xf32, #tpu.memory_space<vmem>>) attributes {dimension_semantics = [#tpu.dimension_semantics<parallel>], iteration_bounds = array<i64: 4>, scalar_prefetch = 0 : i64, scratch_operands = 0 : i64, tpu.core_type = #tpu.core_type<tc>, window_params = [{transform_indices = @transform_0, window_bounds = array<i64: 2048, 16>}, {pipeline_mode = #tpu.pipeline_mode<synchronous>, transform_indices = @transform_1, window_bounds = array<i64: 16, 64>}, {pipeline_mode = #tpu.pipeline_mode<synchronous>, transform_indices = @transform_2, window_bounds = array<i64: 1, 64>}, {pipeline_mode = #tpu.pipeline_mode<synchronous>, transform_indices = @transform_3, window_bounds = array<i64: 64, 64>}, {pipeline_mode = #tpu.pipeline_mode<synchronous>, transform_indices = @transform_4, window_bounds = array<i64: 1, 64>}, {pipeline_mode = #tpu.pipeline_mode<synchronous>, transform_indices = @transform_5, window_bounds = array<i64: 64, 128>}, {pipeline_mode = #tpu.pipeline_mode<synchronous>, transform_indices = @transform_6, window_bounds = array<i64: 1, 128>}, {transform_indices = @transform_7, window_bounds = array<i64: 16, 128>}]} {
    %c0 = arith.constant 0 : index
    %c0_0 = arith.constant 0 : index
    %0 = vector.load %arg2[%c0, %c0_0] : memref<16x64xbf16, #tpu.memory_space<vmem>>, vector<16x64xbf16>
    %c0_1 = arith.constant 0 : index
    %c0_2 = arith.constant 0 : index
    %1 = vector.load %arg3[%c0_1, %c0_2] : memref<1x64xf32, #tpu.memory_space<vmem>>, vector<1x64xf32>
    %c0_3 = arith.constant 0 : index
    %c0_4 = arith.constant 0 : index
    %2 = vector.load %arg4[%c0_3, %c0_4] : memref<64x64xbf16, #tpu.memory_space<vmem>>, vector<64x64xbf16>
    %c0_5 = arith.constant 0 : index
    %c0_6 = arith.constant 0 : index
    %3 = vector.load %arg5[%c0_5, %c0_6] : memref<1x64xf32, #tpu.memory_space<vmem>>, vector<1x64xf32>
    %c0_7 = arith.constant 0 : index
    %c0_8 = arith.constant 0 : index
    %4 = vector.load %arg6[%c0_7, %c0_8] : memref<64x128xbf16, #tpu.memory_space<vmem>>, vector<64x128xbf16>
    %c0_9 = arith.constant 0 : index
    %c0_10 = arith.constant 0 : index
    %5 = vector.load %arg7[%c0_9, %c0_10] : memref<1x128xf32, #tpu.memory_space<vmem>>, vector<1x128xf32>
    %c0_i32 = arith.constant 0 : i32
    %c1024_i32 = arith.constant 1024 : i32
    %6 = arith.muli %c0_i32, %c1024_i32 : i32
    %7 = tpu.assume_multiple %6, 1024 : i32
    %8 = arith.index_cast %7 : i32 to index
    %c0_11 = arith.constant 0 : index
    %9 = vector.load %arg1[%8, %c0_11] : memref<2048x16xf32, #tpu.memory_space<vmem>>, vector<1024x16xf32>
    %10 = arith.truncf %9 : vector<1024x16xf32> to vector<1024x16xbf16>
    %cst = arith.constant dense<0.000000e+00> : vector<1024x64xf32>
    %11 = tpu.matmul %10, %0, %cst {dimension_numbers = #tpu.dot_dimension_numbers<[1], [0], [0], [1], [0, 0, 1, 1], [], []>} : vector<1024x16xbf16>, vector<16x64xbf16>, vector<1024x64xf32> -> vector<1024x64xf32>
    %12 = vector.broadcast %1 : vector<1x64xf32> to vector<1024x64xf32>
    %13 = arith.addf %11, %12 : vector<1024x64xf32>
    %cst_12 = arith.constant 0.000000e+00 : f32
    %14 = vector.broadcast %cst_12 : f32 to vector<1024x64xf32>
    %15 = arith.maximumf %13, %14 : vector<1024x64xf32>
    %16 = arith.truncf %15 : vector<1024x64xf32> to vector<1024x64xbf16>
    %cst_13 = arith.constant dense<0.000000e+00> : vector<1024x64xf32>
    %17 = tpu.matmul %16, %2, %cst_13 {dimension_numbers = #tpu.dot_dimension_numbers<[1], [0], [0], [1], [0, 0, 1, 1], [], []>} : vector<1024x64xbf16>, vector<64x64xbf16>, vector<1024x64xf32> -> vector<1024x64xf32>
    %18 = vector.broadcast %3 : vector<1x64xf32> to vector<1024x64xf32>
    %19 = arith.addf %17, %18 : vector<1024x64xf32>
    %cst_14 = arith.constant 0.000000e+00 : f32
    %20 = vector.broadcast %cst_14 : f32 to vector<1024x64xf32>
    %21 = arith.maximumf %19, %20 : vector<1024x64xf32>
    %22 = arith.truncf %21 : vector<1024x64xf32> to vector<1024x64xbf16>
    %cst_15 = arith.constant dense<0.000000e+00> : vector<1024x128xf32>
    %23 = tpu.matmul %22, %4, %cst_15 {dimension_numbers = #tpu.dot_dimension_numbers<[1], [0], [0], [1], [0, 0, 1, 1], [], []>} : vector<1024x64xbf16>, vector<64x128xbf16>, vector<1024x128xf32> -> vector<1024x128xf32>
    %24 = vector.broadcast %5 : vector<1x128xf32> to vector<1024x128xf32>
    %25 = arith.addf %23, %24 : vector<1024x128xf32>
    %26 = vector.shape_cast %25 : vector<1024x128xf32> to vector<8x128x128xf32>
    %c8_i32 = arith.constant 8 : i32
    %27 = arith.muli %c0_i32, %c8_i32 : i32
    %28 = tpu.assume_multiple %27, 8 : i32
    %cst_16 = arith.constant dense<0xFF800000> : vector<8x128xf32>
    %29 = vector.multi_reduction <maximumf>, %26, %cst_16 [1] : vector<8x128x128xf32> to vector<8x128xf32>
    %30 = arith.index_cast %28 : i32 to index
    %c0_17 = arith.constant 0 : index
    %31 = vector.load %arg8[%30, %c0_17] : memref<16x128xf32, #tpu.memory_space<vmem>>, vector<8x128xf32>
    tpu.vector_store %arg8[%30, %c0_17], %29 {strides = array<i32>} : memref<16x128xf32, #tpu.memory_space<vmem>>, vector<8x128xf32>,
    %c1_i32 = arith.constant 1 : i32
    %c1024_i32_18 = arith.constant 1024 : i32
    %32 = arith.muli %c1_i32, %c1024_i32_18 : i32
    %33 = tpu.assume_multiple %32, 1024 : i32
    %34 = arith.index_cast %33 : i32 to index
    %c0_19 = arith.constant 0 : index
    %35 = vector.load %arg1[%34, %c0_19] : memref<2048x16xf32, #tpu.memory_space<vmem>>, vector<1024x16xf32>
    %36 = arith.truncf %35 : vector<1024x16xf32> to vector<1024x16xbf16>
    %cst_20 = arith.constant dense<0.000000e+00> : vector<1024x64xf32>
    %37 = tpu.matmul %36, %0, %cst_20 {dimension_numbers = #tpu.dot_dimension_numbers<[1], [0], [0], [1], [0, 0, 1, 1], [], []>} : vector<1024x16xbf16>, vector<16x64xbf16>, vector<1024x64xf32> -> vector<1024x64xf32>
    %38 = vector.broadcast %1 : vector<1x64xf32> to vector<1024x64xf32>
    %39 = arith.addf %37, %38 : vector<1024x64xf32>
    %cst_21 = arith.constant 0.000000e+00 : f32
    %40 = vector.broadcast %cst_21 : f32 to vector<1024x64xf32>
    %41 = arith.maximumf %39, %40 : vector<1024x64xf32>
    %42 = arith.truncf %41 : vector<1024x64xf32> to vector<1024x64xbf16>
    %cst_22 = arith.constant dense<0.000000e+00> : vector<1024x64xf32>
    %43 = tpu.matmul %42, %2, %cst_22 {dimension_numbers = #tpu.dot_dimension_numbers<[1], [0], [0], [1], [0, 0, 1, 1], [], []>} : vector<1024x64xbf16>, vector<64x64xbf16>, vector<1024x64xf32> -> vector<1024x64xf32>
    %44 = vector.broadcast %3 : vector<1x64xf32> to vector<1024x64xf32>
    %45 = arith.addf %43, %44 : vector<1024x64xf32>
    %cst_23 = arith.constant 0.000000e+00 : f32
    %46 = vector.broadcast %cst_23 : f32 to vector<1024x64xf32>
    %47 = arith.maximumf %45, %46 : vector<1024x64xf32>
    %48 = arith.truncf %47 : vector<1024x64xf32> to vector<1024x64xbf16>
    %cst_24 = arith.constant dense<0.000000e+00> : vector<1024x128xf32>
    %49 = tpu.matmul %48, %4, %cst_24 {dimension_numbers = #tpu.dot_dimension_numbers<[1], [0], [0], [1], [0, 0, 1, 1], [], []>} : vector<1024x64xbf16>, vector<64x128xbf16>, vector<1024x128xf32> -> vector<1024x128xf32>
    %50 = vector.broadcast %5 : vector<1x128xf32> to vector<1024x128xf32>
    %51 = arith.addf %49, %50 : vector<1024x128xf32>
    %52 = vector.shape_cast %51 : vector<1024x128xf32> to vector<8x128x128xf32>
    %c8_i32_25 = arith.constant 8 : i32
    %53 = arith.muli %c1_i32, %c8_i32_25 : i32
    %54 = tpu.assume_multiple %53, 8 : i32
    %cst_26 = arith.constant dense<0xFF800000> : vector<8x128xf32>
    %55 = vector.multi_reduction <maximumf>, %52, %cst_26 [1] : vector<8x128x128xf32> to vector<8x128xf32>
    %56 = arith.index_cast %54 : i32 to index
    %c0_27 = arith.constant 0 : index
    %57 = vector.load %arg8[%56, %c0_27] : memref<16x128xf32, #tpu.memory_space<vmem>>, vector<8x128xf32>
    tpu.vector_store %arg8[%56, %c0_27], %55 {strides = array<i32>} : memref<16x128xf32, #tpu.memory_space<vmem>>, vector<8x128xf32>,
    %c2_i32 = arith.constant 2 : i32
    return
  }
  func.func @transform_0(%arg0: i32) -> (i32, i32) {
    %c0_i32 = arith.constant 0 : i32
    %c0_i32_0 = arith.constant 0 : i32
    return %arg0, %c0_i32 : i32, i32
  }
  func.func @transform_1(%arg0: i32) -> (i32, i32) {
    %c0_i32 = arith.constant 0 : i32
    %c0_i32_0 = arith.constant 0 : i32
    %c0_i32_1 = arith.constant 0 : i32
    return %c0_i32, %c0_i32_0 : i32, i32
  }
  func.func @transform_2(%arg0: i32) -> (i32, i32) {
    %c0_i32 = arith.constant 0 : i32
    %c0_i32_0 = arith.constant 0 : i32
    %c0_i32_1 = arith.constant 0 : i32
    return %c0_i32, %c0_i32_0 : i32, i32
  }
  func.func @transform_3(%arg0: i32) -> (i32, i32) {
    %c0_i32 = arith.constant 0 : i32
    %c0_i32_0 = arith.constant 0 : i32
    %c0_i32_1 = arith.constant 0 : i32
    return %c0_i32, %c0_i32_0 : i32, i32
  }
  func.func @transform_4(%arg0: i32) -> (i32, i32) {
    %c0_i32 = arith.constant 0 : i32
    %c0_i32_0 = arith.constant 0 : i32
    %c0_i32_1 = arith.constant 0 : i32
    return %c0_i32, %c0_i32_0 : i32, i32
  }
  func.func @transform_5(%arg0: i32) -> (i32, i32) {
    %c0_i32 = arith.constant 0 : i32
    %c0_i32_0 = arith.constant 0 : i32
    %c0_i32_1 = arith.constant 0 : i32
    return %c0_i32, %c0_i32_0 : i32, i32
  }
  func.func @transform_6(%arg0: i32) -> (i32, i32) {
    %c0_i32 = arith.constant 0 : i32
    %c0_i32_0 = arith.constant 0 : i32
    %c0_i32_1 = arith.constant 0 : i32
    return %c0_i32, %c0_i32_0 : i32, i32
  }
  func.func @transform_7(%arg0: i32) -> (i32, i32) {
    %c0_i32 = arith.constant 0 : i32
    %c0_i32_0 = arith.constant 0 : i32
    return %arg0, %c0_i32 : i32, i32
  }
}

</mosaic_0001>

<bundles_post_ra>
// kernel: pointcloud_backbone_forward.1
= control target key start
LH: loop header
LB: loop body
LE: loop exit
PB: predicated region body
PF: predicated region fallthrough
CT: control target
= control target key end

     0   :  { %12 = vsyncpa [#allocation3], 0  ;;  %s10008_s0 = inlined_call_operand.vmem [shape: f32[8192,16], index: 0, kind: input, shape index: {}]   ;;  %s10009_s1 = inlined_call_operand.vmem [shape: bf16[16,64], index: 1, kind: input, shape index: {}]   ;;  %s10010_s2 = inlined_call_operand.vmem [shape: f32[1,64], index: 2, kind: input, shape index: {}]   ;;  %s10011_s3 = inlined_call_operand.vmem [shape: bf16[64,64], index: 3, kind: input, shape index: {}]   ;;  %s10012_s4 = inlined_call_operand.vmem [shape: f32[1,64], index: 4, kind: input, shape index: {}]   ;;  %s10013_s5 = inlined_call_operand.vmem [shape: bf16[64,128], index: 5, kind: input, shape index: {}]   ;;  %s10014_s6 = inlined_call_operand.vmem [shape: f32[1,128], index: 6, kind: input, shape index: {}]   ;;  %s10015_s7 = inlined_call_operand.hbm [shape: f32[64,128], index: 7, kind: output, shape index: {}]  }
   0x1   :  { %14 = vsyncpa [#allocation3 + $0x1], 0  ;;  %s8320_s24 = smov 0   ;;  %s8322_s25 = smov 0  }
   0x2   :  { %s8324_s26 = smov 0   ;;  %s8326_s27 = smov 0  }
   0x3 LB: > { %s6404_s28 = sadd.s32 4294967295, %s8275_s27   ;;  %s6405_s29 = sadd.s32 4294967294, %s8275_s27   ;;  %s8275_s27 = sphi %s8326_s27, %s10021_s27   ;;  %s8271_s26 = sphi %s8324_s26, %s10020_s26   ;;  %s8267_s25 = sphi %s8322_s25, %s10019_s25   ;;  %s8263_s24 = sphi %s8320_s24, %s10018_s24  }
   0x4   : > { %s8343_s30 = sadd.s32 1, %s8275_s27   ;;  %s179_s8 = sadd.s32 1, %s8271_s26 }
   0x5   : > { %s176_s9 = ssub.s32 %s8275_s27, %s8343_s30  ;;  %p189_p0 = scmp.ne.s32.totalorder %s8271_s26, %s8267_s25 }
   0x6   : > { %p177_p1 = scmp.eq.s32.totalorder %s176_s9, 0  ;;  %p190_p2 = scmp.eq.s32.totalorder %s6404_s28, 3 }
   0x7   : > { %p195_p3 = scmp.ne.s32.totalorder %s8267_s25, %s8263_s24  ;;  %p196_p4 = scmp.eq.s32.totalorder %s6405_s29, 3 }
   0x8   : > { %s8353_s10 = scalar_select %p177_p1, %s8271_s26, %s179_s8  }
   0x9   : > { %p8355_p5 = por %p190_p2, %p189_p0  ;;  %p8359_p6 = por %p196_p4, %p195_p3 }
   0xa   : > { %p6408_p7 = scmp.ge.s32.totalorder %s8275_s27, 1  ;;  %p241_p8 = scmp.lt.s32.totalorder %s8275_s27, 5 }
   0xc   : > { %p242_p9 = pnand %p6408_p7, %p241_p8 }
   0xd   : > { %s8370_s15 = sshll.u32 (!%p242_p9), %s6404_s28, 8 }
   0xe   : > { %245 = sbr.rel (%p242_p9) target bundleno = 1383 (0x567), region = 48  ;;  %p274_p10 = scmp.lt.s32.totalorder (!%p242_p9), %s8370_s15, 1023 }
   0xf   : > { %s9958_s9 = scalar_lea.hbm (!%p242_p9), %s10015_s7, %s8370_s15 }
  0x13   : > { %v8368_v0 = vld [vmem:[%s10009_s1] sm:$0xff]   ;;  %s275_s16 = scalar_select %p274_p10, %s8370_s15, 1023  ;;  %vm506_vm0 = vcmask 130048   ;;  %v8410_v28 = vld [vmem:[%s10013_s5 + $0x18] sm:$0xff]   ;;  %v8193_v60 = vld [vmem:[%s10011_s3 + $0x10] sm:$0xff]   ;;  %vm1466_vm1 = vcmask 523264  }
  0x14   : > { %7345 = vmatprep.subr.bf16.mxu0 %v8368_v0  ;;  %v8441_v53 = vld [vmem:[%s10011_s3 + $0x18] sm:$0xff]   ;;  %vm3339_vm2 = vcmask 1041409   ;;  %vm3341_vm3 = vcmask 1042434   ;;  %vm3343_vm4 = vcmask 1043459   ;;  %vm3345_vm5 = vcmask 1044484   ;;  %s8277_s15 = smov [#allocation2]  }
  0x15   : > { %7346 = vmatpush3.bf16.msra.mxu0 %v8368_v0  ;;  %s6411_s17 = sshll.u32 %s275_s16, 3  ;;  %7475 = vmatprep.subr.bf16.mxu1 %v8441_v53  ;;  %vm3347_vm6 = vcmask 1045509   ;;  %vm3349_vm7 = vcmask 1046534   ;;  %vm3351_vm8 = vcmask 1047559   ;;  %s8219_s16 = sshll.u32 %s8277_s15, 4  ;;  %s8220_s16 = int_to_ptr.vmem [resolvable:$false] %s8219_s16 }
  0x16   : > { %s8379_s20 = scalar_lea.vmem %s10008_s0, %s6411_s17  ;;  %7611 = vmatprep.subr.bf16.mxu0 %v8410_v28  ;;  %7476 = vmatpush3.bf16.msra.mxu1 %v8441_v53  ;;  %s270_s17 = sand.u32 1, %s8267_s25  }
  0x17   : > { %v302_v1 = vld [vmem:[%s8379_s20] sm:$0xff]  ;;  %v303_v2 = vld [vmem:[%s8379_s20 + $0x8] sm:$0xff]  ;;  %v304_v3 = vld [vmem:[%s8379_s20 + $0x10] sm:$0xff]  ;;  %7477 = vmatprep.subr.bf16.mxu1 %v8193_v60  ;;  %s6409_s18 = sshll.u32 %s270_s17, 4  ;;  %s9968_s13 = scalar_lea.sflag [#allocation3], %s270_s17 }
  0x18   : > { %v430_v4 = vpack.c.bf16 %v303_v2, %v302_v1  ;;  %v305_v5 = vld [vmem:[%s8379_s20 + $0x18] sm:$0xff]  ;;  %v306_v6 = vld [vmem:[%s8379_s20 + $0x20] sm:$0xff]  ;;  %v307_v7 = vld [vmem:[%s8379_s20 + $0x28] sm:$0xff]  ;;  %s9596_s19 = scalar_lea.vmem [#allocation2], %s6409_s18  ;;  %s8221_s18 = scalar_lea.vmem %s8220_s16, 512 }
  0x19   : > { %v431_v8 = vpack.c.bf16 %v305_v5, %v304_v3  ;;  %v432_v9 = vpack.c.bf16 %v307_v7, %v306_v6  ;;  %v308_v10 = vld [vmem:[%s8379_s20 + $0x30] sm:$0xff]  ;;  %v309_v11 = vld [vmem:[%s8379_s20 + $0x38] sm:$0xff]  ;;  %v310_v12 = vld [vmem:[%s8379_s20 + $0x40] sm:$0xff]  ;;  %s6343_s29 = sshll.u32 %s9596_s19, 4  ;;  %s9962_s29 = int_to_ptr.vmem [resolvable:$true] %s6343_s29 }
  0x1a   : > { %7347 = vmatprep.mubr.msk.bf16.mxu0 %vm506_vm0, %v430_v4  ;;  %v311_v13 = vld [vmem:[%s8379_s20 + $0x48] sm:$0xff]  ;;  %v433_v14 = vpack.c.bf16 %v309_v11, %v308_v10  ;;  %v312_v16 = vld [vmem:[%s8379_s20 + $0x50] sm:$0xff]  ;;  %v313_v17 = vld [vmem:[%s8379_s20 + $0x58] sm:$0xff]  ;;  %7478 = vmatpush3.bf16.msra.mxu1 %v8193_v60  ;;  %s8215_s14 = scalar_lea.vmem %s9962_s29, 256  ;;  %p8222_p0 = scmp.lt.s32.totalorder %s9962_s29, %s8220_s16 }
  0x1b   : > { %7348 = vmatmul.mubr.msk.bf16.vlgmr.msra.gmra.mxu0 %vm506_vm0, %v431_v8  ;;  %v434_v15 = vpack.c.bf16 %v311_v13, %v310_v12  ;;  %v314_v18 = vld [vmem:[%s8379_s20 + $0x60] sm:$0xff]  ;;  %v315_v19 = vld [vmem:[%s8379_s20 + $0x68] sm:$0xff]  ;;  %v435_v20 = vpack.c.bf16 %v313_v17, %v312_v16  ;;  %v316_v22 = vld [vmem:[%s8379_s20 + $0x70] sm:$0xff]  ;;  %p8216_p11 = scmp.ne.s32.totalorder %s9962_s29, %s8215_s14  ;;  %p8223_p1 = scmp.lt.s32.totalorder %s8221_s18, %s8215_s14 }
  0x1c   : > { %7351 = vmatprep.mubr.msk.bf16.mxu0 %vm506_vm0, %v432_v9  ;;  %v436_v21 = vpack.c.bf16 %v315_v19, %v314_v18  ;;  %v317_v23 = vld [vmem:[%s8379_s20 + $0x78] sm:$0xff]  ;;  %v318_v24 = vld [vmem:[%s8379_s20 + $0x80] sm:$0xff]  ;;  %v319_v25 = vld [vmem:[%s8379_s20 + $0x88] sm:$0xff]  ;;  %7612 = vmatpush3.bf16.msra.mxu0 %v8410_v28 }
  0x1d   : > { %v437_v26 = vpack.c.bf16 %v317_v23, %v316_v22  ;;  %v438_v27 = vpack.c.bf16 %v319_v25, %v318_v24  ;;  %v320_v29 = vld [vmem:[%s8379_s20 + $0x90] sm:$0xff]  ;;  %v321_v30 = vld [vmem:[%s8379_s20 + $0x98] sm:$0xff]  ;;  %v322_v31 = vld [vmem:[%s8379_s20 + $0xa0] sm:$0xff]  ;;  %p8217_p12 = pnand %p8216_p11, %p8355_p5  ;;  %p8224_p2 = por %p8223_p1, %p8222_p0 }
  0x1e   : > { %v323_v32 = vld [vmem:[%s8379_s20 + $0xa8] sm:$0xff]  ;;  %v439_v33 = vpack.c.bf16 %v321_v30, %v320_v29  ;;  %v324_v35 = vld [vmem:[%s8379_s20 + $0xb0] sm:$0xff]  ;;  %v325_v36 = vld [vmem:[%s8379_s20 + $0xb8] sm:$0xff] }
  0x1f   : > { %v440_v34 = vpack.c.bf16 %v323_v32, %v322_v31  ;;  %v326_v37 = vld [vmem:[%s8379_s20 + $0xc0] sm:$0xff]  ;;  %v327_v38 = vld [vmem:[%s8379_s20 + $0xc8] sm:$0xff]  ;;  %v441_v39 = vpack.c.bf16 %v325_v36, %v324_v35  ;;  %v328_v41 = vld [vmem:[%s8379_s20 + $0xd0] sm:$0xff]  ;;  %p8218_p13 = pneg %p8217_p12 }
  0x20   : > { %v442_v40 = vpack.c.bf16 %v327_v38, %v326_v37  ;;  %v329_v42 = vld [vmem:[%s8379_s20 + $0xd8] sm:$0xff]  ;;  %v330_v43 = vld [vmem:[%s8379_s20 + $0xe0] sm:$0xff]  ;;  %v331_v44 = vld [vmem:[%s8379_s20 + $0xe8] sm:$0xff] }
  0x21   : > { %v443_v45 = vpack.c.bf16 %v329_v42, %v328_v41  ;;  %v444_v46 = vpack.c.bf16 %v331_v44, %v330_v43  ;;  %v332_v47 = vld [vmem:[%s8379_s20 + $0xf0] sm:$0xff]  ;;  %v333_v48 = vld [vmem:[%s8379_s20 + $0xf8] sm:$0xff]  ;;  %v334_v49 = vld [vmem:[%s8379_s20 + $0x100] sm:$0xff]  ;;  %p8225_p3 = pnand %p8224_p2, %p8218_p13 }
  0x22   : > { %v335_v50 = vld [vmem:[%s8379_s20 + $0x108] sm:$0xff]  ;;  %v445_v51 = vpack.c.bf16 %v333_v48, %v332_v47  ;;  %v336_v54 = vld [vmem:[%s8379_s20 + $0x110] sm:$0xff]  ;;  %v337_v55 = vld [vmem:[%s8379_s20 + $0x118] sm:$0xff] }
  0x23   : > { %7352 = vmatmul.mubr.msk.bf16.gmra.mxu0 %vm506_vm0, %v433_v14  ;;  %v446_v52 = vpack.c.bf16 %v335_v50, %v334_v49  ;;  %v338_v56 = vld [vmem:[%s8379_s20 + $0x120] sm:$0xff]  ;;  %v339_v57 = vld [vmem:[%s8379_s20 + $0x128] sm:$0xff]  ;;  %v447_v58 = vpack.c.bf16 %v337_v55, %v336_v54  ;;  %v340_v61 = vld [vmem:[%s8379_s20 + $0x130] sm:$0xff] }
  0x24   : > { %7355 = vmatprep.mubr.msk.bf16.mxu0 %vm506_vm0, %v434_v15  ;;  %v448_v59 = vpack.c.bf16 %v339_v57, %v338_v56  ;;  %v341_v62 = vld [vmem:[%s8379_s20 + $0x138] sm:$0xff]  ;;  %v342_v63 = vld [vmem:[%s8379_s20 + $0x140] sm:$0xff]  ;;  %v343_v1 = vld [vmem:[%s8379_s20 + $0x148] sm:$0xff] }
  0x25   : > { %v449_v2 = vpack.c.bf16 %v341_v62, %v340_v61  ;;  %v8194_v3 = vld [vmem:[%s10011_s3 + $0x8] sm:$0xff]   ;;  %v450_v4 = vpack.c.bf16 %v343_v1, %v342_v63  ;;  %v8195_v5 = vld [vmem:[%s10011_s3] sm:$0xff]   ;;  %v344_v6 = vld [vmem:[%s8379_s20 + $0x150] sm:$0xff] }
  0x26   : > { %7479 = vmatprep.subr.bf16.mxu1 %v8194_v3  ;;  %v345_v7 = vld [vmem:[%s8379_s20 + $0x158] sm:$0xff]  ;;  %v346_v8 = vld [vmem:[%s8379_s20 + $0x160] sm:$0xff]  ;;  %v347_v9 = vld [vmem:[%s8379_s20 + $0x168] sm:$0xff] }
  0x27   : > { %7480 = vmatpush3.bf16.msra.mxu1 %v8194_v3  ;;  %v451_v10 = vpack.c.bf16 %v345_v7, %v344_v6  ;;  %v452_v11 = vpack.c.bf16 %v347_v9, %v346_v8  ;;  %v348_v12 = vld [vmem:[%s8379_s20 + $0x170] sm:$0xff]  ;;  %v349_v13 = vld [vmem:[%s8379_s20 + $0x178] sm:$0xff]  ;;  %v350_v14 = vld [vmem:[%s8379_s20 + $0x180] sm:$0xff] }
  0x28   : > { %7481 = vmatprep.subr.bf16.mxu1 %v8195_v5  ;;  %v351_v15 = vld [vmem:[%s8379_s20 + $0x188] sm:$0xff]  ;;  %v453_v16 = vpack.c.bf16 %v349_v13, %v348_v12  ;;  %v352_v18 = vld [vmem:[%s8379_s20 + $0x190] sm:$0xff]  ;;  %v353_v19 = vld [vmem:[%s8379_s20 + $0x198] sm:$0xff] }
  0x29   : > { %v454_v17 = vpack.c.bf16 %v351_v15, %v350_v14  ;;  %v455_v22 = vpack.c.bf16 %v353_v19, %v352_v18  ;;  %v8196_v24 = vld [vmem:[%s10013_s5 + $0x10] sm:$0xff]   ;;  %v359_v29 = vld [vmem:[%s8379_s20 + $0x1c8] sm:$0xff]  ;;  %v381_v1 = vld [vmem:[%s8379_s20 + $0x278] sm:$0xff] }
  0x2a   : > { %7613 = vmatprep.subr.bf16.mxu0 %v8196_v24  ;;  %v356_v25 = vld [vmem:[%s8379_s20 + $0x1b0] sm:$0xff]  ;;  %v363_v35 = vld [vmem:[%s8379_s20 + $0x1e8] sm:$0xff]  ;;  %v385_v7 = vld [vmem:[%s8379_s20 + $0x298] sm:$0xff] }
  0x2b   : > { %7356 = vmatmul.mubr.msk.bf16.gmra.mxu0 %vm506_vm0, %v435_v20  ;;  %7482 = vmatpush3.bf16.msra.mxu1 %v8195_v5  ;;  %v354_v20 = vld [vmem:[%s8379_s20 + $0x1a0] sm:$0xff]  ;;  %v360_v32 = vld [vmem:[%s8379_s20 + $0x1d0] sm:$0xff]  ;;  %v367_v41 = vld [vmem:[%s8379_s20 + $0x208] sm:$0xff] }
  0x2c   : > { %7359 = vmatprep.mubr.msk.bf16.mxu0 %vm506_vm0, %v436_v21  ;;  %7747 = vmatprep.subr.bf16.mxu1 %v8368_v0  ;;  %v355_v21 = vld [vmem:[%s8379_s20 + $0x1a8] sm:$0xff]  ;;  %v364_v38 = vld [vmem:[%s8379_s20 + $0x1f0] sm:$0xff]  ;;  %v386_v8 = vld [vmem:[%s8379_s20 + $0x2a0] sm:$0xff] }
  0x2d   : > { %v456_v23 = vpack.c.bf16 %v355_v21, %v354_v20  ;;  %7614 = vmatpush3.bf16.msra.mxu0 %v8196_v24  ;;  %v368_v44 = vld [vmem:[%s8379_s20 + $0x210] sm:$0xff]  ;;  %v371_v47 = vld [vmem:[%s8379_s20 + $0x228] sm:$0xff]  ;;  %v389_v14 = vld [vmem:[%s8379_s20 + $0x2b8] sm:$0xff] }
  0x2e   : > { %v372_v50 = vld [vmem:[%s8379_s20 + $0x230] sm:$0xff]  ;;  %v375_v54 = vld [vmem:[%s8379_s20 + $0x248] sm:$0xff]  ;;  %v390_v15 = vld [vmem:[%s8379_s20 + $0x2c0] sm:$0xff] }
  0x2f   : > { %v376_v57 = vld [vmem:[%s8379_s20 + $0x250] sm:$0xff]  ;;  %v379_v60 = vld [vmem:[%s8379_s20 + $0x268] sm:$0xff]  ;;  %v393_v20 = vld [vmem:[%s8379_s20 + $0x2d8] sm:$0xff] }
  0x30   : > { %v380_v63 = vld [vmem:[%s8379_s20 + $0x270] sm:$0xff]  ;;  %v383_v3 = vld [vmem:[%s8379_s20 + $0x288] sm:$0xff]  ;;  %v394_v21 = vld [vmem:[%s8379_s20 + $0x2e0] sm:$0xff] }
  0x31   : > { %v384_v6 = vld [vmem:[%s8379_s20 + $0x290] sm:$0xff]  ;;  %v387_v9 = vld [vmem:[%s8379_s20 + $0x2a8] sm:$0xff] }
  0x32   : > { %v8197_v12 = vld [vmem:[%s10013_s5 + $0x8] sm:$0xff]   ;;  %v388_v13 = vld [vmem:[%s8379_s20 + $0x2b0] sm:$0xff] }
  0x33   : > { %7360 = vmatmul.mubr.msk.bf16.gmra.mxu0 %vm506_vm0, %v437_v26  ;;  %v357_v26 = vld [vmem:[%s8379_s20 + $0x1b8] sm:$0xff]  ;;  %7615 = vmatprep.subr.bf16.mxu0 %v8197_v12  ;;  %v392_v19 = vld [vmem:[%s8379_s20 + $0x2d0] sm:$0xff] }
  0x34   : > { %7363 = vmatprep.mubr.msk.bf16.mxu0 %vm506_vm0, %v438_v27  ;;  %v358_v27 = vld [vmem:[%s8379_s20 + $0x1c0] sm:$0xff]  ;;  %v457_v30 = vpack.c.bf16 %v357_v26, %v356_v25  ;;  %7616 = vmatpush3.bf16.msra.mxu0 %v8197_v12  ;;  %v396_v25 = vld [vmem:[%s8379_s20 + $0x2f0] sm:$0xff]  ;;  %v397_v26 = vld [vmem:[%s8379_s20 + $0x2f8] sm:$0xff] }
  0x35   : > { %v458_v31 = vpack.c.bf16 %v359_v29, %v358_v27  ;;  %v398_v27 = vld [vmem:[%s8379_s20 + $0x300] sm:$0xff]  ;;  %v399_v29 = vld [vmem:[%s8379_s20 + $0x308] sm:$0xff] }
  0x3b   : > { %7364 = vmatmul.mubr.msk.bf16.gmra.mxu0 %vm506_vm0, %v439_v33  ;;  %v361_v33 = vld [vmem:[%s8379_s20 + $0x1d8] sm:$0xff] }
  0x3c   : > { %7367 = vmatprep.mubr.msk.bf16.mxu0 %vm506_vm0, %v440_v34  ;;  %v362_v34 = vld [vmem:[%s8379_s20 + $0x1e0] sm:$0xff]  ;;  %v459_v36 = vpack.c.bf16 %v361_v33, %v360_v32  ;;  %v400_v32 = vld [vmem:[%s8379_s20 + $0x310] sm:$0xff]  ;;  %v401_v33 = vld [vmem:[%s8379_s20 + $0x318] sm:$0xff] }
  0x3d   : > { %v460_v37 = vpack.c.bf16 %v363_v35, %v362_v34  ;;  %v402_v34 = vld [vmem:[%s8379_s20 + $0x320] sm:$0xff]  ;;  %v403_v35 = vld [vmem:[%s8379_s20 + $0x328] sm:$0xff] }
  0x43   : > { %7368 = vmatmul.mubr.msk.bf16.gmra.mxu0 %vm506_vm0, %v441_v39  ;;  %v365_v39 = vld [vmem:[%s8379_s20 + $0x1f8] sm:$0xff] }
  0x44   : > { %7371 = vmatprep.mubr.msk.bf16.mxu0 %vm506_vm0, %v442_v40  ;;  %v366_v40 = vld [vmem:[%s8379_s20 + $0x200] sm:$0xff]  ;;  %v461_v42 = vpack.c.bf16 %v365_v39, %v364_v38  ;;  %v404_v39 = vld [vmem:[%s8379_s20 + $0x330] sm:$0xff] }
  0x45   : > { %v462_v43 = vpack.c.bf16 %v367_v41, %v366_v40  ;;  %v405_v40 = vld [vmem:[%s8379_s20 + $0x338] sm:$0xff] }
  0x4b   : > { %7372 = vmatmul.mubr.msk.bf16.gmra.mxu0 %vm506_vm0, %v443_v45  ;;  %v369_v45 = vld [vmem:[%s8379_s20 + $0x218] sm:$0xff] }
  0x4c   : > { %7375 = vmatprep.mubr.msk.bf16.mxu0 %vm506_vm0, %v444_v46  ;;  %v370_v46 = vld [vmem:[%s8379_s20 + $0x220] sm:$0xff]  ;;  %v463_v48 = vpack.c.bf16 %v369_v45, %v368_v44 }
  0x4d   : > { %v464_v49 = vpack.c.bf16 %v371_v47, %v370_v46  ;;  %v8571_v44 = vld [vmem:[%s10010_s2] ss:$0 sm:$0xff]  ;;  %v481_v46 = vpack.c.bf16 %v405_v40, %v404_v39  ;;  %v419_v39 = vld [vmem:[%s8379_s20 + $0x3a8] sm:$0xff] }
  0x53   : > { %7376 = vmatmul.mubr.msk.bf16.gmra.mxu0 %vm506_vm0, %v445_v51  ;;  %v373_v51 = vld [vmem:[%s8379_s20 + $0x238] sm:$0xff] }
  0x54   : > { %7379 = vmatprep.mubr.msk.bf16.mxu0 %vm506_vm0, %v446_v52  ;;  %v374_v52 = vld [vmem:[%s8379_s20 + $0x240] sm:$0xff]  ;;  %v465_v55 = vpack.c.bf16 %v373_v51, %v372_v50 }
  0x55   : > { %v466_v56 = vpack.c.bf16 %v375_v54, %v374_v52 }
  0x5b   : > { %7380 = vmatmul.mubr.msk.bf16.gmra.mxu0 %vm506_vm0, %v447_v58  ;;  %v377_v58 = vld [vmem:[%s8379_s20 + $0x258] sm:$0xff] }
  0x5c   : > { %7383 = vmatprep.mubr.msk.bf16.mxu0 %vm506_vm0, %v448_v59  ;;  %v378_v59 = vld [vmem:[%s8379_s20 + $0x260] sm:$0xff]  ;;  %v467_v61 = vpack.c.bf16 %v377_v58, %v376_v57  ;;  %v408_v58 = vld [vmem:[%s8379_s20 + $0x350] sm:$0xff] }
  0x5d   : > { %v468_v62 = vpack.c.bf16 %v379_v60, %v378_v59  ;;  %v409_v59 = vld [vmem:[%s8379_s20 + $0x358] sm:$0xff] }
  0x63   : > { %7384 = vmatmul.mubr.msk.bf16.gmra.mxu0 %vm506_vm0, %v449_v2  ;;  %v382_v2 = vld [vmem:[%s8379_s20 + $0x280] sm:$0xff] }
  0x64   : > { %7387 = vmatprep.mubr.msk.bf16.mxu0 %vm506_vm0, %v450_v4  ;;  %v469_v4 = vpack.c.bf16 %v381_v1, %v380_v63  ;;  %v470_v5 = vpack.c.bf16 %v383_v3, %v382_v2  ;;  %v411_v63 = vld [vmem:[%s8379_s20 + $0x368] sm:$0xff] }
  0x6b   : > { %7388 = vmatmul.mubr.msk.bf16.gmra.mxu0 %vm506_vm0, %v451_v10  ;;  %v471_v10 = vpack.c.bf16 %v385_v7, %v384_v6 }
  0x6c   : > { %7391 = vmatprep.mubr.msk.bf16.mxu0 %vm506_vm0, %v452_v11  ;;  %v472_v11 = vpack.c.bf16 %v387_v9, %v386_v8 }
  0x73   : > { %7392 = vmatmul.mubr.msk.bf16.gmra.mxu0 %vm506_vm0, %v453_v16  ;;  %v391_v16 = vld [vmem:[%s8379_s20 + $0x2c8] sm:$0xff] }
  0x74   : > { %7395 = vmatprep.mubr.msk.bf16.mxu0 %vm506_vm0, %v454_v17  ;;  %v473_v17 = vpack.c.bf16 %v389_v14, %v388_v13  ;;  %v474_v18 = vpack.c.bf16 %v391_v16, %v390_v15  ;;  %v412_v15 = vld [vmem:[%s8379_s20 + $0x370] sm:$0xff]  ;;  %v413_v16 = vld [vmem:[%s8379_s20 + $0x378] sm:$0xff] }
  0x7b   : > { %7396 = vmatmul.mubr.msk.bf16.gmra.mxu0 %vm506_vm0, %v455_v22  ;;  %v395_v22 = vld [vmem:[%s8379_s20 + $0x2e8] sm:$0xff] }
  0x7c   : > { %7399 = vmatprep.mubr.msk.bf16.mxu0 %vm506_vm0, %v456_v23  ;;  %v475_v23 = vpack.c.bf16 %v393_v20, %v392_v19  ;;  %v476_v24 = vpack.c.bf16 %v395_v22, %v394_v21  ;;  %v414_v19 = vld [vmem:[%s8379_s20 + $0x380] sm:$0xff]  ;;  %v415_v20 = vld [vmem:[%s8379_s20 + $0x388] sm:$0xff] }
  0x83   : > { %7400 = vmatmul.mubr.msk.bf16.gmra.mxu0 %vm506_vm0, %v457_v30  ;;  %v477_v30 = vpack.c.bf16 %v397_v26, %v396_v25  ;;  %v486_v25 = vpack.c.bf16 %v415_v20, %v414_v19 }
  0x84   : > { %7403 = vmatprep.mubr.msk.bf16.mxu0 %vm506_vm0, %v458_v31  ;;  %v478_v31 = vpack.c.bf16 %v399_v29, %v398_v27 }
  0x8b   : > { %7404 = vmatmul.mubr.msk.bf16.gmra.mxu0 %vm506_vm0, %v459_v36  ;;  %v479_v36 = vpack.c.bf16 %v401_v33, %v400_v32 }
  0x8c   : > { %7407 = vmatprep.mubr.msk.bf16.mxu0 %vm506_vm0, %v460_v37  ;;  %v480_v37 = vpack.c.bf16 %v403_v35, %v402_v34  ;;  %v416_v34 = vld [vmem:[%s8379_s20 + $0x390] sm:$0xff]  ;;  %v417_v35 = vld [vmem:[%s8379_s20 + $0x398] sm:$0xff] }
  0x93   : > { %7408 = vmatmul.mubr.msk.bf16.gmra.mxu0 %vm506_vm0, %v461_v42  ;;  %v406_v42 = vld [vmem:[%s8379_s20 + $0x340] sm:$0xff] }
  0x94   : > { %7411 = vmatprep.mubr.msk.bf16.mxu0 %vm506_vm0, %v462_v43  ;;  %v407_v43 = vld [vmem:[%s8379_s20 + $0x348] sm:$0xff] }
  0x9b   : > { %7412 = vmatmul.mubr.msk.bf16.gmra.mxu0 %vm506_vm0, %v463_v48 }
  0x9c   : > { %7415 = vmatprep.mubr.msk.bf16.mxu0 %vm506_vm0, %v464_v49  ;;  %v482_v49 = vpack.c.bf16 %v407_v43, %v406_v42  ;;  %v487_v43 = vpack.c.bf16 %v417_v35, %v416_v34 }
  0xa3   : > { %7416 = vmatmul.mubr.msk.bf16.gmra.mxu0 %vm506_vm0, %v465_v55 }
  0xa4   : > { %7419 = vmatprep.mubr.msk.bf16.mxu0 %vm506_vm0, %v466_v56 }
  0xab   : > { %7420 = vmatmul.mubr.msk.bf16.gmra.mxu0 %vm506_vm0, %v467_v61 }
  0xac   : > { %7423 = vmatprep.mubr.msk.bf16.mxu0 %vm506_vm0, %v468_v62  ;;  %v410_v62 = vld [vmem:[%s8379_s20 + $0x360] sm:$0xff] }
  0xad   : > { %v484_v7 = vpack.c.bf16 %v411_v63, %v410_v62  ;;  %v423_v62 = vld [vmem:[%s8379_s20 + $0x3c8] sm:$0xff] }
  0xb3   : > { %7424 = vmatmul.mubr.msk.bf16.gmra.mxu0 %vm506_vm0, %v469_v4  ;;  %v483_v4 = vpack.c.bf16 %v409_v59, %v408_v58  ;;  %v421_v58 = vld [vmem:[%s8379_s20 + $0x3b8] sm:$0xff] }
  0xb4   : > { %7427 = vmatprep.mubr.msk.bf16.mxu0 %vm506_vm0, %v470_v5 }
  0xbb   : > { %7428 = vmatmul.mubr.msk.bf16.gmra.mxu0 %vm506_vm0, %v471_v10 }
  0xbc   : > { %7431 = vmatprep.mubr.msk.bf16.mxu0 %vm506_vm0, %v472_v11 }
  0xc3   : > { %7432 = vmatmul.mubr.msk.bf16.gmra.mxu0 %vm506_vm0, %v473_v17 }
  0xc4   : > { %7435 = vmatprep.mubr.msk.bf16.mxu0 %vm506_vm0, %v474_v18 }
  0xcb   : > { %7436 = vmatmul.mubr.msk.bf16.gmra.mxu0 %vm506_vm0, %v475_v23 }
  0xcc   : > { %7439 = vmatprep.mubr.msk.bf16.mxu0 %vm506_vm0, %v476_v24 }
  0xd3   : > { %7440 = vmatmul.mubr.msk.bf16.gmra.mxu0 %vm506_vm0, %v477_v30 }
  0xd4   : > { %7443 = vmatprep.mubr.msk.bf16.mxu0 %vm506_vm0, %v478_v31 }
  0xdb   : > { %v7349_v38 = vpop.f32.mrf.mxu0  ;;  %7444 = vmatmul.mubr.msk.bf16.gmra.mxu0 %vm506_vm0, %v479_v36 }
  0xdc   : > { %7447 = vmatprep.mubr.msk.bf16.mxu0 %vm506_vm0, %v480_v37  ;;  %v742_v50 = vadd.f32 %v7349_v38, %v8571_v44  ;;  %v418_v38 = vld [vmem:[%s8379_s20 + $0x3a0] sm:$0xff] }
  0xdd   : > { %v733_v41 = vpop.f32.mrf.mxu0 }
  0xde   : > { %v734_v47 = vadd.f32 %v8571_v44, %v733_v41  ;;  %v1246_v60 = vmax.f32 %v742_v50, 0.0 }
  0xdf   : > { %v7350_v45 = vpop.f32.mrf.mxu0 }
  0xe0   : > { %v745_v48 = vadd.f32 %v7350_v45, %v8571_v44  ;;  %v1244_v56 = vmax.f32 %v734_v47, 0.0  ;;  %v488_v47 = vpack.c.bf16 %v419_v39, %v418_v38 }
  0xe1   : > { %v736_v51 = vpop.f32.mrf.mxu0 }
  0xe2   : > { %v737_v52 = vadd.f32 %v8571_v44, %v736_v51  ;;  %v1247_v54 = vmax.f32 %v745_v48, 0.0  ;;  %v8198_v48 = vld [vmem:[%s10013_s5] sm:$0xff]  }
  0xe3   : > { %v7353_v55 = vpop.f32.mrf.mxu0  ;;  %7448 = vmatmul.mubr.msk.bf16.gmra.mxu0 %vm506_vm0, %v481_v46  ;;  %7617 = vmatprep.subr.bf16.mxu0 %v8198_v48 }
  0xe4   : > { %v1245_v57 = vmax.f32 %v737_v52, 0.0  ;;  %7451 = vmatprep.mubr.msk.bf16.mxu0 %vm506_vm0, %v482_v49  ;;  %v1373_v2 = vpack.c.bf16 %v1247_v54, %v1246_v60  ;;  %v758_v8 = vadd.f32 %v7353_v55, %v8571_v44  ;;  %7618 = vmatpush3.bf16.msra.mxu0 %v8198_v48 }
  0xe5   : > { %v749_v61 = vpop.f32.mrf.mxu0  ;;  %7877 = vmatprep.subr.bf16.mxu0 %v8441_v53 }
  0xe6   : > { %v1372_v1 = vpack.c.bf16 %v1245_v57, %v1244_v56  ;;  %v750_v5 = vadd.f32 %v8571_v44, %v749_v61  ;;  %v1250_v17 = vmax.f32 %v758_v8, 0.0  ;;  %v420_v57 = vld [vmem:[%s8379_s20 + $0x3b0] sm:$0xff]  ;;  %v422_v61 = vld [vmem:[%s8379_s20 + $0x3c0] sm:$0xff] }
  0xe7   : > { %v7354_v3 = vpop.f32.mrf.mxu0 }
  0xe8   : > { %v761_v6 = vadd.f32 %v7354_v3, %v8571_v44  ;;  %7483 = vmatprep.mubr.msk.bf16.mxu1 %vm1466_vm1, %v1372_v1  ;;  %v1248_v13 = vmax.f32 %v750_v5, 0.0  ;;  %v489_v3 = vpack.c.bf16 %v421_v58, %v420_v57 }
  0xe9   : > { %v752_v9 = vpop.f32.mrf.mxu0  ;;  %7484 = vmatmul.mubr.msk.bf16.vlgmr.msra.gmra.mxu1 %vm1466_vm1, %v1373_v2 }
  0xea   : > { %v753_v10 = vadd.f32 %v8571_v44, %v752_v9  ;;  %7748 = vmatpush3.bf16.msra.mxu1 %v8368_v0  ;;  %v1251_v11 = vmax.f32 %v761_v6, 0.0  ;;  %v485_v0 = vpack.c.bf16 %v413_v16, %v412_v15  ;;  %v490_v6 = vpack.c.bf16 %v423_v62, %v422_v61 }
  0xeb   : > { %v7357_v12 = vpop.f32.mrf.mxu0  ;;  %7452 = vmatmul.mubr.msk.bf16.gmra.mxu0 %vm506_vm0, %v483_v4  ;;  %8013 = vmatprep.subr.bf16.mxu1 %v8410_v28 }
  0xec   : > { %v1249_v14 = vmax.f32 %v753_v10, 0.0  ;;  %7455 = vmatprep.mubr.msk.bf16.mxu0 %vm506_vm0, %v484_v7  ;;  %v1375_v22 = vpack.c.bf16 %v1251_v11, %v1250_v17  ;;  %v774_v26 = vadd.f32 %v7357_v12, %v8571_v44  ;;  %v426_v17 = vld [vmem:[%s8379_s20 + $0x3e0] sm:$0xff] }
  0xed   : > { %v765_v18 = vpop.f32.mrf.mxu0 }
  0xee   : > { %v1374_v21 = vpack.c.bf16 %v1249_v14, %v1248_v13  ;;  %v766_v24 = vadd.f32 %v8571_v44, %v765_v18  ;;  %v1254_v36 = vmax.f32 %v774_v26, 0.0  ;;  %v424_v13 = vld [vmem:[%s8379_s20 + $0x3d0] sm:$0xff]  ;;  %v425_v14 = vld [vmem:[%s8379_s20 + $0x3d8] sm:$0xff]  ;;  %v427_v18 = vld [vmem:[%s8379_s20 + $0x3e8] sm:$0xff] }
  0xef   : > { %v7358_v23 = vpop.f32.mrf.mxu0 }
  0xf0   : > { %v777_v28 = vadd.f32 %v7358_v23, %v8571_v44  ;;  %7487 = vmatprep.mubr.msk.bf16.mxu1 %vm1466_vm1, %v1374_v21  ;;  %v1252_v32 = vmax.f32 %v766_v24, 0.0  ;;  %v492_v24 = vpack.c.bf16 %v427_v18, %v426_v17 }
  0xf1   : > { %v768_v27 = vpop.f32.mrf.mxu0  ;;  %7488 = vmatmul.mubr.msk.bf16.gmra.mxu1 %vm1466_vm1, %v1375_v22  ;;  %v491_v22 = vpack.c.bf16 %v425_v14, %v424_v13 }
  0xf2   : > { %v769_v29 = vadd.f32 %v8571_v44, %v768_v27  ;;  %v1255_v30 = vmax.f32 %v777_v28, 0.0 }
  0xf3   : > { %v7361_v31 = vpop.f32.mrf.mxu0  ;;  %7456 = vmatmul.mubr.msk.bf16.gmra.mxu0 %vm506_vm0, %v485_v0 }
  0xf4   : > { %v1253_v33 = vmax.f32 %v769_v29, 0.0  ;;  %7459 = vmatprep.mubr.msk.bf16.mxu0 %vm506_vm0, %v486_v25  ;;  %v1377_v41 = vpack.c.bf16 %v1255_v30, %v1254_v36  ;;  %v790_v49 = vadd.f32 %v7361_v31, %v8571_v44 }
  0xf5   : > { %v781_v37 = vpop.f32.mrf.mxu0 }
  0xf6   : > { %v1376_v40 = vpack.c.bf16 %v1253_v33, %v1252_v32  ;;  %v782_v45 = vadd.f32 %v8571_v44, %v781_v37  ;;  %v1258_v59 = vmax.f32 %v790_v49, 0.0  ;;  %v428_v32 = vld [vmem:[%s8379_s20 + $0x3f0] sm:$0xff]  ;;  %v429_v33 = vld [vmem:[%s8379_s20 + $0x3f8] sm:$0xff] }
  0xf7   : > { %v7362_v42 = vpop.f32.mrf.mxu0  ;;  %v493_v39 = vpack.c.bf16 %v429_v33, %v428_v32 }
  0xf8   : > { %v793_v46 = vadd.f32 %v7362_v42, %v8571_v44  ;;  %7491 = vmatprep.mubr.msk.bf16.mxu1 %vm1466_vm1, %v1376_v40  ;;  %v1256_v55 = vmax.f32 %v782_v45, 0.0 }
  0xf9   : > { %v784_v50 = vpop.f32.mrf.mxu0  ;;  %7492 = vmatmul.mubr.msk.bf16.gmra.mxu1 %vm1466_vm1, %v1377_v41 }
  0xfa   : > { %v785_v51 = vadd.f32 %v8571_v44, %v784_v50  ;;  %v1259_v52 = vmax.f32 %v793_v46, 0.0 }
  0xfb   : > { %v7365_v54 = vpop.f32.mrf.mxu0  ;;  %7460 = vmatmul.mubr.msk.bf16.gmra.mxu0 %vm506_vm0, %v487_v43 }
  0xfc   : > { %v1257_v56 = vmax.f32 %v785_v51, 0.0  ;;  %7463 = vmatprep.mubr.msk.bf16.mxu0 %vm506_vm0, %v488_v47  ;;  %v1379_v1 = vpack.c.bf16 %v1259_v52, %v1258_v59  ;;  %v806_v7 = vadd.f32 %v7365_v54, %v8571_v44 }
  0xfd   : > { %v797_v60 = vpop.f32.mrf.mxu0 }
  0xfe   : > { %v1378_v63 = vpack.c.bf16 %v1257_v56, %v1256_v55  ;;  %v798_v4 = vadd.f32 %v8571_v44, %v797_v60  ;;  %v1262_v15 = vmax.f32 %v806_v7, 0.0 }
  0xff   : > { %v7366_v2 = vpop.f32.mrf.mxu0 }
 0x100   : > { %v809_v5 = vadd.f32 %v7366_v2, %v8571_v44  ;;  %7495 = vmatprep.mubr.msk.bf16.mxu1 %vm1466_vm1, %v1378_v63  ;;  %v1260_v11 = vmax.f32 %v798_v4, 0.0 }
 0x101   : > { %v800_v8 = vpop.f32.mrf.mxu0  ;;  %7496 = vmatmul.mubr.msk.bf16.gmra.mxu1 %vm1466_vm1, %v1379_v1 }
 0x102   : > { %v801_v53 = vadd.f32 %v8571_v44, %v800_v8  ;;  %v1263_v9 = vmax.f32 %v809_v5, 0.0 }
 0x103   : > { %v7369_v10 = vpop.f32.mrf.mxu0  ;;  %7464 = vmatmul.mubr.msk.bf16.gmra.mxu0 %vm506_vm0, %v489_v3 }
 0x104   : > { %v1261_v12 = vmax.f32 %v801_v53, 0.0  ;;  %7467 = vmatprep.mubr.msk.bf16.mxu0 %vm506_vm0, %v490_v6  ;;  %v1381_v20 = vpack.c.bf16 %v1263_v9, %v1262_v15  ;;  %v822_v28 = vadd.f32 %v7369_v10, %v8571_v44 }
 0x105   : > { %v813_v16 = vpop.f32.mrf.mxu0 }
 0x106   : > { %v1380_v19 = vpack.c.bf16 %v1261_v12, %v1260_v11  ;;  %v814_v23 = vadd.f32 %v8571_v44, %v813_v16  ;;  %v1266_v34 = vmax.f32 %v822_v28, 0.0 }
 0x107   : > { %v7370_v21 = vpop.f32.mrf.mxu0 }
 0x108   : > { %v825_v0 = vadd.f32 %v7370_v21, %v8571_v44  ;;  %7499 = vmatprep.mubr.msk.bf16.mxu1 %vm1466_vm1, %v1380_v19  ;;  %v1264_v30 = vmax.f32 %v814_v23, 0.0 }
 0x109   : > { %v816_v25 = vpop.f32.mrf.mxu0  ;;  %7500 = vmatmul.mubr.msk.bf16.gmra.mxu1 %vm1466_vm1, %v1381_v20 }
 0x10a   : > { %v817_v26 = vadd.f32 %v8571_v44, %v816_v25  ;;  %v1267_v27 = vmax.f32 %v825_v0, 0.0 }
 0x10b   : > { %v7373_v29 = vpop.f32.mrf.mxu0  ;;  %7468 = vmatmul.mubr.msk.bf16.gmra.mxu0 %vm506_vm0, %v491_v22 }
 0x10c   : > { %v1265_v31 = vmax.f32 %v817_v26, 0.0  ;;  %7471 = vmatprep.mubr.msk.bf16.mxu0 %vm506_vm0, %v492_v24  ;;  %v1383_v37 = vpack.c.bf16 %v1267_v27, %v1266_v34  ;;  %v838_v42 = vadd.f32 %v7373_v29, %v8571_v44 }
 0x10d   : > { %v829_v35 = vpop.f32.mrf.mxu0 }
 0x10e   : > { %v1382_v36 = vpack.c.bf16 %v1265_v31, %v1264_v30  ;;  %v830_v40 = vadd.f32 %v8571_v44, %v829_v35  ;;  %v1270_v50 = vmax.f32 %v838_v42, 0.0 }
 0x10f   : > { %v7374_v38 = vpop.f32.mrf.mxu0 }
 0x110   : > { %v841_v41 = vadd.f32 %v7374_v38, %v8571_v44  ;;  %7503 = vmatprep.mubr.msk.bf16.mxu1 %vm1466_vm1, %v1382_v36  ;;  %v1268_v48 = vmax.f32 %v830_v40, 0.0 }
 0x111   : > { %v832_v43 = vpop.f32.mrf.mxu0  ;;  %7504 = vmatmul.mubr.msk.bf16.gmra.mxu1 %vm1466_vm1, %v1383_v37 }
 0x112   : > { %v833_v45 = vadd.f32 %v8571_v44, %v832_v43  ;;  %v1271_v46 = vmax.f32 %v841_v41, 0.0 }
 0x113   : > { %v7377_v47 = vpop.f32.mrf.mxu0  ;;  %7472 = vmatmul.mubr.msk.bf16.gmra.mxu0 %vm506_vm0, %v493_v39 }
 0x114   : > { %v1269_v49 = vmax.f32 %v833_v45, 0.0  ;;  %v1385_v54 = vpack.c.bf16 %v1271_v46, %v1270_v50  ;;  %v854_v58 = vadd.f32 %v7377_v47, %v8571_v44 }
 0x115   : > { %v845_v51 = vpop.f32.mrf.mxu0 }
 0x116   : > { %v1384_v52 = vpack.c.bf16 %v1269_v49, %v1268_v48  ;;  %v846_v56 = vadd.f32 %v8571_v44, %v845_v51  ;;  %v1274_v2 = vmax.f32 %v854_v58, 0.0 }
 0x117   : > { %v7378_v55 = vpop.f32.mrf.mxu0 }
 0x118   : > { %v857_v57 = vadd.f32 %v7378_v55, %v8571_v44  ;;  %7507 = vmatprep.mubr.msk.bf16.mxu1 %vm1466_vm1, %v1384_v52  ;;  %v1272_v63 = vmax.f32 %v846_v56, 0.0 }
 0x119   : > { %v848_v59 = vpop.f32.mrf.mxu0  ;;  %7508 = vmatmul.mubr.msk.bf16.gmra.mxu1 %vm1466_vm1, %v1385_v54 }
 0x11a   : > { %v849_v60 = vadd.f32 %v8571_v44, %v848_v59  ;;  %v1275_v61 = vmax.f32 %v857_v57, 0.0 }
 0x11b   : > { %v7381_v62 = vpop.f32.mrf.mxu0 }
 0x11c   : > { %v1273_v1 = vmax.f32 %v849_v60, 0.0  ;;  %v1387_v5 = vpack.c.bf16 %v1275_v61, %v1274_v2  ;;  %v870_v53 = vadd.f32 %v7381_v62, %v8571_v44 }
 0x11d   : > { %v861_v3 = vpop.f32.mrf.mxu0 }
 0x11e   : > { %v1386_v4 = vpack.c.bf16 %v1273_v1, %v1272_v63  ;;  %v862_v7 = vadd.f32 %v8571_v44, %v861_v3  ;;  %v1278_v15 = vmax.f32 %v870_v53, 0.0 }
 0x11f   : > { %v7382_v6 = vpop.f32.mrf.mxu0 }
 0x120   : > { %v873_v8 = vadd.f32 %v7382_v6, %v8571_v44  ;;  %7511 = vmatprep.mubr.msk.bf16.mxu1 %vm1466_vm1, %v1386_v4  ;;  %v1276_v13 = vmax.f32 %v862_v7, 0.0 }
 0x121   : > { %v864_v9 = vpop.f32.mrf.mxu0  ;;  %7512 = vmatmul.mubr.msk.bf16.gmra.mxu1 %vm1466_vm1, %v1387_v5 }
 0x122   : > { %v865_v10 = vadd.f32 %v8571_v44, %v864_v9  ;;  %v1279_v11 = vmax.f32 %v873_v8, 0.0 }
 0x123   : > { %v7385_v12 = vpop.f32.mrf.mxu0 }
 0x124   : > { %v1277_v14 = vmax.f32 %v865_v10, 0.0  ;;  %v1389_v18 = vpack.c.bf16 %v1279_v11, %v1278_v15  ;;  %v886_v22 = vadd.f32 %v7385_v12, %v8571_v44 }
 0x125   : > { %v877_v16 = vpop.f32.mrf.mxu0 }
 0x126   : > { %v1388_v17 = vpack.c.bf16 %v1277_v14, %v1276_v13  ;;  %v878_v20 = vadd.f32 %v8571_v44, %v877_v16  ;;  %v1282_v27 = vmax.f32 %v886_v22, 0.0 }
 0x127   : > { %v7386_v19 = vpop.f32.mrf.mxu0 }
 0x128   : > { %v889_v21 = vadd.f32 %v7386_v19, %v8571_v44  ;;  %7515 = vmatprep.mubr.msk.bf16.mxu1 %vm1466_vm1, %v1388_v17  ;;  %v1280_v25 = vmax.f32 %v878_v20, 0.0 }
 0x129   : > { %v880_v23 = vpop.f32.mrf.mxu0  ;;  %7516 = vmatmul.mubr.msk.bf16.gmra.mxu1 %vm1466_vm1, %v1389_v18 }
 0x12a   : > { %v881_v0 = vadd.f32 %v8571_v44, %v880_v23  ;;  %v1283_v24 = vmax.f32 %v889_v21, 0.0 }
 0x12b   : > { %v7389_v28 = vpop.f32.mrf.mxu0 }
 0x12c   : > { %v1281_v26 = vmax.f32 %v881_v0, 0.0  ;;  %v1391_v31 = vpack.c.bf16 %v1283_v24, %v1282_v27  ;;  %v902_v35 = vadd.f32 %v7389_v28, %v8571_v44 }
 0x12d   : > { %v893_v29 = vpop.f32.mrf.mxu0 }
 0x12e   : > { %v1390_v30 = vpack.c.bf16 %v1281_v26, %v1280_v25  ;;  %v894_v33 = vadd.f32 %v8571_v44, %v893_v29  ;;  %v1286_v42 = vmax.f32 %v902_v35, 0.0 }
 0x12f   : > { %v7390_v32 = vpop.f32.mrf.mxu0 }
 0x130   : > { %v905_v34 = vadd.f32 %v7390_v32, %v8571_v44  ;;  %7519 = vmatprep.mubr.msk.bf16.mxu1 %vm1466_vm1, %v1390_v30  ;;  %v1284_v40 = vmax.f32 %v894_v33, 0.0 }
 0x131   : > { %v896_v36 = vpop.f32.mrf.mxu0  ;;  %7520 = vmatmul.mubr.msk.bf16.gmra.mxu1 %vm1466_vm1, %v1391_v31 }
 0x132   : > { %v897_v37 = vadd.f32 %v8571_v44, %v896_v36  ;;  %v1287_v38 = vmax.f32 %v905_v34, 0.0 }
 0x133   : > { %v7393_v39 = vpop.f32.mrf.mxu0 }
 0x134   : > { %v1285_v41 = vmax.f32 %v897_v37, 0.0  ;;  %v1393_v46 = vpack.c.bf16 %v1287_v38, %v1286_v42  ;;  %v918_v50 = vadd.f32 %v7393_v39, %v8571_v44 }
 0x135   : > { %v909_v43 = vpop.f32.mrf.mxu0 }
 0x136   : > { %v1392_v45 = vpack.c.bf16 %v1285_v41, %v1284_v40  ;;  %v910_v48 = vadd.f32 %v8571_v44, %v909_v43  ;;  %v1290_v58 = vmax.f32 %v918_v50, 0.0 }
 0x137   : > { %v7394_v47 = vpop.f32.mrf.mxu0 }
 0x138   : > { %v921_v49 = vadd.f32 %v7394_v47, %v8571_v44  ;;  %7523 = vmatprep.mubr.msk.bf16.mxu1 %vm1466_vm1, %v1392_v45  ;;  %v1288_v56 = vmax.f32 %v910_v48, 0.0 }
 0x139   : > { %v912_v51 = vpop.f32.mrf.mxu0  ;;  %7524 = vmatmul.mubr.msk.bf16.gmra.mxu1 %vm1466_vm1, %v1393_v46 }
 0x13a   : > { %v913_v52 = vadd.f32 %v8571_v44, %v912_v51  ;;  %v1291_v54 = vmax.f32 %v921_v49, 0.0 }
 0x13b   : > { %v7397_v55 = vpop.f32.mrf.mxu0 }
 0x13c   : > { %v1289_v57 = vmax.f32 %v913_v52, 0.0  ;;  %v1395_v61 = vpack.c.bf16 %v1291_v54, %v1290_v58  ;;  %v934_v2 = vadd.f32 %v7397_v55, %v8571_v44 }
 0x13d   : > { %v925_v59 = vpop.f32.mrf.mxu0 }
 0x13e   : > { %v1394_v60 = vpack.c.bf16 %v1289_v57, %v1288_v56  ;;  %v926_v63 = vadd.f32 %v8571_v44, %v925_v59  ;;  %v1294_v53 = vmax.f32 %v934_v2, 0.0 }
 0x13f   : > { %v7398_v62 = vpop.f32.mrf.mxu0 }
 0x140   : > { %v937_v1 = vadd.f32 %v7398_v62, %v8571_v44  ;;  %7527 = vmatprep.mubr.msk.bf16.mxu1 %vm1466_vm1, %v1394_v60  ;;  %v1292_v7 = vmax.f32 %v926_v63, 0.0 }
 0x141   : > { %v928_v3 = vpop.f32.mrf.mxu0  ;;  %7528 = vmatmul.mubr.msk.bf16.gmra.mxu1 %vm1466_vm1, %v1395_v61 }
 0x142   : > { %v929_v4 = vadd.f32 %v8571_v44, %v928_v3  ;;  %v1295_v5 = vmax.f32 %v937_v1, 0.0 }
 0x143   : > { %v7401_v6 = vpop.f32.mrf.mxu0 }
 0x144   : > { %v1293_v8 = vmax.f32 %v929_v4, 0.0  ;;  %v1397_v11 = vpack.c.bf16 %v1295_v5, %v1294_v53  ;;  %v950_v15 = vadd.f32 %v7401_v6, %v8571_v44 }
 0x145   : > { %v941_v9 = vpop.f32.mrf.mxu0 }
 0x146   : > { %v1396_v10 = vpack.c.bf16 %v1293_v8, %v1292_v7  ;;  %v942_v13 = vadd.f32 %v8571_v44, %v941_v9  ;;  %v1298_v22 = vmax.f32 %v950_v15, 0.0 }
 0x147   : > { %v7402_v12 = vpop.f32.mrf.mxu0 }
 0x148   : > { %v953_v14 = vadd.f32 %v7402_v12, %v8571_v44  ;;  %7531 = vmatprep.mubr.msk.bf16.mxu1 %vm1466_vm1, %v1396_v10  ;;  %v1296_v20 = vmax.f32 %v942_v13, 0.0 }
 0x149   : > { %v944_v16 = vpop.f32.mrf.mxu0  ;;  %7532 = vmatmul.mubr.msk.bf16.gmra.mxu1 %vm1466_vm1, %v1397_v11 }
 0x14a   : > { %v945_v17 = vadd.f32 %v8571_v44, %v944_v16  ;;  %v1299_v18 = vmax.f32 %v953_v14, 0.0 }
 0x14b   : > { %v7405_v19 = vpop.f32.mrf.mxu0 }
 0x14c   : > { %v1297_v21 = vmax.f32 %v945_v17, 0.0  ;;  %v1399_v24 = vpack.c.bf16 %v1299_v18, %v1298_v22  ;;  %v966_v27 = vadd.f32 %v7405_v19, %v8571_v44 }
 0x14d   : > { %v957_v23 = vpop.f32.mrf.mxu0 }
 0x14e   : > { %v1398_v0 = vpack.c.bf16 %v1297_v21, %v1296_v20  ;;  %v958_v25 = vadd.f32 %v8571_v44, %v957_v23  ;;  %v1302_v35 = vmax.f32 %v966_v27, 0.0 }
 0x14f   : > { %v7406_v28 = vpop.f32.mrf.mxu0 }
 0x150   : > { %v969_v26 = vadd.f32 %v7406_v28, %v8571_v44  ;;  %7535 = vmatprep.mubr.msk.bf16.mxu1 %vm1466_vm1, %v1398_v0  ;;  %v1300_v33 = vmax.f32 %v958_v25, 0.0 }
 0x151   : > { %v960_v29 = vpop.f32.mrf.mxu0  ;;  %7536 = vmatmul.mubr.msk.bf16.gmra.mxu1 %vm1466_vm1, %v1399_v24 }
 0x152   : > { %v961_v30 = vadd.f32 %v8571_v44, %v960_v29  ;;  %v1303_v31 = vmax.f32 %v969_v26, 0.0 }
 0x153   : > { %v7409_v32 = vpop.f32.mrf.mxu0 }
 0x154   : > { %v1301_v34 = vmax.f32 %v961_v30, 0.0  ;;  %v1401_v38 = vpack.c.bf16 %v1303_v31, %v1302_v35  ;;  %v982_v42 = vadd.f32 %v7409_v32, %v8571_v44 }
 0x155   : > { %v973_v36 = vpop.f32.mrf.mxu0 }
 0x156   : > { %v1400_v37 = vpack.c.bf16 %v1301_v34, %v1300_v33  ;;  %v974_v40 = vadd.f32 %v8571_v44, %v973_v36  ;;  %v1306_v50 = vmax.f32 %v982_v42, 0.0 }
 0x157   : > { %v7410_v39 = vpop.f32.mrf.mxu0 }
 0x158   : > { %v985_v41 = vadd.f32 %v7410_v39, %v8571_v44  ;;  %7539 = vmatprep.mubr.msk.bf16.mxu1 %vm1466_vm1, %v1400_v37  ;;  %v1304_v48 = vmax.f32 %v974_v40, 0.0 }
 0x159   : > { %v976_v43 = vpop.f32.mrf.mxu0  ;;  %7540 = vmatmul.mubr.msk.bf16.gmra.mxu1 %vm1466_vm1, %v1401_v38 }
 0x15a   : > { %v977_v45 = vadd.f32 %v8571_v44, %v976_v43  ;;  %v1307_v46 = vmax.f32 %v985_v41, 0.0 }
 0x15b   : > { %v7413_v47 = vpop.f32.mrf.mxu0 }
 0x15c   : > { %v1305_v49 = vmax.f32 %v977_v45, 0.0  ;;  %v1403_v54 = vpack.c.bf16 %v1307_v46, %v1306_v50  ;;  %v998_v58 = vadd.f32 %v7413_v47, %v8571_v44 }
 0x15d   : > { %v989_v51 = vpop.f32.mrf.mxu0 }
 0x15e   : > { %v1402_v52 = vpack.c.bf16 %v1305_v49, %v1304_v48  ;;  %v990_v56 = vadd.f32 %v8571_v44, %v989_v51  ;;  %v1310_v2 = vmax.f32 %v998_v58, 0.0 }
 0x15f   : > { %v7414_v55 = vpop.f32.mrf.mxu0 }
 0x160   : > { %v1001_v57 = vadd.f32 %v7414_v55, %v8571_v44  ;;  %7543 = vmatprep.mubr.msk.bf16.mxu1 %vm1466_vm1, %v1402_v52  ;;  %v1308_v63 = vmax.f32 %v990_v56, 0.0 }
 0x161   : > { %v992_v59 = vpop.f32.mrf.mxu0  ;;  %7544 = vmatmul.mubr.msk.bf16.gmra.mxu1 %vm1466_vm1, %v1403_v54 }
 0x162   : > { %v993_v60 = vadd.f32 %v8571_v44, %v992_v59  ;;  %v1311_v61 = vmax.f32 %v1001_v57, 0.0 }
 0x163   : > { %v7417_v62 = vpop.f32.mrf.mxu0 }
 0x164   : > { %v1309_v1 = vmax.f32 %v993_v60, 0.0  ;;  %v1405_v5 = vpack.c.bf16 %v1311_v61, %v1310_v2  ;;  %v1014_v53 = vadd.f32 %v7417_v62, %v8571_v44 }
 0x165   : > { %v1005_v3 = vpop.f32.mrf.mxu0 }
 0x166   : > { %v1404_v4 = vpack.c.bf16 %v1309_v1, %v1308_v63  ;;  %v1006_v7 = vadd.f32 %v8571_v44, %v1005_v3  ;;  %v1314_v15 = vmax.f32 %v1014_v53, 0.0 }
 0x167   : > { %v7418_v6 = vpop.f32.mrf.mxu0 }
 0x168   : > { %v1017_v8 = vadd.f32 %v7418_v6, %v8571_v44  ;;  %7547 = vmatprep.mubr.msk.bf16.mxu1 %vm1466_vm1, %v1404_v4  ;;  %v1312_v13 = vmax.f32 %v1006_v7, 0.0 }
 0x169   : > { %v1008_v9 = vpop.f32.mrf.mxu0  ;;  %7548 = vmatmul.mubr.msk.bf16.gmra.mxu1 %vm1466_vm1, %v1405_v5 }
 0x16a   : > { %v1009_v10 = vadd.f32 %v8571_v44, %v1008_v9  ;;  %v1315_v11 = vmax.f32 %v1017_v8, 0.0 }
 0x16b   : > { %v7421_v12 = vpop.f32.mrf.mxu0 }
 0x16c   : > { %v1313_v14 = vmax.f32 %v1009_v10, 0.0  ;;  %v1407_v18 = vpack.c.bf16 %v1315_v11, %v1314_v15  ;;  %v1030_v22 = vadd.f32 %v7421_v12, %v8571_v44 }
 0x16d   : > { %v1021_v16 = vpop.f32.mrf.mxu0 }
 0x16e   : > { %v1406_v17 = vpack.c.bf16 %v1313_v14, %v1312_v13  ;;  %v1022_v20 = vadd.f32 %v8571_v44, %v1021_v16  ;;  %v1318_v27 = vmax.f32 %v1030_v22, 0.0 }
 0x16f   : > { %v7422_v19 = vpop.f32.mrf.mxu0 }
 0x170   : > { %v1033_v21 = vadd.f32 %v7422_v19, %v8571_v44  ;;  %7551 = vmatprep.mubr.msk.bf16.mxu1 %vm1466_vm1, %v1406_v17  ;;  %v1316_v25 = vmax.f32 %v1022_v20, 0.0 }
 0x171   : > { %v1024_v23 = vpop.f32.mrf.mxu0  ;;  %7552 = vmatmul.mubr.msk.bf16.gmra.mxu1 %vm1466_vm1, %v1407_v18 }
 0x172   : > { %v1025_v0 = vadd.f32 %v8571_v44, %v1024_v23  ;;  %v1319_v24 = vmax.f32 %v1033_v21, 0.0 }
 0x173   : > { %v7425_v28 = vpop.f32.mrf.mxu0 }
 0x174   : > { %v1317_v26 = vmax.f32 %v1025_v0, 0.0  ;;  %v1409_v31 = vpack.c.bf16 %v1319_v24, %v1318_v27  ;;  %v1046_v35 = vadd.f32 %v7425_v28, %v8571_v44 }
 0x175   : > { %v1037_v29 = vpop.f32.mrf.mxu0 }
 0x176   : > { %v1408_v30 = vpack.c.bf16 %v1317_v26, %v1316_v25  ;;  %v1038_v33 = vadd.f32 %v8571_v44, %v1037_v29  ;;  %v1322_v42 = vmax.f32 %v1046_v35, 0.0 }
 0x177   : > { %v7426_v32 = vpop.f32.mrf.mxu0 }
 0x178   : > { %v1049_v34 = vadd.f32 %v7426_v32, %v8571_v44  ;;  %7555 = vmatprep.mubr.msk.bf16.mxu1 %vm1466_vm1, %v1408_v30  ;;  %v1320_v40 = vmax.f32 %v1038_v33, 0.0 }
 0x179   : > { %v1040_v36 = vpop.f32.mrf.mxu0  ;;  %7556 = vmatmul.mubr.msk.bf16.gmra.mxu1 %vm1466_vm1, %v1409_v31 }
 0x17a   : > { %v1041_v37 = vadd.f32 %v8571_v44, %v1040_v36  ;;  %v1323_v38 = vmax.f32 %v1049_v34, 0.0 }
 0x17b   : > { %v7429_v39 = vpop.f32.mrf.mxu0 }
 0x17c   : > { %v1321_v41 = vmax.f32 %v1041_v37, 0.0  ;;  %v1411_v46 = vpack.c.bf16 %v1323_v38, %v1322_v42  ;;  %v1062_v50 = vadd.f32 %v7429_v39, %v8571_v44 }
 0x17d   : > { %v1053_v43 = vpop.f32.mrf.mxu0 }
 0x17e   : > { %v1410_v45 = vpack.c.bf16 %v1321_v41, %v1320_v40  ;;  %v1054_v48 = vadd.f32 %v8571_v44, %v1053_v43  ;;  %v1326_v58 = vmax.f32 %v1062_v50, 0.0 }
 0x17f   : > { %v7430_v47 = vpop.f32.mrf.mxu0 }
 0x180   : > { %v1065_v49 = vadd.f32 %v7430_v47, %v8571_v44  ;;  %7559 = vmatprep.mubr.msk.bf16.mxu1 %vm1466_vm1, %v1410_v45  ;;  %v1324_v56 = vmax.f32 %v1054_v48, 0.0 }
 0x181   : > { %v1056_v51 = vpop.f32.mrf.mxu0  ;;  %7560 = vmatmul.mubr.msk.bf16.gmra.mxu1 %vm1466_vm1, %v1411_v46 }
 0x182   : > { %v1057_v52 = vadd.f32 %v8571_v44, %v1056_v51  ;;  %v1327_v54 = vmax.f32 %v1065_v49, 0.0 }
 0x183   : > { %v7433_v55 = vpop.f32.mrf.mxu0 }
 0x184   : > { %v1325_v57 = vmax.f32 %v1057_v52, 0.0  ;;  %v1413_v61 = vpack.c.bf16 %v1327_v54, %v1326_v58  ;;  %v1078_v2 = vadd.f32 %v7433_v55, %v8571_v44 }
 0x185   : > { %v1069_v59 = vpop.f32.mrf.mxu0 }
 0x186   : > { %v1412_v60 = vpack.c.bf16 %v1325_v57, %v1324_v56  ;;  %v1070_v63 = vadd.f32 %v8571_v44, %v1069_v59  ;;  %v1330_v53 = vmax.f32 %v1078_v2, 0.0 }
 0x187   : > { %v7434_v62 = vpop.f32.mrf.mxu0 }
 0x188   : > { %v1081_v1 = vadd.f32 %v7434_v62, %v8571_v44  ;;  %7563 = vmatprep.mubr.msk.bf16.mxu1 %vm1466_vm1, %v1412_v60  ;;  %v1328_v7 = vmax.f32 %v1070_v63, 0.0 }
 0x189   : > { %v1072_v3 = vpop.f32.mrf.mxu0  ;;  %7564 = vmatmul.mubr.msk.bf16.gmra.mxu1 %vm1466_vm1, %v1413_v61 }
 0x18a   : > { %v1073_v4 = vadd.f32 %v8571_v44, %v1072_v3  ;;  %v1331_v5 = vmax.f32 %v1081_v1, 0.0 }
 0x18b   : > { %v7437_v6 = vpop.f32.mrf.mxu0 }
 0x18c   : > { %v1329_v8 = vmax.f32 %v1073_v4, 0.0  ;;  %v1415_v11 = vpack.c.bf16 %v1331_v5, %v1330_v53  ;;  %v1094_v15 = vadd.f32 %v7437_v6, %v8571_v44  ;;  %v8771_v4 = vld [vmem:[%s10012_s4] ss:$0 sm:$0xff] }
 0x18d   : > { %v1085_v9 = vpop.f32.mrf.mxu0 }
 0x18e   : > { %v1414_v10 = vpack.c.bf16 %v1329_v8, %v1328_v7  ;;  %v1086_v13 = vadd.f32 %v8571_v44, %v1085_v9  ;;  %v1334_v22 = vmax.f32 %v1094_v15, 0.0 }
 0x18f   : > { %v7438_v12 = vpop.f32.mrf.mxu0 }
 0x190   : > { %v1097_v14 = vadd.f32 %v7438_v12, %v8571_v44  ;;  %7567 = vmatprep.mubr.msk.bf16.mxu1 %vm1466_vm1, %v1414_v10  ;;  %v1332_v20 = vmax.f32 %v1086_v13, 0.0 }
 0x191   : > { %v1088_v16 = vpop.f32.mrf.mxu0  ;;  %7568 = vmatmul.mubr.msk.bf16.gmra.mxu1 %vm1466_vm1, %v1415_v11 }
 0x192   : > { %v1089_v17 = vadd.f32 %v8571_v44, %v1088_v16  ;;  %v1335_v18 = vmax.f32 %v1097_v14, 0.0 }
 0x193   : > { %v7441_v19 = vpop.f32.mrf.mxu0 }
 0x194   : > { %v1333_v21 = vmax.f32 %v1089_v17, 0.0  ;;  %v1417_v24 = vpack.c.bf16 %v1335_v18, %v1334_v22  ;;  %v1110_v27 = vadd.f32 %v7441_v19, %v8571_v44 }
 0x195   : > { %v1101_v23 = vpop.f32.mrf.mxu0 }
 0x196   : > { %v1416_v0 = vpack.c.bf16 %v1333_v21, %v1332_v20  ;;  %v1102_v25 = vadd.f32 %v8571_v44, %v1101_v23  ;;  %v1338_v35 = vmax.f32 %v1110_v27, 0.0 }
 0x197   : > { %v7442_v28 = vpop.f32.mrf.mxu0 }
 0x198   : > { %v1113_v26 = vadd.f32 %v7442_v28, %v8571_v44  ;;  %7571 = vmatprep.mubr.msk.bf16.mxu1 %vm1466_vm1, %v1416_v0  ;;  %v1336_v33 = vmax.f32 %v1102_v25, 0.0 }
 0x199   : > { %v1104_v29 = vpop.f32.mrf.mxu0  ;;  %7572 = vmatmul.mubr.msk.bf16.gmra.mxu1 %vm1466_vm1, %v1417_v24 }
 0x19a   : > { %v1105_v30 = vadd.f32 %v8571_v44, %v1104_v29  ;;  %v1339_v31 = vmax.f32 %v1113_v26, 0.0 }
 0x19b   : > { %v7445_v32 = vpop.f32.mrf.mxu0 }
 0x19c   : > { %v1337_v34 = vmax.f32 %v1105_v30, 0.0  ;;  %v1419_v38 = vpack.c.bf16 %v1339_v31, %v1338_v35  ;;  %v1126_v42 = vadd.f32 %v7445_v32, %v8571_v44 }
 0x19d   : > { %v1117_v36 = vpop.f32.mrf.mxu0 }
 0x19e   : > { %v1418_v37 = vpack.c.bf16 %v1337_v34, %v1336_v33  ;;  %v1118_v40 = vadd.f32 %v8571_v44, %v1117_v36  ;;  %v1342_v50 = vmax.f32 %v1126_v42, 0.0  ;;  %v8792_v42 = vld [vmem:[%s10010_s2] ss:$0 sm:$0xff] }
 0x19f   : > { %v7446_v39 = vpop.f32.mrf.mxu0 }
 0x1a0   : > { %v1129_v41 = vadd.f32 %v7446_v39, %v8571_v44  ;;  %7575 = vmatprep.mubr.msk.bf16.mxu1 %vm1466_vm1, %v1418_v37  ;;  %v1340_v48 = vmax.f32 %v1118_v40, 0.0 }
 0x1a1   : > { %v1120_v43 = vpop.f32.mrf.mxu0  ;;  %7576 = vmatmul.mubr.msk.bf16.gmra.mxu1 %vm1466_vm1, %v1419_v38 }
 0x1a2   : > { %v1121_v45 = vadd.f32 %v8571_v44, %v1120_v43  ;;  %v1343_v46 = vmax.f32 %v1129_v41, 0.0 }
 0x1a3   : > { %v7449_v47 = vpop.f32.mrf.mxu0 }
 0x1a4   : > { %v1341_v49 = vmax.f32 %v1121_v45, 0.0  ;;  %v1421_v54 = vpack.c.bf16 %v1343_v46, %v1342_v50  ;;  %v1142_v58 = vadd.f32 %v7449_v47, %v8571_v44  ;;  %v8200_v46 = vld [vmem:[%s10011_s3 + $0x18] sm:$0xff]   ;;  %v8201_v50 = vld [vmem:[%s10011_s3 + $0x10] sm:$0xff]  }
 0x1a5   : > { %v1133_v51 = vpop.f32.mrf.mxu0 }
 0x1a6   : > { %v1420_v52 = vpack.c.bf16 %v1341_v49, %v1340_v48  ;;  %v1134_v56 = vadd.f32 %v8571_v44, %v1133_v51  ;;  %v1346_v5 = vmax.f32 %v1142_v58, 0.0 }
 0x1a7   : > { %v7450_v55 = vpop.f32.mrf.mxu0 }
 0x1a8   : > { %v1145_v57 = vadd.f32 %v7450_v55, %v8571_v44  ;;  %7579 = vmatprep.mubr.msk.bf16.mxu1 %vm1466_vm1, %v1420_v52  ;;  %v1344_v2 = vmax.f32 %v1134_v56, 0.0 }
 0x1a9   : > { %v1136_v59 = vpop.f32.mrf.mxu0  ;;  %v7485_v60 = vpop.f32.mrf.mxu1  ;;  %7580 = vmatmul.mubr.msk.bf16.gmra.mxu1 %vm1466_vm1, %v1421_v54 }
 0x1aa   : > { %v1137_v61 = vadd.f32 %v8571_v44, %v1136_v59  ;;  %v1347_v62 = vmax.f32 %v1145_v57, 0.0  ;;  %v1702_v11 = vadd.f32 %v7485_v60, %v8771_v4 }
 0x1ab   : > { %v7453_v63 = vpop.f32.mrf.mxu0  ;;  %v1693_v1 = vpop.f32.mrf.mxu1 }
 0x1ac   : > { %v1345_v3 = vmax.f32 %v1137_v61, 0.0  ;;  %v1694_v53 = vadd.f32 %v8771_v4, %v1693_v1  ;;  %v1423_v10 = vpack.c.bf16 %v1347_v62, %v1346_v5  ;;  %v1158_v17 = vadd.f32 %v7453_v63, %v8571_v44 }
 0x1ad   : > { %v1149_v6 = vpop.f32.mrf.mxu0  ;;  %v7486_v7 = vpop.f32.mrf.mxu1  ;;  %v2206_v0 = vmax.f32 %v1702_v11, 0.0 }
 0x1ae   : > { %v1422_v8 = vpack.c.bf16 %v1345_v3, %v1344_v2  ;;  %v1705_v9 = vadd.f32 %v7486_v7, %v8771_v4  ;;  %v1150_v14 = vadd.f32 %v8571_v44, %v1149_v6  ;;  %v2204_v21 = vmax.f32 %v1694_v53, 0.0  ;;  %v8202_v3 = vld [vmem:[%s10011_s3 + $0x8] sm:$0xff]  }
 0x1af   : > { %v7454_v12 = vpop.f32.mrf.mxu0  ;;  %v1696_v13 = vpop.f32.mrf.mxu1  ;;  %v1350_v30 = vmax.f32 %v1158_v17, 0.0 }
 0x1b0   : > { %v1161_v15 = vadd.f32 %v7454_v12, %v8571_v44  ;;  %v1697_v16 = vadd.f32 %v8771_v4, %v1696_v13  ;;  %7583 = vmatprep.mubr.msk.bf16.mxu1 %vm1466_vm1, %v1422_v8  ;;  %v2207_v18 = vmax.f32 %v1705_v9, 0.0  ;;  %v1348_v26 = vmax.f32 %v1150_v14, 0.0 }
 0x1b1   : > { %v1152_v19 = vpop.f32.mrf.mxu0  ;;  %v7489_v20 = vpop.f32.mrf.mxu1  ;;  %7584 = vmatmul.mubr.msk.bf16.gmra.mxu1 %vm1466_vm1, %v1423_v10 }
 0x1b2   : > { %v2205_v22 = vmax.f32 %v1697_v16, 0.0  ;;  %v1153_v23 = vadd.f32 %v8571_v44, %v1152_v19  ;;  %v1351_v24 = vmax.f32 %v1161_v15, 0.0  ;;  %v2333_v31 = vpack.c.bf16 %v2207_v18, %v2206_v0  ;;  %v8203_v18 = vld [vmem:[%s10011_s3] sm:$0xff]  }
 0x1b3   : > { %v7457_v28 = vpop.f32.mrf.mxu0  ;;  %v1709_v25 = vpop.f32.mrf.mxu1  ;;  %v1718_v38 = vadd.f32 %v7489_v20, %v8771_v4 }
 0x1b4   : > { %v2332_v27 = vpack.c.bf16 %v2205_v22, %v2204_v21  ;;  %v1349_v29 = vmax.f32 %v1153_v23, 0.0  ;;  %v1710_v35 = vadd.f32 %v8771_v4, %v1709_v25  ;;  %v1425_v37 = vpack.c.bf16 %v1351_v24, %v1350_v30 }
 0x1b5   : > { %v1165_v32 = vpop.f32.mrf.mxu0  ;;  %v7490_v33 = vpop.f32.mrf.mxu1  ;;  %v1174_v47 = vadd.f32 %v8792_v42, %v7457_v28  ;;  %v2210_v55 = vmax.f32 %v1718_v38, 0.0 }
 0x1b6   : > { %v1424_v34 = vpack.c.bf16 %v1349_v29, %v1348_v26  ;;  %v1721_v36 = vadd.f32 %v7490_v33, %v8771_v4  ;;  %7619 = vmatprep.mubr.msk.bf16.mxu0 %vm1466_vm1, %v2332_v27  ;;  %v1166_v41 = vadd.f32 %v8571_v44, %v1165_v32  ;;  %v2208_v51 = vmax.f32 %v1710_v35, 0.0 }
 0x1b7   : > { %v7458_v39 = vpop.f32.mrf.mxu0  ;;  %v1712_v40 = vpop.f32.mrf.mxu1  ;;  %7620 = vmatmul.mubr.msk.bf16.vlgmr.msra.gmra.mxu0 %vm1466_vm1, %v2333_v31  ;;  %v1354_v62 = vmax.f32 %v1174_v47, 0.0 }
 0x1b8   : > { %v1177_v43 = vadd.f32 %v8792_v42, %v7458_v39  ;;  %v1713_v45 = vadd.f32 %v8771_v4, %v1712_v40  ;;  %7878 = vmatpush3.bf16.msra.mxu0 %v8200_v46  ;;  %7587 = vmatprep.mubr.msk.bf16.mxu1 %vm1466_vm1, %v1424_v34  ;;  %v2211_v48 = vmax.f32 %v1721_v36, 0.0  ;;  %v1352_v59 = vmax.f32 %v1166_v41, 0.0 }
 0x1b9   : > { %v1168_v44 = vpop.f32.mrf.mxu0  ;;  %v7493_v49 = vpop.f32.mrf.mxu1  ;;  %7588 = vmatmul.mubr.msk.bf16.gmra.mxu1 %vm1466_vm1, %v1425_v37  ;;  %7879 = vmatprep.subr.bf16.mxu0 %v8201_v50 }
 0x1ba   : > { %v2209_v52 = vmax.f32 %v1713_v45, 0.0  ;;  %v1169_v54 = vadd.f32 %v8792_v42, %v1168_v44  ;;  %v1355_v56 = vmax.f32 %v1177_v43, 0.0  ;;  %v2335_v63 = vpack.c.bf16 %v2211_v48, %v2210_v55 }
 0x1bb   : > { %v7461_v57 = vpop.f32.mrf.mxu0  ;;  %v1725_v58 = vpop.f32.mrf.mxu1  ;;  %v1734_v53 = vadd.f32 %v7493_v49, %v8771_v4 }
 0x1bc   : > { %v2334_v60 = vpack.c.bf16 %v2209_v52, %v2208_v51  ;;  %v1353_v61 = vmax.f32 %v1169_v54, 0.0  ;;  %7880 = vmatpush3.bf16.msra.mxu0 %v8201_v50  ;;  %v1726_v6 = vadd.f32 %v8771_v4, %v1725_v58  ;;  %v1427_v8 = vpack.c.bf16 %v1355_v56, %v1354_v62 }
 0x1bd   : > { %v1181_v1 = vpop.f32.mrf.mxu0  ;;  %v7494_v2 = vpop.f32.mrf.mxu1  ;;  %7881 = vmatprep.subr.bf16.mxu0 %v8202_v3  ;;  %v1190_v14 = vadd.f32 %v8792_v42, %v7461_v57  ;;  %v2214_v22 = vmax.f32 %v1734_v53, 0.0 }
 0x1be   : > { %v1426_v5 = vpack.c.bf16 %v1353_v61, %v1352_v59  ;;  %v1737_v7 = vadd.f32 %v7494_v2, %v8771_v4  ;;  %7623 = vmatprep.mubr.msk.bf16.mxu0 %vm1466_vm1, %v2334_v60  ;;  %v1182_v11 = vadd.f32 %v8792_v42, %v1181_v1  ;;  %v2212_v19 = vmax.f32 %v1726_v6, 0.0 }
 0x1bf   : > { %v7462_v9 = vpop.f32.mrf.mxu0  ;;  %v1728_v10 = vpop.f32.mrf.mxu1  ;;  %7624 = vmatmul.mubr.msk.bf16.gmra.mxu0 %vm1466_vm1, %v2335_v63  ;;  %v1358_v27 = vmax.f32 %v1190_v14, 0.0 }
 0x1c0   : > { %v1193_v12 = vadd.f32 %v8792_v42, %v7462_v9  ;;  %v1729_v13 = vadd.f32 %v8771_v4, %v1728_v10  ;;  %7591 = vmatprep.mubr.msk.bf16.mxu1 %vm1466_vm1, %v1426_v5  ;;  %7882 = vmatpush3.bf16.msra.mxu0 %v8202_v3  ;;  %v2215_v15 = vmax.f32 %v1737_v7, 0.0  ;;  %v1356_v28 = vmax.f32 %v1182_v11, 0.0 }
 0x1c1   : > { %v1184_v16 = vpop.f32.mrf.mxu0  ;;  %v7497_v17 = vpop.f32.mrf.mxu1  ;;  %7592 = vmatmul.mubr.msk.bf16.gmra.mxu1 %vm1466_vm1, %v1427_v8  ;;  %7883 = vmatprep.subr.bf16.mxu0 %v8203_v18 }
 0x1c2   : > { %v2213_v20 = vmax.f32 %v1729_v13, 0.0  ;;  %v1185_v21 = vadd.f32 %v8792_v42, %v1184_v16  ;;  %v1359_v23 = vmax.f32 %v1193_v12, 0.0  ;;  %v2337_v29 = vpack.c.bf16 %v2215_v15, %v2214_v22 }
 0x1c3   : > { %v7465_v0 = vpop.f32.mrf.mxu0  ;;  %v1741_v24 = vpop.f32.mrf.mxu1  ;;  %v1750_v36 = vadd.f32 %v7497_v17, %v8771_v4 }
 0x1c4   : > { %v2336_v25 = vpack.c.bf16 %v2213_v20, %v2212_v19  ;;  %v1357_v26 = vmax.f32 %v1185_v21, 0.0  ;;  %7884 = vmatpush3.bf16.msra.mxu0 %v8203_v18  ;;  %v1742_v33 = vadd.f32 %v8771_v4, %v1741_v24  ;;  %v1429_v35 = vpack.c.bf16 %v1359_v23, %v1358_v27 }
 0x1c5   : > { %v1197_v30 = vpop.f32.mrf.mxu0  ;;  %v7498_v31 = vpop.f32.mrf.mxu1  ;;  %v1206_v43 = vadd.f32 %v8792_v42, %v7465_v0  ;;  %v2218_v50 = vmax.f32 %v1750_v36, 0.0 }
 0x1c6   : > { %v1428_v32 = vpack.c.bf16 %v1357_v26, %v1356_v28  ;;  %v1753_v34 = vadd.f32 %v7498_v31, %v8771_v4  ;;  %7627 = vmatprep.mubr.msk.bf16.mxu0 %vm1466_vm1, %v2336_v25  ;;  %v1198_v39 = vadd.f32 %v8792_v42, %v1197_v30  ;;  %v2216_v48 = vmax.f32 %v1742_v33, 0.0 }
 0x1c7   : > { %v7466_v37 = vpop.f32.mrf.mxu0  ;;  %v1744_v38 = vpop.f32.mrf.mxu1  ;;  %7628 = vmatmul.mubr.msk.bf16.gmra.mxu0 %vm1466_vm1, %v2337_v29  ;;  %v1362_v58 = vmax.f32 %v1206_v43, 0.0 }
 0x1c8   : > { %v1209_v40 = vadd.f32 %v8792_v42, %v7466_v37  ;;  %v1745_v41 = vadd.f32 %v8771_v4, %v1744_v38  ;;  %7595 = vmatprep.mubr.msk.bf16.mxu1 %vm1466_vm1, %v1428_v32  ;;  %v2219_v45 = vmax.f32 %v1753_v34, 0.0  ;;  %v1360_v55 = vmax.f32 %v1198_v39, 0.0 }
 0x1c9   : > { %v1200_v46 = vpop.f32.mrf.mxu0  ;;  %v7501_v47 = vpop.f32.mrf.mxu1  ;;  %7596 = vmatmul.mubr.msk.bf16.gmra.mxu1 %vm1466_vm1, %v1429_v35 }
 0x1ca   : > { %v2217_v44 = vmax.f32 %v1745_v41, 0.0  ;;  %v1201_v49 = vadd.f32 %v8792_v42, %v1200_v46  ;;  %v1363_v51 = vmax.f32 %v1209_v40, 0.0  ;;  %v2339_v59 = vpack.c.bf16 %v2219_v45, %v2218_v50 }
 0x1cb   : > { %v7469_v52 = vpop.f32.mrf.mxu0  ;;  %v1757_v54 = vpop.f32.mrf.mxu1  ;;  %v1766_v3 = vadd.f32 %v7501_v47, %v8771_v4 }
 0x1cc   : > { %v2338_v56 = vpack.c.bf16 %v2217_v44, %v2216_v48  ;;  %v1361_v57 = vmax.f32 %v1201_v49, 0.0  ;;  %v1758_v63 = vadd.f32 %v8771_v4, %v1757_v54  ;;  %v1431_v2 = vpack.c.bf16 %v1363_v51, %v1362_v58  ;;  %v6616_v48 = vld [vmem:[%s8379_s20 + $0x400] sm:$0xff]  ;;  %v6617_v44 = vld [vmem:[%s8379_s20 + $0x408] sm:$0xff] }
 0x1cd   : > { %v1213_v60 = vpop.f32.mrf.mxu0  ;;  %v7502_v61 = vpop.f32.mrf.mxu1  ;;  %v1222_v9 = vadd.f32 %v8792_v42, %v7469_v52  ;;  %v2222_v16 = vmax.f32 %v1766_v3, 0.0 }
 0x1ce   : > { %v1430_v62 = vpack.c.bf16 %v1361_v57, %v1360_v55  ;;  %v1769_v1 = vadd.f32 %v7502_v61, %v8771_v4  ;;  %7631 = vmatprep.mubr.msk.bf16.mxu0 %vm1466_vm1, %v2338_v56  ;;  %v1214_v7 = vadd.f32 %v8792_v42, %v1213_v60  ;;  %v2220_v13 = vmax.f32 %v1758_v63, 0.0 }
 0x1cf   : > { %v7470_v5 = vpop.f32.mrf.mxu0  ;;  %v1760_v6 = vpop.f32.mrf.mxu1  ;;  %7632 = vmatmul.mubr.msk.bf16.gmra.mxu0 %vm1466_vm1, %v2339_v59  ;;  %v1366_v23 = vmax.f32 %v1222_v9, 0.0  ;;  %v6621_v9 = vld [vmem:[%s8379_s20 + $0x428] sm:$0xff] }
 0x1d0   : > { %v1225_v8 = vadd.f32 %v8792_v42, %v7470_v5  ;;  %v1761_v53 = vadd.f32 %v8771_v4, %v1760_v6  ;;  %7599 = vmatprep.mubr.msk.bf16.mxu1 %vm1466_vm1, %v1430_v62  ;;  %v2223_v10 = vmax.f32 %v1769_v1, 0.0  ;;  %v1364_v20 = vmax.f32 %v1214_v7, 0.0  ;;  %v6618_v5 = vld [vmem:[%s8379_s20 + $0x410] sm:$0xff]  ;;  %v6619_v6 = vld [vmem:[%s8379_s20 + $0x418] sm:$0xff] }
 0x1d1   : > { %v1216_v11 = vpop.f32.mrf.mxu0  ;;  %v7505_v12 = vpop.f32.mrf.mxu1  ;;  %7600 = vmatmul.mubr.msk.bf16.gmra.mxu1 %vm1466_vm1, %v1431_v2 }
 0x1d2   : > { %v2221_v14 = vmax.f32 %v1761_v53, 0.0  ;;  %v1217_v15 = vadd.f32 %v8792_v42, %v1216_v11  ;;  %v1367_v17 = vmax.f32 %v1225_v8, 0.0  ;;  %v2341_v0 = vpack.c.bf16 %v2223_v10, %v2222_v16  ;;  %v6620_v53 = vld [vmem:[%s8379_s20 + $0x420] sm:$0xff] }
 0x1d3   : > { %v7473_v18 = vpop.f32.mrf.mxu0  ;;  %v1773_v19 = vpop.f32.mrf.mxu1  ;;  %v1782_v30 = vadd.f32 %v7505_v12, %v8771_v4  ;;  %v3486_v16 = vpack.c.bf16 %v6621_v9, %v6620_v53  ;;  %v6632_v9 = vld [vmem:[%s8379_s20 + $0x480] sm:$0xff] }
 0x1d4   : > { %v2340_v21 = vpack.c.bf16 %v2221_v14, %v2220_v13  ;;  %v1365_v22 = vmax.f32 %v1217_v15, 0.0  ;;  %v1774_v26 = vadd.f32 %v8771_v4, %v1773_v19  ;;  %v1433_v29 = vpack.c.bf16 %v1367_v17, %v1366_v23 }
 0x1d5   : > { %v1229_v24 = vpop.f32.mrf.mxu0  ;;  %v7506_v28 = vpop.f32.mrf.mxu1  ;;  %v1238_v36 = vadd.f32 %v8792_v42, %v7473_v18  ;;  %v2226_v45 = vmax.f32 %v1782_v30, 0.0  ;;  %v3485_v13 = vpack.c.bf16 %v6619_v6, %v6618_v5  ;;  %v8205_v30 = vld [vmem:[%s10013_s5 + $0x10] sm:$0xff]  }
 0x1d6   : > { %v1432_v25 = vpack.c.bf16 %v1365_v22, %v1364_v20  ;;  %v1785_v27 = vadd.f32 %v7506_v28, %v8771_v4  ;;  %7635 = vmatprep.mubr.msk.bf16.mxu0 %vm1466_vm1, %v2340_v21  ;;  %v1230_v33 = vadd.f32 %v8792_v42, %v1229_v24  ;;  %v2224_v40 = vmax.f32 %v1774_v26, 0.0  ;;  %v6623_v24 = vld [vmem:[%s8379_s20 + $0x438] sm:$0xff]  ;;  %v6630_v6 = vld [vmem:[%s8379_s20 + $0x470] sm:$0xff] }
 0x1d7   : > { %v7474_v31 = vpop.f32.mrf.mxu0  ;;  %v1776_v32 = vpop.f32.mrf.mxu1  ;;  %7636 = vmatmul.mubr.msk.bf16.gmra.mxu0 %vm1466_vm1, %v2341_v0  ;;  %v1370_v52 = vmax.f32 %v1238_v36, 0.0  ;;  %v6622_v0 = vld [vmem:[%s8379_s20 + $0x430] sm:$0xff]  ;;  %v8204_v28 = vld [vmem:[%s10013_s5 + $0x18] sm:$0xff]  }
 0x1d8   : > { %v1241_v34 = vadd.f32 %v8792_v42, %v7474_v31  ;;  %v1777_v35 = vadd.f32 %v8771_v4, %v1776_v32  ;;  %7603 = vmatprep.mubr.msk.bf16.mxu1 %vm1466_vm1, %v1432_v25  ;;  %v2227_v37 = vmax.f32 %v1785_v27, 0.0  ;;  %v1368_v49 = vmax.f32 %v1230_v33, 0.0  ;;  %v6624_v27 = vld [vmem:[%s8379_s20 + $0x440] sm:$0xff] }
 0x1d9   : > { %v1232_v38 = vpop.f32.mrf.mxu0  ;;  %v7509_v39 = vpop.f32.mrf.mxu1  ;;  %7604 = vmatmul.mubr.msk.bf16.gmra.mxu1 %vm1466_vm1, %v1433_v29  ;;  %v6625_v29 = vld [vmem:[%s8379_s20 + $0x448] sm:$0xff] }
 0x1da   : > { %v2225_v41 = vmax.f32 %v1777_v35, 0.0  ;;  %v1233_v43 = vadd.f32 %v8792_v42, %v1232_v38  ;;  %v1371_v46 = vmax.f32 %v1241_v34, 0.0  ;;  %v2343_v54 = vpack.c.bf16 %v2227_v37, %v2226_v45 }
 0x1db   : > { %v1789_v47 = vpop.f32.mrf.mxu1  ;;  %v3484_v42 = vpack.c.bf16 %v6617_v44, %v6616_v48  ;;  %v1798_v60 = vadd.f32 %v7509_v39, %v8771_v4  ;;  %v3487_v34 = vpack.c.bf16 %v6623_v24, %v6622_v0  ;;  %v3488_v37 = vpack.c.bf16 %v6625_v29, %v6624_v27  ;;  %v6626_v48 = vld [vmem:[%s8379_s20 + $0x450] sm:$0xff]  ;;  %v6627_v44 = vld [vmem:[%s8379_s20 + $0x458] sm:$0xff]  ;;  %v6636_v27 = vld [vmem:[%s8379_s20 + $0x4a0] sm:$0xff] }
 0x1dc   : > { %v2342_v50 = vpack.c.bf16 %v2225_v41, %v2224_v40  ;;  %v1369_v51 = vmax.f32 %v1233_v43, 0.0  ;;  %v1790_v57 = vadd.f32 %v8771_v4, %v1789_v47  ;;  %v1435_v59 = vpack.c.bf16 %v1371_v46, %v1370_v52  ;;  %v8206_v40 = vld [vmem:[%s10013_s5 + $0x8] sm:$0xff]   ;;  %v6634_v24 = vld [vmem:[%s8379_s20 + $0x490] sm:$0xff] }
 0x1dd   : > { %v7510_v55 = vpop.f32.mrf.mxu1  ;;  %v2230_v7 = vmax.f32 %v1798_v60, 0.0  ;;  %v6629_v52 = vld [vmem:[%s8379_s20 + $0x468] sm:$0xff] }
 0x1de   : > { %v1434_v56 = vpack.c.bf16 %v1369_v51, %v1368_v49  ;;  %v1801_v58 = vadd.f32 %v7510_v55, %v8771_v4  ;;  %7639 = vmatprep.mubr.msk.bf16.mxu0 %vm1466_vm1, %v2342_v50  ;;  %v2228_v2 = vmax.f32 %v1790_v57, 0.0  ;;  %v6628_v51 = vld [vmem:[%s8379_s20 + $0x460] sm:$0xff]  ;;  %v6637_v29 = vld [vmem:[%s8379_s20 + $0x4a8] sm:$0xff] }
 0x1df   : > { %v1792_v61 = vpop.f32.mrf.mxu1  ;;  %7640 = vmatmul.mubr.msk.bf16.gmra.mxu0 %vm1466_vm1, %v2343_v54  ;;  %v8207_v54 = vld [vmem:[%s10013_s5] sm:$0xff]   ;;  %v3490_v60 = vpack.c.bf16 %v6629_v52, %v6628_v51 }
 0x1e0   : > { %v1793_v62 = vadd.f32 %v8771_v4, %v1792_v61  ;;  %7607 = vmatprep.mubr.msk.bf16.mxu1 %vm1466_vm1, %v1434_v56  ;;  %v2231_v63 = vmax.f32 %v1801_v58, 0.0  ;;  %v3489_v58 = vpack.c.bf16 %v6627_v44, %v6626_v48 }
 0x1e1   : > { %v7513_v1 = vpop.f32.mrf.mxu1  ;;  %7608 = vmatmul.mubr.msk.bf16.gmra.mxu1 %vm1466_vm1, %v1435_v59 }
 0x1e2   : > { %v2229_v3 = vmax.f32 %v1793_v62, 0.0  ;;  %7749 = vmatprep.mubr.msk.bf16.mxu1 %vm506_vm0, %v3484_v42  ;;  %v2345_v11 = vpack.c.bf16 %v2231_v63, %v2230_v7  ;;  %v1814_v17 = vadd.f32 %v7513_v1, %v8771_v4  ;;  %v6631_v7 = vld [vmem:[%s8379_s20 + $0x478] sm:$0xff] }
 0x1e3   : > { %v1805_v8 = vpop.f32.mrf.mxu1 }
 0x1e4   : > { %v2344_v10 = vpack.c.bf16 %v2229_v3, %v2228_v2  ;;  %v1806_v14 = vadd.f32 %v8771_v4, %v1805_v8  ;;  %v2234_v25 = vmax.f32 %v1814_v17, 0.0 }
 0x1e5   : > { %v7514_v12 = vpop.f32.mrf.mxu1 }
 0x1e6   : > { %v1817_v15 = vadd.f32 %v7514_v12, %v8771_v4  ;;  %7643 = vmatprep.mubr.msk.bf16.mxu0 %vm1466_vm1, %v2344_v10  ;;  %v2232_v22 = vmax.f32 %v1806_v14, 0.0  ;;  %v6633_v10 = vld [vmem:[%s8379_s20 + $0x488] sm:$0xff]  ;;  %v3491_v14 = vpack.c.bf16 %v6631_v7, %v6630_v6  ;;  %v6644_v7 = vld [vmem:[%s8379_s20 + $0x4e0] sm:$0xff] }
 0x1e7   : > { %v1808_v18 = vpop.f32.mrf.mxu1  ;;  %7644 = vmatmul.mubr.msk.bf16.gmra.mxu0 %vm1466_vm1, %v2345_v11  ;;  %v3492_v17 = vpack.c.bf16 %v6633_v10, %v6632_v9 }
 0x1e8   : > { %v1809_v19 = vadd.f32 %v8771_v4, %v1808_v18  ;;  %v2235_v20 = vmax.f32 %v1817_v15, 0.0 }
 0x1e9   : > { %v7517_v21 = vpop.f32.mrf.mxu1  ;;  %7750 = vmatmul.mubr.msk.bf16.vlgmr.msra.gmra.mxu1 %vm506_vm0, %v3485_v13 }
 0x1ea   : > { %v2233_v23 = vmax.f32 %v1809_v19, 0.0  ;;  %7753 = vmatprep.mubr.msk.bf16.mxu1 %vm506_vm0, %v3486_v16  ;;  %8014 = vmatpush3.bf16.msra.mxu1 %v8204_v28  ;;  %v2347_v32 = vpack.c.bf16 %v2235_v20, %v2234_v25  ;;  %v1830_v38 = vadd.f32 %v7517_v21, %v8771_v4  ;;  %v6635_v28 = vld [vmem:[%s8379_s20 + $0x498] sm:$0xff] }
 0x1eb   : > { %v1821_v26 = vpop.f32.mrf.mxu1  ;;  %8015 = vmatprep.subr.bf16.mxu1 %v8205_v30 }
 0x1ec   : > { %v2346_v31 = vpack.c.bf16 %v2233_v23, %v2232_v22  ;;  %v1822_v35 = vadd.f32 %v8771_v4, %v1821_v26  ;;  %v2238_v49 = vmax.f32 %v1830_v38, 0.0 }
 0x1ed   : > { %v7518_v33 = vpop.f32.mrf.mxu1 }
 0x1ee   : > { %v1833_v36 = vadd.f32 %v7518_v33, %v8771_v4  ;;  %7647 = vmatprep.mubr.msk.bf16.mxu0 %vm1466_vm1, %v2346_v31  ;;  %8016 = vmatpush3.bf16.msra.mxu1 %v8205_v30  ;;  %v2236_v46 = vmax.f32 %v1822_v35, 0.0  ;;  %v3493_v33 = vpack.c.bf16 %v6635_v28, %v6634_v24  ;;  %v6648_v28 = vld [vmem:[%s8379_s20 + $0x500] sm:$0xff] }
 0x1ef   : > { %v1824_v39 = vpop.f32.mrf.mxu1  ;;  %7648 = vmatmul.mubr.msk.bf16.gmra.mxu0 %vm1466_vm1, %v2347_v32  ;;  %8017 = vmatprep.subr.bf16.mxu1 %v8206_v40 }
 0x1f0   : > { %v1825_v41 = vadd.f32 %v8771_v4, %v1824_v39  ;;  %v2239_v43 = vmax.f32 %v1833_v36, 0.0  ;;  %v3494_v36 = vpack.c.bf16 %v6637_v29, %v6636_v27 }
 0x1f1   : > { %v7521_v45 = vpop.f32.mrf.mxu1  ;;  %7754 = vmatmul.mubr.msk.bf16.gmra.mxu1 %vm506_vm0, %v3487_v34 }
 0x1f2   : > { %v2237_v47 = vmax.f32 %v1825_v41, 0.0  ;;  %7757 = vmatprep.mubr.msk.bf16.mxu1 %vm506_vm0, %v3488_v37  ;;  %8018 = vmatpush3.bf16.msra.mxu1 %v8206_v40  ;;  %v2349_v56 = vpack.c.bf16 %v2239_v43, %v2238_v49  ;;  %v1846_v61 = vadd.f32 %v7521_v45, %v8771_v4  ;;  %v6640_v49 = vld [vmem:[%s8379_s20 + $0x4c0] sm:$0xff] }
 0x1f3   : > { %v1837_v50 = vpop.f32.mrf.mxu1  ;;  %8019 = vmatprep.subr.bf16.mxu1 %v8207_v54 }
 0x1f4   : > { %v2348_v55 = vpack.c.bf16 %v2237_v47, %v2236_v46  ;;  %v1838_v42 = vadd.f32 %v8771_v4, %v1837_v50  ;;  %v2242_v8 = vmax.f32 %v1846_v61, 0.0  ;;  %v6638_v46 = vld [vmem:[%s8379_s20 + $0x4b0] sm:$0xff]  ;;  %v6639_v47 = vld [vmem:[%s8379_s20 + $0x4b8] sm:$0xff]  ;;  %v6641_v50 = vld [vmem:[%s8379_s20 + $0x4c8] sm:$0xff] }
 0x1f5   : > { %v7522_v57 = vpop.f32.mrf.mxu1 }
 0x1f6   : > { %v1849_v59 = vadd.f32 %v7522_v57, %v8771_v4  ;;  %7651 = vmatprep.mubr.msk.bf16.mxu0 %vm1466_vm1, %v2348_v55  ;;  %8020 = vmatpush3.bf16.msra.mxu1 %v8207_v54  ;;  %v2240_v3 = vmax.f32 %v1838_v42, 0.0  ;;  %v3495_v55 = vpack.c.bf16 %v6639_v47, %v6638_v46  ;;  %v6652_v47 = vld [vmem:[%s8379_s20 + $0x520] sm:$0xff] }
 0x1f7   : > { %v1840_v62 = vpop.f32.mrf.mxu1  ;;  %7652 = vmatmul.mubr.msk.bf16.gmra.mxu0 %vm1466_vm1, %v2349_v56 }
 0x1f8   : > { %v1841_v63 = vadd.f32 %v8771_v4, %v1840_v62  ;;  %v2243_v1 = vmax.f32 %v1849_v59, 0.0 }
 0x1f9   : > { %v7525_v2 = vpop.f32.mrf.mxu1  ;;  %7758 = vmatmul.mubr.msk.bf16.gmra.mxu1 %vm506_vm0, %v3489_v58  ;;  %v3496_v58 = vpack.c.bf16 %v6641_v50, %v6640_v49 }
 0x1fa   : > { %v2241_v5 = vmax.f32 %v1841_v63, 0.0  ;;  %7761 = vmatprep.mubr.msk.bf16.mxu1 %vm506_vm0, %v3490_v60  ;;  %v2351_v12 = vpack.c.bf16 %v2243_v1, %v2242_v8  ;;  %v1862_v18 = vadd.f32 %v7525_v2, %v8771_v4  ;;  %v6642_v2 = vld [vmem:[%s8379_s20 + $0x4d0] sm:$0xff]  ;;  %v6645_v8 = vld [vmem:[%s8379_s20 + $0x4e8] sm:$0xff] }
 0x1fb   : > { %v1853_v53 = vpop.f32.mrf.mxu1 }
 0x1fc   : > { %v2350_v11 = vpack.c.bf16 %v2241_v5, %v2240_v3  ;;  %v1854_v15 = vadd.f32 %v8771_v4, %v1853_v53  ;;  %v2246_v25 = vmax.f32 %v1862_v18, 0.0  ;;  %v6643_v3 = vld [vmem:[%s8379_s20 + $0x4d8] sm:$0xff] }
 0x1fd   : > { %v7526_v13 = vpop.f32.mrf.mxu1 }
 0x1fe   : > { %v1865_v16 = vadd.f32 %v7526_v13, %v8771_v4  ;;  %7655 = vmatprep.mubr.msk.bf16.mxu0 %vm1466_vm1, %v2350_v11  ;;  %v2244_v23 = vmax.f32 %v1854_v15, 0.0  ;;  %v3497_v11 = vpack.c.bf16 %v6643_v3, %v6642_v2  ;;  %v6656_v3 = vld [vmem:[%s8379_s20 + $0x540] sm:$0xff] }
 0x1ff   : > { %v1856_v19 = vpop.f32.mrf.mxu1  ;;  %7656 = vmatmul.mubr.msk.bf16.gmra.mxu0 %vm1466_vm1, %v2351_v12 }
 0x200   : > { %v1857_v20 = vadd.f32 %v8771_v4, %v1856_v19  ;;  %v2247_v21 = vmax.f32 %v1865_v16, 0.0 }
 0x201   : > { %v7529_v22 = vpop.f32.mrf.mxu1  ;;  %7762 = vmatmul.mubr.msk.bf16.gmra.mxu1 %vm506_vm0, %v3491_v14  ;;  %v3498_v14 = vpack.c.bf16 %v6645_v8, %v6644_v7 }
 0x202   : > { %v2245_v0 = vmax.f32 %v1857_v20, 0.0  ;;  %7765 = vmatprep.mubr.msk.bf16.mxu1 %vm506_vm0, %v3492_v17  ;;  %v2353_v31 = vpack.c.bf16 %v2247_v21, %v2246_v25  ;;  %v1878_v37 = vadd.f32 %v7529_v22, %v8771_v4  ;;  %v6646_v22 = vld [vmem:[%s8379_s20 + $0x4f0] sm:$0xff]  ;;  %v6649_v25 = vld [vmem:[%s8379_s20 + $0x508] sm:$0xff] }
 0x203   : > { %v1869_v26 = vpop.f32.mrf.mxu1 }
 0x204   : > { %v2352_v30 = vpack.c.bf16 %v2245_v0, %v2244_v23  ;;  %v1870_v34 = vadd.f32 %v8771_v4, %v1869_v26  ;;  %v2250_v48 = vmax.f32 %v1878_v37, 0.0  ;;  %v6647_v23 = vld [vmem:[%s8379_s20 + $0x4f8] sm:$0xff] }
 0x205   : > { %v7530_v32 = vpop.f32.mrf.mxu1 }
 0x206   : > { %v1881_v35 = vadd.f32 %v7530_v32, %v8771_v4  ;;  %7659 = vmatprep.mubr.msk.bf16.mxu0 %vm1466_vm1, %v2352_v30  ;;  %v2248_v43 = vmax.f32 %v1870_v34, 0.0  ;;  %v3499_v30 = vpack.c.bf16 %v6647_v23, %v6646_v22  ;;  %v6660_v23 = vld [vmem:[%s8379_s20 + $0x560] sm:$0xff] }
 0x207   : > { %v1872_v38 = vpop.f32.mrf.mxu1  ;;  %7660 = vmatmul.mubr.msk.bf16.gmra.mxu0 %vm1466_vm1, %v2353_v31 }
 0x208   : > { %v1873_v39 = vadd.f32 %v8771_v4, %v1872_v38  ;;  %v2251_v40 = vmax.f32 %v1881_v35, 0.0 }
 0x209   : > { %v7533_v41 = vpop.f32.mrf.mxu1  ;;  %7766 = vmatmul.mubr.msk.bf16.gmra.mxu1 %vm506_vm0, %v3493_v33  ;;  %v3500_v33 = vpack.c.bf16 %v6649_v25, %v6648_v28 }
 0x20a   : > { %v2249_v45 = vmax.f32 %v1873_v39, 0.0  ;;  %7769 = vmatprep.mubr.msk.bf16.mxu1 %vm506_vm0, %v3494_v36  ;;  %v2355_v52 = vpack.c.bf16 %v2251_v40, %v2250_v48  ;;  %v1894_v42 = vadd.f32 %v7533_v41, %v8771_v4  ;;  %v6650_v41 = vld [vmem:[%s8379_s20 + $0x510] sm:$0xff]  ;;  %v6653_v48 = vld [vmem:[%s8379_s20 + $0x528] sm:$0xff] }
 0x20b   : > { %v1885_v44 = vpop.f32.mrf.mxu1 }
 0x20c   : > { %v2354_v51 = vpack.c.bf16 %v2249_v45, %v2248_v43  ;;  %v1886_v56 = vadd.f32 %v8771_v4, %v1885_v44  ;;  %v2254_v5 = vmax.f32 %v1894_v42, 0.0  ;;  %v6651_v43 = vld [vmem:[%s8379_s20 + $0x518] sm:$0xff] }
 0x20d   : > { %v7534_v54 = vpop.f32.mrf.mxu1 }
 0x20e   : > { %v1897_v57 = vadd.f32 %v7534_v54, %v8771_v4  ;;  %7663 = vmatprep.mubr.msk.bf16.mxu0 %vm1466_vm1, %v2354_v51  ;;  %v2252_v63 = vmax.f32 %v1886_v56, 0.0  ;;  %v3501_v51 = vpack.c.bf16 %v6651_v43, %v6650_v41  ;;  %v6664_v43 = vld [vmem:[%s8379_s20 + $0x580] sm:$0xff] }
 0x20f   : > { %v1888_v59 = vpop.f32.mrf.mxu1  ;;  %7664 = vmatmul.mubr.msk.bf16.gmra.mxu0 %vm1466_vm1, %v2355_v52 }
 0x210   : > { %v1889_v60 = vadd.f32 %v8771_v4, %v1888_v59  ;;  %v2255_v61 = vmax.f32 %v1897_v57, 0.0 }
 0x211   : > { %v7537_v62 = vpop.f32.mrf.mxu1  ;;  %7770 = vmatmul.mubr.msk.bf16.gmra.mxu1 %vm506_vm0, %v3495_v55  ;;  %v3502_v55 = vpack.c.bf16 %v6653_v48, %v6652_v47 }
 0x212   : > { %v2253_v1 = vmax.f32 %v1889_v60, 0.0  ;;  %7773 = vmatprep.mubr.msk.bf16.mxu1 %vm506_vm0, %v3496_v58  ;;  %v2357_v9 = vpack.c.bf16 %v2255_v61, %v2254_v5  ;;  %v1910_v15 = vadd.f32 %v7537_v62, %v8771_v4  ;;  %v6654_v62 = vld [vmem:[%s8379_s20 + $0x530] sm:$0xff]  ;;  %v6657_v5 = vld [vmem:[%s8379_s20 + $0x548] sm:$0xff] }
 0x213   : > { %v1901_v6 = vpop.f32.mrf.mxu1 }
 0x214   : > { %v2356_v53 = vpack.c.bf16 %v2253_v1, %v2252_v63  ;;  %v1902_v12 = vadd.f32 %v8771_v4, %v1901_v6  ;;  %v2258_v0 = vmax.f32 %v1910_v15, 0.0  ;;  %v6655_v63 = vld [vmem:[%s8379_s20 + $0x538] sm:$0xff] }
 0x215   : > { %v7538_v10 = vpop.f32.mrf.mxu1 }
 0x216   : > { %v1913_v13 = vadd.f32 %v7538_v10, %v8771_v4  ;;  %7667 = vmatprep.mubr.msk.bf16.mxu0 %vm1466_vm1, %v2356_v53  ;;  %v2256_v20 = vmax.f32 %v1902_v12, 0.0  ;;  %v3503_v53 = vpack.c.bf16 %v6655_v63, %v6654_v62  ;;  %v6668_v63 = vld [vmem:[%s8379_s20 + $0x5a0] sm:$0xff] }
 0x217   : > { %v1904_v16 = vpop.f32.mrf.mxu1  ;;  %7668 = vmatmul.mubr.msk.bf16.gmra.mxu0 %vm1466_vm1, %v2357_v9 }
 0x218   : > { %v1905_v17 = vadd.f32 %v8771_v4, %v1904_v16  ;;  %v2259_v18 = vmax.f32 %v1913_v13, 0.0 }
 0x219   : > { %v7541_v19 = vpop.f32.mrf.mxu1  ;;  %7774 = vmatmul.mubr.msk.bf16.gmra.mxu1 %vm506_vm0, %v3497_v11  ;;  %v3504_v11 = vpack.c.bf16 %v6657_v5, %v6656_v3 }
 0x21a   : > { %v2257_v21 = vmax.f32 %v1905_v17, 0.0  ;;  %7777 = vmatprep.mubr.msk.bf16.mxu1 %vm506_vm0, %v3498_v14  ;;  %v2359_v27 = vpack.c.bf16 %v2259_v18, %v2258_v0  ;;  %v1926_v34 = vadd.f32 %v7541_v19, %v8771_v4  ;;  %v6658_v19 = vld [vmem:[%s8379_s20 + $0x550] sm:$0xff]  ;;  %v6661_v0 = vld [vmem:[%s8379_s20 + $0x568] sm:$0xff] }
 0x21b   : > { %v1917_v24 = vpop.f32.mrf.mxu1 }
 0x21c   : > { %v2358_v26 = vpack.c.bf16 %v2257_v21, %v2256_v20  ;;  %v1918_v31 = vadd.f32 %v8771_v4, %v1917_v24  ;;  %v2262_v45 = vmax.f32 %v1926_v34, 0.0  ;;  %v6659_v20 = vld [vmem:[%s8379_s20 + $0x558] sm:$0xff] }
 0x21d   : > { %v7542_v29 = vpop.f32.mrf.mxu1 }
 0x21e   : > { %v1929_v32 = vadd.f32 %v7542_v29, %v8771_v4  ;;  %7671 = vmatprep.mubr.msk.bf16.mxu0 %vm1466_vm1, %v2358_v26  ;;  %v2260_v39 = vmax.f32 %v1918_v31, 0.0  ;;  %v3505_v26 = vpack.c.bf16 %v6659_v20, %v6658_v19  ;;  %v6672_v20 = vld [vmem:[%s8379_s20 + $0x5c0] sm:$0xff] }
 0x21f   : > { %v1920_v35 = vpop.f32.mrf.mxu1  ;;  %7672 = vmatmul.mubr.msk.bf16.gmra.mxu0 %vm1466_vm1, %v2359_v27 }
 0x220   : > { %v1921_v36 = vadd.f32 %v8771_v4, %v1920_v35  ;;  %v2263_v37 = vmax.f32 %v1929_v32, 0.0 }
 0x221   : > { %v7545_v38 = vpop.f32.mrf.mxu1  ;;  %7778 = vmatmul.mubr.msk.bf16.gmra.mxu1 %vm506_vm0, %v3499_v30  ;;  %v3506_v30 = vpack.c.bf16 %v6661_v0, %v6660_v23 }
 0x222   : > { %v2261_v40 = vmax.f32 %v1921_v36, 0.0  ;;  %7781 = vmatprep.mubr.msk.bf16.mxu1 %vm506_vm0, %v3500_v33  ;;  %v2361_v49 = vpack.c.bf16 %v2263_v37, %v2262_v45  ;;  %v1942_v56 = vadd.f32 %v7545_v38, %v8771_v4  ;;  %v6662_v38 = vld [vmem:[%s8379_s20 + $0x570] sm:$0xff]  ;;  %v6665_v45 = vld [vmem:[%s8379_s20 + $0x588] sm:$0xff] }
 0x223   : > { %v1933_v46 = vpop.f32.mrf.mxu1 }
 0x224   : > { %v2360_v44 = vpack.c.bf16 %v2261_v40, %v2260_v39  ;;  %v1934_v52 = vadd.f32 %v8771_v4, %v1933_v46  ;;  %v2266_v1 = vmax.f32 %v1942_v56, 0.0  ;;  %v6663_v39 = vld [vmem:[%s8379_s20 + $0x578] sm:$0xff] }
 0x225   : > { %v7546_v50 = vpop.f32.mrf.mxu1 }
 0x226   : > { %v1945_v54 = vadd.f32 %v7546_v50, %v8771_v4  ;;  %7675 = vmatprep.mubr.msk.bf16.mxu0 %vm1466_vm1, %v2360_v44  ;;  %v2264_v60 = vmax.f32 %v1934_v52, 0.0  ;;  %v3507_v44 = vpack.c.bf16 %v6663_v39, %v6662_v38  ;;  %v6676_v39 = vld [vmem:[%s8379_s20 + $0x5e0] sm:$0xff] }
 0x227   : > { %v1936_v57 = vpop.f32.mrf.mxu1  ;;  %7676 = vmatmul.mubr.msk.bf16.gmra.mxu0 %vm1466_vm1, %v2361_v49 }
 0x228   : > { %v1937_v58 = vadd.f32 %v8771_v4, %v1936_v57  ;;  %v2267_v42 = vmax.f32 %v1945_v54, 0.0 }
 0x229   : > { %v7549_v59 = vpop.f32.mrf.mxu1  ;;  %7782 = vmatmul.mubr.msk.bf16.gmra.mxu1 %vm506_vm0, %v3501_v51  ;;  %v3508_v51 = vpack.c.bf16 %v6665_v45, %v6664_v43 }
 0x22a   : > { %v2265_v61 = vmax.f32 %v1937_v58, 0.0  ;;  %7785 = vmatprep.mubr.msk.bf16.mxu1 %vm506_vm0, %v3502_v55  ;;  %v2363_v7 = vpack.c.bf16 %v2267_v42, %v2266_v1  ;;  %v1958_v12 = vadd.f32 %v7549_v59, %v8771_v4  ;;  %v6666_v59 = vld [vmem:[%s8379_s20 + $0x590] sm:$0xff]  ;;  %v6669_v1 = vld [vmem:[%s8379_s20 + $0x5a8] sm:$0xff] }
 0x22b   : > { %v1949_v2 = vpop.f32.mrf.mxu1 }
 0x22c   : > { %v2362_v6 = vpack.c.bf16 %v2265_v61, %v2264_v60  ;;  %v1950_v9 = vadd.f32 %v8771_v4, %v1949_v2  ;;  %v2270_v21 = vmax.f32 %v1958_v12, 0.0  ;;  %v6667_v60 = vld [vmem:[%s8379_s20 + $0x598] sm:$0xff] }
 0x22d   : > { %v7550_v8 = vpop.f32.mrf.mxu1 }
 0x22e   : > { %v1961_v10 = vadd.f32 %v7550_v8, %v8771_v4  ;;  %7679 = vmatprep.mubr.msk.bf16.mxu0 %vm1466_vm1, %v2362_v6  ;;  %v2268_v17 = vmax.f32 %v1950_v9, 0.0  ;;  %v3509_v6 = vpack.c.bf16 %v6667_v60, %v6666_v59  ;;  %v6680_v60 = vld [vmem:[%s8379_s20 + $0x600] sm:$0xff] }
 0x22f   : > { %v1952_v13 = vpop.f32.mrf.mxu1  ;;  %7680 = vmatmul.mubr.msk.bf16.gmra.mxu0 %vm1466_vm1, %v2363_v7 }
 0x230   : > { %v1953_v14 = vadd.f32 %v8771_v4, %v1952_v13  ;;  %v2271_v15 = vmax.f32 %v1961_v10, 0.0 }
 0x231   : > { %v7553_v16 = vpop.f32.mrf.mxu1  ;;  %7786 = vmatmul.mubr.msk.bf16.gmra.mxu1 %vm506_vm0, %v3503_v53  ;;  %v3510_v53 = vpack.c.bf16 %v6669_v1, %v6668_v63 }
 0x232   : > { %v2269_v18 = vmax.f32 %v1953_v14, 0.0  ;;  %7789 = vmatprep.mubr.msk.bf16.mxu1 %vm506_vm0, %v3504_v11  ;;  %v2365_v28 = vpack.c.bf16 %v2271_v15, %v2270_v21  ;;  %v1974_v31 = vadd.f32 %v7553_v16, %v8771_v4  ;;  %v6670_v16 = vld [vmem:[%s8379_s20 + $0x5b0] sm:$0xff]  ;;  %v6673_v21 = vld [vmem:[%s8379_s20 + $0x5c8] sm:$0xff] }
 0x233   : > { %v1965_v22 = vpop.f32.mrf.mxu1 }
 0x234   : > { %v2364_v24 = vpack.c.bf16 %v2269_v18, %v2268_v17  ;;  %v1966_v27 = vadd.f32 %v8771_v4, %v1965_v22  ;;  %v2274_v40 = vmax.f32 %v1974_v31, 0.0  ;;  %v6671_v17 = vld [vmem:[%s8379_s20 + $0x5b8] sm:$0xff] }
 0x235   : > { %v7554_v25 = vpop.f32.mrf.mxu1 }
 0x236   : > { %v1977_v29 = vadd.f32 %v7554_v25, %v8771_v4  ;;  %7683 = vmatprep.mubr.msk.bf16.mxu0 %vm1466_vm1, %v2364_v24  ;;  %v2272_v36 = vmax.f32 %v1966_v27, 0.0  ;;  %v3511_v24 = vpack.c.bf16 %v6671_v17, %v6670_v16  ;;  %v6684_v17 = vld [vmem:[%s8379_s20 + $0x620] sm:$0xff] }
 0x237   : > { %v1968_v32 = vpop.f32.mrf.mxu1  ;;  %7684 = vmatmul.mubr.msk.bf16.gmra.mxu0 %vm1466_vm1, %v2365_v28 }
 0x238   : > { %v1969_v33 = vadd.f32 %v8771_v4, %v1968_v32  ;;  %v2275_v34 = vmax.f32 %v1977_v29, 0.0 }
 0x239   : > { %v7557_v35 = vpop.f32.mrf.mxu1  ;;  %7790 = vmatmul.mubr.msk.bf16.gmra.mxu1 %vm506_vm0, %v3505_v26  ;;  %v3512_v26 = vpack.c.bf16 %v6673_v21, %v6672_v20 }
 0x23a   : > { %v2273_v37 = vmax.f32 %v1969_v33, 0.0  ;;  %7793 = vmatprep.mubr.msk.bf16.mxu1 %vm506_vm0, %v3506_v30  ;;  %v2367_v47 = vpack.c.bf16 %v2275_v34, %v2274_v40  ;;  %v1990_v52 = vadd.f32 %v7557_v35, %v8771_v4  ;;  %v6674_v35 = vld [vmem:[%s8379_s20 + $0x5d0] sm:$0xff]  ;;  %v6677_v40 = vld [vmem:[%s8379_s20 + $0x5e8] sm:$0xff] }
 0x23b   : > { %v1981_v41 = vpop.f32.mrf.mxu1 }
 0x23c   : > { %v2366_v46 = vpack.c.bf16 %v2273_v37, %v2272_v36  ;;  %v1982_v49 = vadd.f32 %v8771_v4, %v1981_v41  ;;  %v2278_v61 = vmax.f32 %v1990_v52, 0.0  ;;  %v6675_v36 = vld [vmem:[%s8379_s20 + $0x5d8] sm:$0xff] }
 0x23d   : > { %v7558_v48 = vpop.f32.mrf.mxu1 }
 0x23e   : > { %v1993_v50 = vadd.f32 %v7558_v48, %v8771_v4  ;;  %7687 = vmatprep.mubr.msk.bf16.mxu0 %vm1466_vm1, %v2366_v46  ;;  %v2276_v58 = vmax.f32 %v1982_v49, 0.0  ;;  %v3513_v46 = vpack.c.bf16 %v6675_v36, %v6674_v35  ;;  %v6688_v36 = vld [vmem:[%s8379_s20 + $0x640] sm:$0xff] }
 0x23f   : > { %v1984_v54 = vpop.f32.mrf.mxu1  ;;  %7688 = vmatmul.mubr.msk.bf16.gmra.mxu0 %vm1466_vm1, %v2367_v47 }
 0x240   : > { %v1985_v55 = vadd.f32 %v8771_v4, %v1984_v54  ;;  %v2279_v56 = vmax.f32 %v1993_v50, 0.0  ;;  %v9034_v4 = vld [vmem:[%s10012_s4] ss:$0 sm:$0xff] }
 0x241   : > { %v7561_v57 = vpop.f32.mrf.mxu1  ;;  %7794 = vmatmul.mubr.msk.bf16.gmra.mxu1 %vm506_vm0, %v3507_v44  ;;  %v3514_v44 = vpack.c.bf16 %v6677_v40, %v6676_v39 }
 0x242   : > { %v2277_v42 = vmax.f32 %v1985_v55, 0.0  ;;  %7797 = vmatprep.mubr.msk.bf16.mxu1 %vm506_vm0, %v3508_v51  ;;  %v2369_v3 = vpack.c.bf16 %v2279_v56, %v2278_v61  ;;  %v2006_v9 = vadd.f32 %v9034_v4, %v7561_v57  ;;  %v6678_v57 = vld [vmem:[%s8379_s20 + $0x5f0] sm:$0xff]  ;;  %v6681_v61 = vld [vmem:[%s8379_s20 + $0x608] sm:$0xff] }
 0x243   : > { %v1997_v62 = vpop.f32.mrf.mxu1 }
 0x244   : > { %v2368_v2 = vpack.c.bf16 %v2277_v42, %v2276_v58  ;;  %v1998_v7 = vadd.f32 %v9034_v4, %v1997_v62  ;;  %v2282_v18 = vmax.f32 %v2006_v9, 0.0  ;;  %v6679_v58 = vld [vmem:[%s8379_s20 + $0x5f8] sm:$0xff] }
 0x245   : > { %v7562_v5 = vpop.f32.mrf.mxu1 }
 0x246   : > { %v2009_v8 = vadd.f32 %v9034_v4, %v7562_v5  ;;  %7691 = vmatprep.mubr.msk.bf16.mxu0 %vm1466_vm1, %v2368_v2  ;;  %v2280_v14 = vmax.f32 %v1998_v7, 0.0  ;;  %v3515_v2 = vpack.c.bf16 %v6679_v58, %v6678_v57  ;;  %v6692_v58 = vld [vmem:[%s8379_s20 + $0x660] sm:$0xff] }
 0x247   : > { %v2000_v10 = vpop.f32.mrf.mxu1  ;;  %7692 = vmatmul.mubr.msk.bf16.gmra.mxu0 %vm1466_vm1, %v2369_v3 }
 0x248   : > { %v2001_v11 = vadd.f32 %v9034_v4, %v2000_v10  ;;  %v2283_v12 = vmax.f32 %v2009_v8, 0.0 }
 0x249   : > { %v7565_v13 = vpop.f32.mrf.mxu1  ;;  %7798 = vmatmul.mubr.msk.bf16.gmra.mxu1 %vm506_vm0, %v3509_v6  ;;  %v3516_v6 = vpack.c.bf16 %v6681_v61, %v6680_v60 }
 0x24a   : > { %v2281_v15 = vmax.f32 %v2001_v11, 0.0  ;;  %7801 = vmatprep.mubr.msk.bf16.mxu1 %vm506_vm0, %v3510_v53  ;;  %v2371_v23 = vpack.c.bf16 %v2283_v12, %v2282_v18  ;;  %v2022_v27 = vadd.f32 %v9034_v4, %v7565_v13  ;;  %v6682_v13 = vld [vmem:[%s8379_s20 + $0x610] sm:$0xff]  ;;  %v6685_v18 = vld [vmem:[%s8379_s20 + $0x628] sm:$0xff] }
 0x24b   : > { %v2013_v19 = vpop.f32.mrf.mxu1 }
 0x24c   : > { %v2370_v22 = vpack.c.bf16 %v2281_v15, %v2280_v14  ;;  %v2014_v28 = vadd.f32 %v9034_v4, %v2013_v19  ;;  %v2286_v37 = vmax.f32 %v2022_v27, 0.0  ;;  %v6683_v14 = vld [vmem:[%s8379_s20 + $0x618] sm:$0xff] }
 0x24d   : > { %v7566_v0 = vpop.f32.mrf.mxu1 }
 0x24e   : > { %v2025_v25 = vadd.f32 %v9034_v4, %v7566_v0  ;;  %7695 = vmatprep.mubr.msk.bf16.mxu0 %vm1466_vm1, %v2370_v22  ;;  %v2284_v33 = vmax.f32 %v2014_v28, 0.0  ;;  %v3517_v22 = vpack.c.bf16 %v6683_v14, %v6682_v13  ;;  %v6695_v13 = vld [vmem:[%s8379_s20 + $0x678] sm:$0xff]  ;;  %v6696_v14 = vld [vmem:[%s8379_s20 + $0x680] sm:$0xff] }
 0x24f   : > { %v2016_v29 = vpop.f32.mrf.mxu1  ;;  %7696 = vmatmul.mubr.msk.bf16.gmra.mxu0 %vm1466_vm1, %v2371_v23 }
 0x250   : > { %v2017_v30 = vadd.f32 %v9034_v4, %v2016_v29  ;;  %v2287_v31 = vmax.f32 %v2025_v25, 0.0 }
 0x251   : > { %v7569_v32 = vpop.f32.mrf.mxu1  ;;  %7802 = vmatmul.mubr.msk.bf16.gmra.mxu1 %vm506_vm0, %v3511_v24  ;;  %v3518_v24 = vpack.c.bf16 %v6685_v18, %v6684_v17 }
 0x252   : > { %v2285_v34 = vmax.f32 %v2017_v30, 0.0  ;;  %7805 = vmatprep.mubr.msk.bf16.mxu1 %vm506_vm0, %v3512_v26  ;;  %v2373_v43 = vpack.c.bf16 %v2287_v31, %v2286_v37  ;;  %v2038_v49 = vadd.f32 %v9034_v4, %v7569_v32  ;;  %v6686_v32 = vld [vmem:[%s8379_s20 + $0x630] sm:$0xff]  ;;  %v6689_v37 = vld [vmem:[%s8379_s20 + $0x648] sm:$0xff] }
 0x253   : > { %v2029_v38 = vpop.f32.mrf.mxu1 }
 0x254   : > { %v2372_v41 = vpack.c.bf16 %v2285_v34, %v2284_v33  ;;  %v2030_v47 = vadd.f32 %v9034_v4, %v2029_v38  ;;  %v2290_v42 = vmax.f32 %v2038_v49, 0.0  ;;  %v6687_v33 = vld [vmem:[%s8379_s20 + $0x638] sm:$0xff] }
 0x255   : > { %v7570_v45 = vpop.f32.mrf.mxu1 }
 0x256   : > { %v2041_v48 = vadd.f32 %v9034_v4, %v7570_v45  ;;  %7699 = vmatprep.mubr.msk.bf16.mxu0 %vm1466_vm1, %v2372_v41  ;;  %v2288_v55 = vmax.f32 %v2030_v47, 0.0  ;;  %v3519_v41 = vpack.c.bf16 %v6687_v33, %v6686_v32 }
 0x257   : > { %v2032_v50 = vpop.f32.mrf.mxu1  ;;  %7700 = vmatmul.mubr.msk.bf16.gmra.mxu0 %vm1466_vm1, %v2373_v43 }
 0x258   : > { %v2033_v51 = vadd.f32 %v9034_v4, %v2032_v50  ;;  %v2291_v52 = vmax.f32 %v2041_v48, 0.0 }
 0x259   : > { %v7573_v54 = vpop.f32.mrf.mxu1  ;;  %7806 = vmatmul.mubr.msk.bf16.gmra.mxu1 %vm506_vm0, %v3513_v46  ;;  %v3520_v46 = vpack.c.bf16 %v6689_v37, %v6688_v36 }
 0x25a   : > { %v2289_v56 = vmax.f32 %v2033_v51, 0.0  ;;  %7809 = vmatprep.mubr.msk.bf16.mxu1 %vm506_vm0, %v3514_v44  ;;  %v2375_v63 = vpack.c.bf16 %v2291_v52, %v2290_v42  ;;  %v2054_v7 = vadd.f32 %v9034_v4, %v7573_v54  ;;  %v6690_v54 = vld [vmem:[%s8379_s20 + $0x650] sm:$0xff]  ;;  %v6693_v42 = vld [vmem:[%s8379_s20 + $0x668] sm:$0xff] }
 0x25b   : > { %v2045_v59 = vpop.f32.mrf.mxu1 }
 0x25c   : > { %v2374_v62 = vpack.c.bf16 %v2289_v56, %v2288_v55  ;;  %v2046_v3 = vadd.f32 %v9034_v4, %v2045_v59  ;;  %v2294_v15 = vmax.f32 %v2054_v7, 0.0  ;;  %v6691_v55 = vld [vmem:[%s8379_s20 + $0x658] sm:$0xff] }
 0x25d   : > { %v7574_v1 = vpop.f32.mrf.mxu1 }
 0x25e   : > { %v2057_v5 = vadd.f32 %v9034_v4, %v7574_v1  ;;  %7703 = vmatprep.mubr.msk.bf16.mxu0 %vm1466_vm1, %v2374_v62  ;;  %v2292_v11 = vmax.f32 %v2046_v3, 0.0  ;;  %v3521_v62 = vpack.c.bf16 %v6691_v55, %v6690_v54 }
 0x25f   : > { %v2048_v8 = vpop.f32.mrf.mxu1  ;;  %7704 = vmatmul.mubr.msk.bf16.gmra.mxu0 %vm1466_vm1, %v2375_v63 }
 0x260   : > { %v2049_v53 = vadd.f32 %v9034_v4, %v2048_v8  ;;  %v2295_v9 = vmax.f32 %v2057_v5, 0.0 }
 0x261   : > { %v7577_v10 = vpop.f32.mrf.mxu1  ;;  %7810 = vmatmul.mubr.msk.bf16.gmra.mxu1 %vm506_vm0, %v3515_v2  ;;  %v3522_v2 = vpack.c.bf16 %v6693_v42, %v6692_v58 }
 0x262   : > { %v2293_v12 = vmax.f32 %v2049_v53, 0.0  ;;  %7813 = vmatprep.mubr.msk.bf16.mxu1 %vm506_vm0, %v3516_v6  ;;  %v2377_v20 = vpack.c.bf16 %v2295_v9, %v2294_v15  ;;  %v2070_v28 = vadd.f32 %v9034_v4, %v7577_v10  ;;  %v6694_v10 = vld [vmem:[%s8379_s20 + $0x670] sm:$0xff]  ;;  %v6697_v15 = vld [vmem:[%s8379_s20 + $0x688] sm:$0xff] }
 0x263   : > { %v2061_v16 = vpop.f32.mrf.mxu1 }
 0x264   : > { %v2376_v19 = vpack.c.bf16 %v2293_v12, %v2292_v11  ;;  %v2062_v23 = vadd.f32 %v9034_v4, %v2061_v16  ;;  %v2298_v34 = vmax.f32 %v2070_v28, 0.0 }
 0x265   : > { %v7578_v21 = vpop.f32.mrf.mxu1 }
 0x266   : > { %v2073_v0 = vadd.f32 %v9034_v4, %v7578_v21  ;;  %7707 = vmatprep.mubr.msk.bf16.mxu0 %vm1466_vm1, %v2376_v19  ;;  %v2296_v30 = vmax.f32 %v2062_v23, 0.0  ;;  %v9123_v21 = vld [vmem:[%s10014_s6] ss:$0 sm:$0xff] }
 0x267   : > { %v2064_v25 = vpop.f32.mrf.mxu1  ;;  %7708 = vmatmul.mubr.msk.bf16.gmra.mxu0 %vm1466_vm1, %v2377_v20 }
 0x268   : > { %v2065_v26 = vadd.f32 %v9034_v4, %v2064_v25  ;;  %v2299_v27 = vmax.f32 %v2073_v0, 0.0  ;;  %v3523_v0 = vpack.c.bf16 %v6695_v13, %v6694_v10  ;;  %v6703_v13 = vld [vmem:[%s8379_s20 + $0x6b8] sm:$0xff] }
 0x269   : > { %v7581_v29 = vpop.f32.mrf.mxu1  ;;  %7814 = vmatmul.mubr.msk.bf16.gmra.mxu1 %vm506_vm0, %v3517_v22 }
 0x26a   : > { %v2297_v31 = vmax.f32 %v2065_v26, 0.0  ;;  %7817 = vmatprep.mubr.msk.bf16.mxu1 %vm506_vm0, %v3518_v24  ;;  %v2379_v39 = vpack.c.bf16 %v2299_v27, %v2298_v34  ;;  %v2086_v47 = vadd.f32 %v9034_v4, %v7581_v29  ;;  %v3524_v24 = vpack.c.bf16 %v6697_v15, %v6696_v14  ;;  %v6704_v14 = vld [vmem:[%s8379_s20 + $0x6c0] sm:$0xff]  ;;  %v6705_v15 = vld [vmem:[%s8379_s20 + $0x6c8] sm:$0xff] }
 0x26b   : > { %v2077_v35 = vpop.f32.mrf.mxu1 }
 0x26c   : > { %v2378_v38 = vpack.c.bf16 %v2297_v31, %v2296_v30  ;;  %v2078_v43 = vadd.f32 %v9034_v4, %v2077_v35  ;;  %v2302_v56 = vmax.f32 %v2086_v47, 0.0  ;;  %v6701_v47 = vld [vmem:[%s8379_s20 + $0x6a8] sm:$0xff] }
 0x26d   : > { %v7582_v40 = vpop.f32.mrf.mxu1 }
 0x26e   : > { %v2089_v45 = vadd.f32 %v9034_v4, %v7582_v40  ;;  %7711 = vmatprep.mubr.msk.bf16.mxu0 %vm1466_vm1, %v2378_v38  ;;  %v2300_v51 = vmax.f32 %v2078_v43, 0.0  ;;  %v6698_v38 = vld [vmem:[%s8379_s20 + $0x690] sm:$0xff] }
 0x26f   : > { %v2080_v48 = vpop.f32.mrf.mxu1  ;;  %7712 = vmatmul.mubr.msk.bf16.gmra.mxu0 %vm1466_vm1, %v2379_v39 }
 0x270   : > { %v2081_v44 = vadd.f32 %v9034_v4, %v2080_v48  ;;  %v2303_v49 = vmax.f32 %v2089_v45, 0.0  ;;  %v6699_v45 = vld [vmem:[%s8379_s20 + $0x698] sm:$0xff] }
 0x271   : > { %v7585_v50 = vpop.f32.mrf.mxu1  ;;  %7818 = vmatmul.mubr.msk.bf16.gmra.mxu1 %vm506_vm0, %v3519_v41 }
 0x272   : > { %v2301_v52 = vmax.f32 %v2081_v44, 0.0  ;;  %7821 = vmatprep.mubr.msk.bf16.mxu1 %vm506_vm0, %v3520_v46  ;;  %v2381_v60 = vpack.c.bf16 %v2303_v49, %v2302_v56  ;;  %v2102_v3 = vadd.f32 %v9034_v4, %v7585_v50  ;;  %v6700_v46 = vld [vmem:[%s8379_s20 + $0x6a0] sm:$0xff] }
 0x273   : > { %v2093_v57 = vpop.f32.mrf.mxu1  ;;  %v3526_v58 = vpack.c.bf16 %v6701_v47, %v6700_v46  ;;  %v6707_v47 = vld [vmem:[%s8379_s20 + $0x6d8] sm:$0xff] }
 0x274   : > { %v2380_v59 = vpack.c.bf16 %v2301_v52, %v2300_v51  ;;  %v2094_v63 = vadd.f32 %v9034_v4, %v2093_v57  ;;  %v2306_v16 = vmax.f32 %v2102_v3, 0.0  ;;  %v3525_v57 = vpack.c.bf16 %v6699_v45, %v6698_v38 }
 0x275   : > { %v7586_v61 = vpop.f32.mrf.mxu1 }
 0x276   : > { %v2105_v1 = vadd.f32 %v9034_v4, %v7586_v61  ;;  %7715 = vmatprep.mubr.msk.bf16.mxu0 %vm1466_vm1, %v2380_v59  ;;  %v2304_v11 = vmax.f32 %v2094_v63, 0.0 }
 0x277   : > { %v2096_v5 = vpop.f32.mrf.mxu1  ;;  %v7621_v6 = vpop.f32.mrf.mxu0  ;;  %7716 = vmatmul.mubr.msk.bf16.gmra.mxu0 %vm1466_vm1, %v2381_v60 }
 0x278   : > { %v2097_v7 = vadd.f32 %v9034_v4, %v2096_v5  ;;  %v2307_v8 = vmax.f32 %v2105_v1, 0.0  ;;  %v2661_v32 = vadd.f32 %v7621_v6, %v9123_v21 }
 0x279   : > { %v7589_v53 = vpop.f32.mrf.mxu1  ;;  %v2652_v9 = vpop.f32.mrf.mxu0  ;;  %7822 = vmatmul.mubr.msk.bf16.gmra.mxu1 %vm506_vm0, %v3521_v62 }
 0x27a   : > { %v2305_v12 = vmax.f32 %v2097_v7, 0.0  ;;  %7825 = vmatprep.mubr.msk.bf16.mxu1 %vm506_vm0, %v3522_v2  ;;  %v2383_v20 = vpack.c.bf16 %v2307_v8, %v2306_v16  ;;  %v2653_v28 = vadd.f32 %v9123_v21, %v2652_v9  ;;  %v2118_v29 = vadd.f32 %v9034_v4, %v7589_v53  ;;  %v6702_v53 = vld [vmem:[%s8379_s20 + $0x6b0] sm:$0xff] }
 0x27b   : > { %v2109_v17 = vpop.f32.mrf.mxu1  ;;  %v7622_v18 = vpop.f32.mrf.mxu0 }
 0x27c   : > { %v2382_v19 = vpack.c.bf16 %v2305_v12, %v2304_v11  ;;  %v2110_v25 = vadd.f32 %v9034_v4, %v2109_v17  ;;  %v2664_v40 = vadd.f32 %v7622_v18, %v9123_v21  ;;  %v2310_v48 = vmax.f32 %v2118_v29, 0.0 }
 0x27d   : > { %v7590_v22 = vpop.f32.mrf.mxu1  ;;  %v2655_v23 = vpop.f32.mrf.mxu0 }
 0x27e   : > { %v2121_v26 = vadd.f32 %v9034_v4, %v7590_v22  ;;  %v2656_v27 = vadd.f32 %v9123_v21, %v2655_v23  ;;  %7719 = vmatprep.mubr.msk.bf16.mxu0 %vm1466_vm1, %v2382_v19  ;;  %v2308_v39 = vmax.f32 %v2110_v25, 0.0  ;;  %v3528_v25 = vpack.c.bf16 %v6705_v15, %v6704_v14  ;;  %v6711_v15 = vld [vmem:[%s8379_s20 + $0x6f8] sm:$0xff] }
 0x27f   : > { %v2112_v30 = vpop.f32.mrf.mxu1  ;;  %v7625_v31 = vpop.f32.mrf.mxu0  ;;  %7720 = vmatmul.mubr.msk.bf16.gmra.mxu0 %vm1466_vm1, %v2383_v20 }
 0x280   : > { %v3163_v33 = vmax.f32 %v2653_v28, %v2656_v27  ;;  %v2113_v34 = vadd.f32 %v9034_v4, %v2112_v30  ;;  %v2311_v35 = vmax.f32 %v2121_v26, 0.0  ;;  %v2677_v2 = vadd.f32 %v7625_v31, %v9123_v21 }
 0x281   : > { %v7593_v36 = vpop.f32.mrf.mxu1  ;;  %v2668_v37 = vpop.f32.mrf.mxu0  ;;  %7826 = vmatmul.mubr.msk.bf16.gmra.mxu1 %vm506_vm0, %v3523_v0  ;;  %v3527_v28 = vpack.c.bf16 %v6703_v13, %v6702_v53 }
 0x282   : > { %v3164_v41 = vmax.f32 %v3163_v33, %v2661_v32  ;;  %v2309_v43 = vmax.f32 %v2113_v34, 0.0  ;;  %7829 = vmatprep.mubr.msk.bf16.mxu1 %vm506_vm0, %v3524_v24  ;;  %v2669_v51 = vadd.f32 %v9123_v21, %v2668_v37  ;;  %v2385_v54 = vpack.c.bf16 %v2311_v35, %v2310_v48  ;;  %v6708_v48 = vld [vmem:[%s8379_s20 + $0x6e0] sm:$0xff] }
 0x283   : > { %v2125_v44 = vpop.f32.mrf.mxu1  ;;  %v7626_v49 = vpop.f32.mrf.mxu0  ;;  %v2134_v62 = vadd.f32 %v9034_v4, %v7593_v36 }
 0x284   : > { %v2384_v50 = vpack.c.bf16 %v2309_v43, %v2308_v39  ;;  %v3165_v52 = vmax.f32 %v3164_v41, %v2664_v40  ;;  %v2126_v59 = vadd.f32 %v9034_v4, %v2125_v44  ;;  %v2680_v10 = vadd.f32 %v7626_v49, %v9123_v21  ;;  %v6706_v40 = vld [vmem:[%s8379_s20 + $0x6d0] sm:$0xff]  ;;  %v6709_v44 = vld [vmem:[%s8379_s20 + $0x6e8] sm:$0xff] }
 0x285   : > { %v7594_v55 = vpop.f32.mrf.mxu1  ;;  %v2671_v56 = vpop.f32.mrf.mxu0  ;;  %v2314_v16 = vmax.f32 %v2134_v62, 0.0 }
 0x286   : > { %v3166_v42 = vmax.f32 %v3165_v52, %v2669_v51  ;;  %v2137_v60 = vadd.f32 %v9034_v4, %v7594_v55  ;;  %v2672_v61 = vadd.f32 %v9123_v21, %v2671_v56  ;;  %7723 = vmatprep.mubr.msk.bf16.mxu0 %vm1466_vm1, %v2384_v50  ;;  %v2312_v9 = vmax.f32 %v2126_v59, 0.0 }
 0x287   : > { %v2128_v63 = vpop.f32.mrf.mxu1  ;;  %v7629_v1 = vpop.f32.mrf.mxu0  ;;  %7724 = vmatmul.mubr.msk.bf16.gmra.mxu0 %vm1466_vm1, %v2385_v54  ;;  %v3530_v59 = vpack.c.bf16 %v6709_v44, %v6708_v48  ;;  %v6715_v48 = vld [vmem:[%s8379_s20 + $0x718] sm:$0xff] }
 0x288   : > { %v3167_v3 = vmax.f32 %v3166_v42, %v2672_v61  ;;  %v2129_v5 = vadd.f32 %v9034_v4, %v2128_v63  ;;  %v2315_v6 = vmax.f32 %v2137_v60, 0.0  ;;  %v2693_v34 = vadd.f32 %v7629_v1, %v9123_v21 }
 0x289   : > { %v7597_v7 = vpop.f32.mrf.mxu1  ;;  %v2684_v8 = vpop.f32.mrf.mxu0  ;;  %7830 = vmatmul.mubr.msk.bf16.gmra.mxu1 %vm506_vm0, %v3525_v57  ;;  %v3529_v42 = vpack.c.bf16 %v6707_v47, %v6706_v40  ;;  %v6714_v47 = vld [vmem:[%s8379_s20 + $0x710] sm:$0xff] }
 0x28a   : > { %v3168_v11 = vmax.f32 %v3167_v3, %v2677_v2  ;;  %v2313_v12 = vmax.f32 %v2129_v5, 0.0  ;;  %7833 = vmatprep.mubr.msk.bf16.mxu1 %vm506_vm0, %v3526_v58  ;;  %v2685_v20 = vadd.f32 %v9123_v21, %v2684_v8  ;;  %v2387_v23 = vpack.c.bf16 %v2315_v6, %v2314_v16  ;;  %v6712_v16 = vld [vmem:[%s8379_s20 + $0x700] sm:$0xff] }
 0x28b   : > { %v2141_v17 = vpop.f32.mrf.mxu1  ;;  %v7630_v18 = vpop.f32.mrf.mxu0  ;;  %v2150_v31 = vadd.f32 %v9034_v4, %v7597_v7 }
 0x28c   : > { %v2386_v19 = vpack.c.bf16 %v2313_v12, %v2312_v9  ;;  %v3169_v22 = vmax.f32 %v3168_v11, %v2680_v10  ;;  %v2142_v27 = vadd.f32 %v9034_v4, %v2141_v17  ;;  %v2696_v43 = vadd.f32 %v7630_v18, %v9123_v21  ;;  %v6710_v10 = vld [vmem:[%s8379_s20 + $0x6f0] sm:$0xff]  ;;  %v6713_v17 = vld [vmem:[%s8379_s20 + $0x708] sm:$0xff] }
 0x28d   : > { %v7598_v0 = vpop.f32.mrf.mxu1  ;;  %v2687_v24 = vpop.f32.mrf.mxu0  ;;  %v2318_v49 = vmax.f32 %v2150_v31, 0.0 }
 0x28e   : > { %v3170_v26 = vmax.f32 %v3169_v22, %v2685_v20  ;;  %v2153_v29 = vadd.f32 %v9034_v4, %v7598_v0  ;;  %v2688_v30 = vadd.f32 %v9123_v21, %v2687_v24  ;;  %7727 = vmatprep.mubr.msk.bf16.mxu0 %vm1466_vm1, %v2386_v19  ;;  %v2316_v41 = vmax.f32 %v2142_v27, 0.0 }
 0x28f   : > { %v2144_v32 = vpop.f32.mrf.mxu1  ;;  %v7633_v33 = vpop.f32.mrf.mxu0  ;;  %7728 = vmatmul.mubr.msk.bf16.gmra.mxu0 %vm1466_vm1, %v2387_v23 }
 0x290   : > { %v3171_v35 = vmax.f32 %v3170_v26, %v2688_v30  ;;  %v2145_v36 = vadd.f32 %v9034_v4, %v2144_v32  ;;  %v2319_v37 = vmax.f32 %v2153_v29, 0.0  ;;  %v2709_v5 = vadd.f32 %v7633_v33, %v9123_v21 }
 0x291   : > { %v7601_v38 = vpop.f32.mrf.mxu1  ;;  %v2700_v39 = vpop.f32.mrf.mxu0  ;;  %7834 = vmatmul.mubr.msk.bf16.gmra.mxu1 %vm506_vm0, %v3527_v28  ;;  %v3532_v26 = vpack.c.bf16 %v6713_v17, %v6712_v16 }
 0x292   : > { %v3172_v45 = vmax.f32 %v3171_v35, %v2693_v34  ;;  %v2317_v46 = vmax.f32 %v2145_v36, 0.0  ;;  %7837 = vmatprep.mubr.msk.bf16.mxu1 %vm506_vm0, %v3528_v25  ;;  %v2701_v54 = vadd.f32 %v9123_v21, %v2700_v39  ;;  %v2389_v56 = vpack.c.bf16 %v2319_v37, %v2318_v49 }
 0x293   : > { %v2157_v50 = vpop.f32.mrf.mxu1  ;;  %v7634_v51 = vpop.f32.mrf.mxu0  ;;  %v2166_v1 = vadd.f32 %v9034_v4, %v7601_v38  ;;  %v3531_v25 = vpack.c.bf16 %v6711_v15, %v6710_v10 }
 0x294   : > { %v2388_v52 = vpack.c.bf16 %v2317_v46, %v2316_v41  ;;  %v3173_v55 = vmax.f32 %v3172_v45, %v2696_v43  ;;  %v2158_v61 = vadd.f32 %v9034_v4, %v2157_v50  ;;  %v2712_v12 = vadd.f32 %v7634_v51, %v9123_v21  ;;  %v6716_v51 = vld [vmem:[%s8379_s20 + $0x720] sm:$0xff] }
 0x295   : > { %v7602_v57 = vpop.f32.mrf.mxu1  ;;  %v2703_v58 = vpop.f32.mrf.mxu0  ;;  %v2322_v18 = vmax.f32 %v2166_v1, 0.0 }
 0x296   : > { %v3174_v60 = vmax.f32 %v3173_v55, %v2701_v54  ;;  %v2169_v62 = vadd.f32 %v9034_v4, %v7602_v57  ;;  %v2704_v63 = vadd.f32 %v9123_v21, %v2703_v58  ;;  %7731 = vmatprep.mubr.msk.bf16.mxu0 %vm1466_vm1, %v2388_v52  ;;  %v2320_v11 = vmax.f32 %v2158_v61, 0.0  ;;  %v6717_v52 = vld [vmem:[%s8379_s20 + $0x728] sm:$0xff] }
 0x297   : > { %v2160_v2 = vpop.f32.mrf.mxu1  ;;  %v7637_v3 = vpop.f32.mrf.mxu0  ;;  %7732 = vmatmul.mubr.msk.bf16.gmra.mxu0 %vm1466_vm1, %v2389_v56 }
 0x298   : > { %v3175_v6 = vmax.f32 %v3174_v60, %v2704_v63  ;;  %v2161_v7 = vadd.f32 %v9034_v4, %v2160_v2  ;;  %v2323_v8 = vmax.f32 %v2169_v62, 0.0  ;;  %v2725_v35 = vadd.f32 %v7637_v3, %v9123_v21 }
 0x299   : > { %v7605_v53 = vpop.f32.mrf.mxu1  ;;  %v2716_v9 = vpop.f32.mrf.mxu0  ;;  %7838 = vmatmul.mubr.msk.bf16.gmra.mxu1 %vm506_vm0, %v3529_v42  ;;  %v3534_v63 = vpack.c.bf16 %v6717_v52, %v6716_v51 }
 0x29a   : > { %v3176_v13 = vmax.f32 %v3175_v6, %v2709_v5  ;;  %v2321_v14 = vmax.f32 %v2161_v7, 0.0  ;;  %7841 = vmatprep.mubr.msk.bf16.mxu1 %vm506_vm0, %v3530_v59  ;;  %v2391_v0 = vpack.c.bf16 %v2323_v8, %v2322_v18  ;;  %v2717_v27 = vadd.f32 %v9123_v21, %v2716_v9 }
 0x29b   : > { %v2173_v19 = vpop.f32.mrf.mxu1  ;;  %v7638_v20 = vpop.f32.mrf.mxu0  ;;  %v2182_v32 = vadd.f32 %v9034_v4, %v7605_v53  ;;  %v3533_v59 = vpack.c.bf16 %v6715_v48, %v6714_v47  ;;  %v6723_v47 = vld [vmem:[%s8379_s20 + $0x758] sm:$0xff] }
 0x29c   : > { %v9189_v22 = vmax.f32 %v3176_v13, %v2712_v12  ;;  %v2390_v23 = vpack.c.bf16 %v2321_v14, %v2320_v11  ;;  %v2174_v29 = vadd.f32 %v9034_v4, %v2173_v19  ;;  %v2728_v43 = vadd.f32 %v7638_v20, %v9123_v21  ;;  %v6718_v13 = vld [vmem:[%s8379_s20 + $0x730] sm:$0xff]  ;;  %v6719_v14 = vld [vmem:[%s8379_s20 + $0x738] sm:$0xff]  ;;  %v6720_v19 = vld [vmem:[%s8379_s20 + $0x740] sm:$0xff] }
 0x29d   : > { %v7606_v24 = vpop.f32.mrf.mxu1  ;;  %v2719_v28 = vpop.f32.mrf.mxu0  ;;  %v2326_v44 = vmax.f32 %v2182_v32, 0.0  ;;  %v6721_v20 = vld [vmem:[%s8379_s20 + $0x748] sm:$0xff] }
 0x29e   : > { %v2185_v30 = vadd.f32 %v9034_v4, %v7606_v24  ;;  %v2720_v31 = vadd.f32 %v9123_v21, %v2719_v28  ;;  %7735 = vmatprep.mubr.msk.bf16.mxu0 %vm1466_vm1, %v2390_v23  ;;  %v2324_v41 = vmax.f32 %v2174_v29, 0.0  ;;  %v9227_v29 = vld [vmem:[%s10010_s2] ss:$0 sm:$0xff] }
 0x29f   : > { %v2176_v33 = vpop.f32.mrf.mxu1  ;;  %v7641_v34 = vpop.f32.mrf.mxu0  ;;  %7736 = vmatmul.mubr.msk.bf16.gmra.mxu0 %vm1466_vm1, %v2391_v0 }
 0x2a0   : > { %v3184_v36 = vmax.f32 %v2717_v27, %v2720_v31  ;;  %v2177_v37 = vadd.f32 %v9034_v4, %v2176_v33  ;;  %v2327_v38 = vmax.f32 %v2185_v30, 0.0  ;;  %v2741_v7 = vadd.f32 %v7641_v34, %v9123_v21 }
 0x2a1   : > { %v7609_v39 = vpop.f32.mrf.mxu1  ;;  %v2732_v40 = vpop.f32.mrf.mxu0  ;;  %7842 = vmatmul.mubr.msk.bf16.gmra.mxu1 %vm506_vm0, %v3531_v25  ;;  %v3535_v27 = vpack.c.bf16 %v6719_v14, %v6718_v13  ;;  %v3536_v33 = vpack.c.bf16 %v6721_v20, %v6720_v19  ;;  %v6728_v19 = vld [vmem:[%s8379_s20 + $0x780] sm:$0xff]  ;;  %v6729_v20 = vld [vmem:[%s8379_s20 + $0x788] sm:$0xff] }
 0x2a2   : > { %v3185_v45 = vmax.f32 %v3184_v36, %v2725_v35  ;;  %v2325_v46 = vmax.f32 %v2177_v37, 0.0  ;;  %7845 = vmatprep.mubr.msk.bf16.mxu1 %vm506_vm0, %v3532_v26  ;;  %v2733_v55 = vadd.f32 %v9123_v21, %v2732_v40  ;;  %v2393_v57 = vpack.c.bf16 %v2327_v38, %v2326_v44 }
 0x2a3   : > { %v2189_v49 = vpop.f32.mrf.mxu1  ;;  %v7642_v50 = vpop.f32.mrf.mxu0  ;;  %v2198_v1 = vadd.f32 %v9034_v4, %v7609_v39 }
 0x2a4   : > { %v2392_v54 = vpack.c.bf16 %v2325_v46, %v2324_v41  ;;  %v3186_v56 = vmax.f32 %v3185_v45, %v2728_v43  ;;  %v2190_v61 = vadd.f32 %v9034_v4, %v2189_v49  ;;  %v2744_v16 = vadd.f32 %v7642_v50, %v9123_v21  ;;  %v6722_v46 = vld [vmem:[%s8379_s20 + $0x750] sm:$0xff] }
 0x2a5   : > { %v7610_v58 = vpop.f32.mrf.mxu1  ;;  %v2735_v42 = vpop.f32.mrf.mxu0  ;;  %v2330_v15 = vmax.f32 %v2198_v1, 0.0 }
 0x2a6   : > { %v3187_v60 = vmax.f32 %v3186_v56, %v2733_v55  ;;  %v2201_v62 = vadd.f32 %v9034_v4, %v7610_v58  ;;  %7739 = vmatprep.mubr.msk.bf16.mxu0 %vm1466_vm1, %v2392_v54  ;;  %v2736_v2 = vadd.f32 %v9123_v21, %v2735_v42  ;;  %v2328_v11 = vmax.f32 %v2190_v61, 0.0  ;;  %v6724_v55 = vld [vmem:[%s8379_s20 + $0x760] sm:$0xff]  ;;  %v6725_v56 = vld [vmem:[%s8379_s20 + $0x768] sm:$0xff] }
 0x2a7   : > { %v2192_v3 = vpop.f32.mrf.mxu1  ;;  %v7645_v5 = vpop.f32.mrf.mxu0  ;;  %7740 = vmatmul.mubr.msk.bf16.gmra.mxu0 %vm1466_vm1, %v2393_v57  ;;  %v3537_v58 = vpack.c.bf16 %v6723_v47, %v6722_v46  ;;  %v3178_v42 = vrot.slane %v9189_v22, 4 }
 0x2a8   : > { %v2193_v6 = vadd.f32 %v9034_v4, %v2192_v3  ;;  %v2331_v8 = vmax.f32 %v2201_v62, 0.0  ;;  %v3188_v53 = vmax.f32 %v3187_v60, %v2736_v2  ;;  %v2757_v39 = vadd.f32 %v7645_v5, %v9123_v21 }
 0x2a9   : > { %v2748_v9 = vpop.f32.mrf.mxu0  ;;  %v7751_v10 = vpop.f32.mrf.mxu1  ;;  %7846 = vmatmul.mubr.msk.bf16.gmra.mxu1 %vm506_vm0, %v3533_v59  ;;  %v3538_v5 = vpack.c.bf16 %v6725_v56, %v6724_v55 }
 0x2aa   : > { %v2329_v12 = vmax.f32 %v2193_v6, 0.0  ;;  %7849 = vmatprep.mubr.msk.bf16.mxu1 %vm506_vm0, %v3534_v63  ;;  %v3189_v4 = vmax.f32 %v3188_v53, %v2741_v7  ;;  %v2395_v0 = vpack.c.bf16 %v2331_v8, %v2330_v15  ;;  %v2749_v24 = vadd.f32 %v9123_v21, %v2748_v9 }
 0x2ab   : > { %v7646_v17 = vpop.f32.mrf.mxu0  ;;  %v3774_v18 = vpop.f32.mrf.mxu1  ;;  %v3783_v35 = vadd.f32 %v9227_v29, %v7751_v10  ;;  %v3179_v10 = vmax.f32 %v9189_v22, %v3178_v42  ;;  %v6732_v42 = vld [vmem:[%s8379_s20 + $0x7a0] sm:$0xff] }
 0x2ac   : > { %v2394_v23 = vpack.c.bf16 %v2329_v12, %v2328_v11  ;;  %v3190_v28 = vmax.f32 %v3189_v4, %v2744_v16  ;;  %v3775_v30 = vadd.f32 %v9227_v29, %v3774_v18  ;;  %v2760_v50 = vadd.f32 %v7646_v17, %v9123_v21  ;;  %v6726_v16 = vld [vmem:[%s8379_s20 + $0x770] sm:$0xff]  ;;  %v6727_v4 = vld [vmem:[%s8379_s20 + $0x778] sm:$0xff] }
 0x2ad   : > { %v2751_v25 = vpop.f32.mrf.mxu0  ;;  %v7752_v26 = vpop.f32.mrf.mxu1  ;;  %v4287_v49 = vmax.f32 %v3783_v35, 0.0 }
 0x2ae   : > { %v2752_v31 = vadd.f32 %v9123_v21, %v2751_v25  ;;  %v3786_v32 = vadd.f32 %v9227_v29, %v7752_v26  ;;  %7743 = vmatprep.mubr.msk.bf16.mxu0 %vm1466_vm1, %v2394_v23  ;;  %v3191_v34 = vmax.f32 %v3190_v28, %v2749_v24  ;;  %v4285_v48 = vmax.f32 %v3775_v30, 0.0 }
 0x2af   : > { %v7649_v36 = vpop.f32.mrf.mxu0  ;;  %7744 = vmatmul.mubr.msk.bf16.gmra.mxu0 %vm1466_vm1, %v2395_v0  ;;  %v3777_v37 = vpop.f32.mrf.mxu1  ;;  %v3539_v26 = vpack.c.bf16 %v6727_v4, %v6726_v16 }
 0x2b0   : > { %v3778_v38 = vadd.f32 %v9227_v29, %v3777_v37  ;;  %v3192_v40 = vmax.f32 %v3191_v34, %v2752_v31  ;;  %v4288_v41 = vmax.f32 %v3786_v32, 0.0  ;;  %v2773_v11 = vadd.f32 %v7649_v36, %v9123_v21 }
 0x2b1   : > { %v2764_v43 = vpop.f32.mrf.mxu0  ;;  %v7755_v45 = vpop.f32.mrf.mxu1  ;;  %7850 = vmatmul.mubr.msk.bf16.gmra.mxu1 %vm506_vm0, %v3535_v27  ;;  %v3180_v27 = vrot.slane %v3179_v10, 2  ;;  %v3540_v34 = vpack.c.bf16 %v6729_v20, %v6728_v19 }
 0x2b2   : > { %v4286_v44 = vmax.f32 %v3778_v38, 0.0  ;;  %7853 = vmatprep.mubr.msk.bf16.mxu1 %vm506_vm0, %v3536_v33  ;;  %v3193_v51 = vmax.f32 %v3192_v40, %v2757_v39  ;;  %v4414_v59 = vpack.c.bf16 %v4288_v41, %v4287_v49  ;;  %v2765_v60 = vadd.f32 %v9123_v21, %v2764_v43 }
 0x2b3   : > { %v7650_v52 = vpop.f32.mrf.mxu0  ;;  %v3790_v54 = vpop.f32.mrf.mxu1  ;;  %v3799_v7 = vadd.f32 %v9227_v29, %v7755_v45 }
 0x2b4   : > { %v4413_v57 = vpack.c.bf16 %v4286_v44, %v4285_v48  ;;  %v3194_v61 = vmax.f32 %v3193_v51, %v2760_v50  ;;  %v3791_v1 = vadd.f32 %v9227_v29, %v3790_v54  ;;  %v2776_v0 = vadd.f32 %v7650_v52, %v9123_v21  ;;  %v6730_v52 = vld [vmem:[%s8379_s20 + $0x790] sm:$0xff]  ;;  %v6731_v54 = vld [vmem:[%s8379_s20 + $0x798] sm:$0xff] }
 0x2b5   : > { %v2767_v62 = vpop.f32.mrf.mxu0  ;;  %v7756_v63 = vpop.f32.mrf.mxu1  ;;  %v4291_v23 = vmax.f32 %v3799_v7, 0.0  ;;  %v3181_v48 = vmax.f32 %v3179_v10, %v3180_v27 }
 0x2b6   : > { %v2768_v2 = vadd.f32 %v9123_v21, %v2767_v62  ;;  %v3802_v3 = vadd.f32 %v9227_v29, %v7756_v63  ;;  %7885 = vmatprep.mubr.msk.bf16.mxu0 %vm1466_vm1, %v4413_v57  ;;  %v3195_v6 = vmax.f32 %v3194_v61, %v2765_v60  ;;  %v4289_v17 = vmax.f32 %v3791_v1, 0.0 }
 0x2b7   : > { %v7653_v8 = vpop.f32.mrf.mxu0  ;;  %v3793_v53 = vpop.f32.mrf.mxu1  ;;  %7886 = vmatmul.mubr.msk.bf16.vlgmr.msra.gmra.mxu0 %vm1466_vm1, %v4414_v59  ;;  %v6733_v59 = vld [vmem:[%s8379_s20 + $0x7a8] sm:$0xff] }
 0x2b8   : > { %v3794_v9 = vadd.f32 %v9227_v29, %v3793_v53  ;;  %v3196_v12 = vmax.f32 %v3195_v6, %v2768_v2  ;;  %v4292_v13 = vmax.f32 %v3802_v3, 0.0  ;;  %v2789_v45 = vadd.f32 %v7653_v8, %v9123_v21 }
 0x2b9   : > { %v2780_v14 = vpop.f32.mrf.mxu0  ;;  %v7759_v15 = vpop.f32.mrf.mxu1  ;;  %7854 = vmatmul.mubr.msk.bf16.gmra.mxu1 %vm506_vm0, %v3537_v58  ;;  %v3182_v6 = vrot.slane %v3181_v48, 1  ;;  %v3542_v10 = vpack.c.bf16 %v6733_v59, %v6732_v42 }
 0x2ba   : > { %v4290_v18 = vmax.f32 %v3794_v9, 0.0  ;;  %7857 = vmatprep.mubr.msk.bf16.mxu1 %vm506_vm0, %v3538_v5  ;;  %v3197_v22 = vmax.f32 %v3196_v12, %v2773_v11  ;;  %v4416_v31 = vpack.c.bf16 %v4292_v13, %v4291_v23  ;;  %v2781_v35 = vadd.f32 %v9123_v21, %v2780_v14 }
 0x2bb   : > { %v7654_v24 = vpop.f32.mrf.mxu0  ;;  %v3806_v28 = vpop.f32.mrf.mxu1  ;;  %v3815_v40 = vadd.f32 %v9227_v29, %v7759_v15  ;;  %v3541_v5 = vpack.c.bf16 %v6731_v54, %v6730_v52  ;;  %v3183_v23 = vmax.f32 %v3181_v48, %v3182_v6  ;;  %v6741_v6 = vld [vmem:[%s8379_s20 + $0x7e8] sm:$0xff] }
 0x2bc   : > { %v4415_v25 = vpack.c.bf16 %v4290_v18, %v4289_v17  ;;  %v3198_v30 = vmax.f32 %v3197_v22, %v2776_v0  ;;  %v3807_v36 = vadd.f32 %v9227_v29, %v3806_v28  ;;  %v2792_v55 = vadd.f32 %v7654_v24, %v9123_v21 }
 0x2bd   : > { %v2783_v32 = vpop.f32.mrf.mxu0  ;;  %v7760_v33 = vpop.f32.mrf.mxu1  ;;  %v4295_v61 = vmax.f32 %v3815_v40, 0.0 }
 0x2be   : > { %v2784_v37 = vadd.f32 %v9123_v21, %v2783_v32  ;;  %v3818_v38 = vadd.f32 %v9227_v29, %v7760_v33  ;;  %7889 = vmatprep.mubr.msk.bf16.mxu0 %vm1466_vm1, %v4415_v25  ;;  %v3199_v39 = vrot.slane %v3198_v30, 4  ;;  %v4293_v56 = vmax.f32 %v3807_v36, 0.0  ;;  %v6734_v25 = vld [vmem:[%s8379_s20 + $0x7b0] sm:$0xff]  ;;  %v6735_v32 = vld [vmem:[%s8379_s20 + $0x7b8] sm:$0xff]  ;;  %v6736_v33 = vld [vmem:[%s8379_s20 + $0x7c0] sm:$0xff] }
 0x2bf   : > { %v7657_v41 = vpop.f32.mrf.mxu0  ;;  %v3809_v43 = vpop.f32.mrf.mxu1  ;;  %7890 = vmatmul.mubr.msk.bf16.gmra.mxu0 %vm1466_vm1, %v4416_v31 }
 0x2c0   : > { %v3205_v46 = vmax.f32 %v2781_v35, %v2784_v37  ;;  %v3810_v47 = vadd.f32 %v9227_v29, %v3809_v43  ;;  %v3200_v44 = vmax.f32 %v3198_v30, %v3199_v39  ;;  %v4296_v49 = vmax.f32 %v3818_v38, 0.0 }
 0x2c1   : > { %v2796_v50 = vpop.f32.mrf.mxu0  ;;  %v7763_v51 = vpop.f32.mrf.mxu1  ;;  %7858 = vmatmul.mubr.msk.bf16.gmra.mxu1 %vm506_vm0, %v3539_v26  ;;  %v2805_v18 = vadd.f32 %v7657_v41, %v9123_v21 }
 0x2c2   : > { %v3206_v57 = vmax.f32 %v3205_v46, %v2789_v45  ;;  %v4294_v58 = vmax.f32 %v3810_v47, 0.0  ;;  %7861 = vmatprep.mubr.msk.bf16.mxu1 %vm506_vm0, %v3540_v34  ;;  %v3201_v60 = vrot.slane %v3200_v44, 2  ;;  %v2797_v2 = vadd.f32 %v9123_v21, %v2796_v50  ;;  %v6737_v34 = vld [vmem:[%s8379_s20 + $0x7c8] sm:$0xff] }
 0x2c3   : > { %v7658_v62 = vpop.f32.mrf.mxu0  ;;  %v3822_v63 = vpop.f32.mrf.mxu1  ;;  %v4418_v8 = vpack.c.bf16 %v4296_v49, %v4295_v61  ;;  %v3831_v16 = vadd.f32 %v9227_v29, %v7763_v51  ;;  %v3543_v47 = vpack.c.bf16 %v6735_v32, %v6734_v25  ;;  %v3544_v48 = vpack.c.bf16 %v6737_v34, %v6736_v33  ;;  %v6738_v61 = vld [vmem:[%s8379_s20 + $0x7d0] sm:$0xff] }
 0x2c4   : > { %v4417_v1 = vpack.c.bf16 %v4294_v58, %v4293_v56  ;;  %v3207_v3 = vmax.f32 %v3206_v57, %v2792_v55  ;;  %v3202_v7 = vmax.f32 %v3200_v44, %v3201_v60  ;;  %v3823_v12 = vadd.f32 %v9227_v29, %v3822_v63  ;;  %v6742_v34 = vld [vmem:[%s8379_s20 + $0x7f0] sm:$0xff] }
 0x2c5   : > { %v2799_v53 = vpop.f32.mrf.mxu0  ;;  %v7764_v9 = vpop.f32.mrf.mxu1  ;;  %v2808_v26 = vadd.f32 %v7658_v62, %v9123_v21  ;;  %v4299_v36 = vmax.f32 %v3831_v16, 0.0 }
 0x2c6   : > { %v3208_v11 = vmax.f32 %v3207_v3, %v2797_v2  ;;  %v2800_v13 = vadd.f32 %v9123_v21, %v2799_v53  ;;  %v3834_v14 = vadd.f32 %v9227_v29, %v7764_v9  ;;  %7893 = vmatprep.mubr.msk.bf16.mxu0 %vm1466_vm1, %v4417_v1  ;;  %v3203_v15 = vrot.slane %v3202_v7, 1  ;;  %v6739_v3 = vld [vmem:[%s8379_s20 + $0x7d8] sm:$0xff] }
 0x2c7   : > { %v7661_v4 = vpop.f32.mrf.mxu0  ;;  %v3825_v17 = vpop.f32.mrf.mxu1  ;;  %7894 = vmatmul.mubr.msk.bf16.gmra.mxu0 %vm1466_vm1, %v4418_v8  ;;  %v4297_v27 = vmax.f32 %v3823_v12, 0.0 }
 0x2c8   : > { %v3209_v19 = vmax.f32 %v3208_v11, %v2800_v13  ;;  %v3826_v20 = vadd.f32 %v9227_v29, %v3825_v17  ;;  %v3204_v0 = vmax.f32 %v3202_v7, %v3203_v15  ;;  %v4300_v22 = vmax.f32 %v3834_v14, 0.0 }
 0x2c9   : > { %v2812_v24 = vpop.f32.mrf.mxu0  ;;  %v7767_v28 = vpop.f32.mrf.mxu1  ;;  %7862 = vmatmul.mubr.msk.bf16.gmra.mxu1 %vm506_vm0, %v3541_v5  ;;  %v2821_v56 = vadd.f32 %v7661_v4, %v9123_v21  ;;  %v6740_v5 = vld [vmem:[%s8379_s20 + $0x7e0] sm:$0xff]  ;;  %v3545_v15 = vpack.c.bf16 %v6739_v3, %v6738_v61 }
 0x2ca   : > { %v3210_v30 = vmax.f32 %v3209_v19, %v2805_v18  ;;  %v4298_v31 = vmax.f32 %v3826_v20, 0.0  ;;  %7865 = vmatprep.mubr.msk.bf16.mxu1 %vm506_vm0, %v3542_v10  ;;  %v9295_v35 = vsel %vm3339_vm2, %v3204_v0, %v3183_v23  ;;  %v2813_v40 = vadd.f32 %v9123_v21, %v2812_v24 }
 0x2cb   : > { %v7662_v37 = vpop.f32.mrf.mxu0  ;;  %v3838_v38 = vpop.f32.mrf.mxu1  ;;  %v4420_v43 = vpack.c.bf16 %v4300_v22, %v4299_v36  ;;  %v3847_v52 = vadd.f32 %v9227_v29, %v7767_v28  ;;  %v3546_v16 = vpack.c.bf16 %v6741_v6, %v6740_v5  ;;  %v6743_v36 = vld [vmem:[%s8379_s20 + $0x7f8] sm:$0xff] }
 0x2cc   : > { %v4419_v39 = vpack.c.bf16 %v4298_v31, %v4297_v27  ;;  %v3211_v41 = vmax.f32 %v3210_v30, %v2808_v26  ;;  %v3839_v49 = vadd.f32 %v9227_v29, %v3838_v38  ;;  %v2824_v62 = vadd.f32 %v7662_v37, %v9123_v21 }
 0x2cd   : > { %v2815_v45 = vpop.f32.mrf.mxu0  ;;  %v7768_v46 = vpop.f32.mrf.mxu1  ;;  %v4303_v7 = vmax.f32 %v3847_v52, 0.0 }
 0x2ce   : > { %v3212_v44 = vmax.f32 %v3211_v41, %v2813_v40  ;;  %v2816_v50 = vadd.f32 %v9123_v21, %v2815_v45  ;;  %v3850_v51 = vadd.f32 %v9227_v29, %v7768_v46  ;;  %7897 = vmatprep.mubr.msk.bf16.mxu0 %vm1466_vm1, %v4419_v39  ;;  %v4301_v63 = vmax.f32 %v3839_v49, 0.0 }
 0x2cf   : > { %v7665_v54 = vpop.f32.mrf.mxu0  ;;  %v3841_v55 = vpop.f32.mrf.mxu1  ;;  %7898 = vmatmul.mubr.msk.bf16.gmra.mxu0 %vm1466_vm1, %v4420_v43 }
 0x2d0   : > { %v3213_v57 = vmax.f32 %v3212_v44, %v2816_v50  ;;  %v3842_v58 = vadd.f32 %v9227_v29, %v3841_v55  ;;  %v4304_v42 = vmax.f32 %v3850_v51, 0.0  ;;  %v2837_v22 = vadd.f32 %v7665_v54, %v9123_v21 }
 0x2d1   : > { %v2828_v59 = vpop.f32.mrf.mxu0  ;;  %v7771_v60 = vpop.f32.mrf.mxu1  ;;  %7866 = vmatmul.mubr.msk.bf16.gmra.mxu1 %vm506_vm0, %v3543_v47  ;;  %v3547_v47 = vpack.c.bf16 %v6743_v36, %v6742_v34 }
 0x2d2   : > { %v3214_v1 = vmax.f32 %v3213_v57, %v2821_v56  ;;  %v4302_v2 = vmax.f32 %v3842_v58, 0.0  ;;  %7869 = vmatprep.mubr.msk.bf16.mxu1 %vm506_vm0, %v3544_v48  ;;  %v2829_v10 = vadd.f32 %v9123_v21, %v2828_v59  ;;  %v4422_v12 = vpack.c.bf16 %v4304_v42, %v4303_v7 }
 0x2d3   : > { %v7666_v8 = vpop.f32.mrf.mxu0  ;;  %v3854_v53 = vpop.f32.mrf.mxu1  ;;  %v3863_v20 = vadd.f32 %v9227_v29, %v7771_v60 }
 0x2d4   : > { %v4421_v9 = vpack.c.bf16 %v4302_v2, %v4301_v63  ;;  %v3215_v11 = vmax.f32 %v3214_v1, %v2824_v62  ;;  %v3855_v17 = vadd.f32 %v9227_v29, %v3854_v53  ;;  %v2840_v30 = vadd.f32 %v7666_v8, %v9123_v21 }
 0x2d5   : > { %v2831_v13 = vpop.f32.mrf.mxu0  ;;  %v7772_v14 = vpop.f32.mrf.mxu1  ;;  %v4307_v37 = vmax.f32 %v3863_v20, 0.0 }
 0x2d6   : > { %v3216_v4 = vmax.f32 %v3215_v11, %v2829_v10  ;;  %v2832_v18 = vadd.f32 %v9123_v21, %v2831_v13  ;;  %v3866_v19 = vadd.f32 %v9227_v29, %v7772_v14  ;;  %7901 = vmatprep.mubr.msk.bf16.mxu0 %vm1466_vm1, %v4421_v9  ;;  %v4305_v31 = vmax.f32 %v3855_v17, 0.0 }
 0x2d7   : > { %v7669_v23 = vpop.f32.mrf.mxu0  ;;  %v3857_v0 = vpop.f32.mrf.mxu1  ;;  %7902 = vmatmul.mubr.msk.bf16.gmra.mxu0 %vm1466_vm1, %v4422_v12 }
 0x2d8   : > { %v3217_v24 = vmax.f32 %v3216_v4, %v2832_v18  ;;  %v3858_v28 = vadd.f32 %v9227_v29, %v3857_v0  ;;  %v4308_v25 = vmax.f32 %v3866_v19, 0.0  ;;  %v2853_v57 = vadd.f32 %v7669_v23, %v9123_v21 }
 0x2d9   : > { %v2844_v26 = vpop.f32.mrf.mxu0  ;;  %v7775_v27 = vpop.f32.mrf.mxu1  ;;  %7870 = vmatmul.mubr.msk.bf16.gmra.mxu1 %vm506_vm0, %v3545_v15 }
 0x2da   : > { %v3218_v32 = vmax.f32 %v3217_v24, %v2837_v22  ;;  %v4306_v33 = vmax.f32 %v3858_v28, 0.0  ;;  %7873 = vmatprep.mubr.msk.bf16.mxu1 %vm506_vm0, %v3546_v16  ;;  %v4424_v43 = vpack.c.bf16 %v4308_v25, %v4307_v37  ;;  %v2845_v44 = vadd.f32 %v9123_v21, %v2844_v26 }
 0x2db   : > { %v7670_v38 = vpop.f32.mrf.mxu0  ;;  %v3870_v39 = vpop.f32.mrf.mxu1  ;;  %v3879_v51 = vadd.f32 %v9227_v29, %v7775_v27 }
 0x2dc   : > { %v3219_v40 = vmax.f32 %v3218_v32, %v2840_v30  ;;  %v4423_v41 = vpack.c.bf16 %v4306_v33, %v4305_v31  ;;  %v3871_v52 = vadd.f32 %v9227_v29, %v3870_v39  ;;  %v2856_v63 = vadd.f32 %v7670_v38, %v9123_v21 }
 0x2dd   : > { %v2847_v45 = vpop.f32.mrf.mxu0  ;;  %v7776_v46 = vpop.f32.mrf.mxu1  ;;  %v4311_v2 = vmax.f32 %v3879_v51, 0.0 }
 0x2de   : > { %v3220_v48 = vrot.slane %v3219_v40, 4  ;;  %v2848_v49 = vadd.f32 %v9123_v21, %v2847_v45  ;;  %v3882_v50 = vadd.f32 %v9227_v29, %v7776_v46  ;;  %7905 = vmatprep.mubr.msk.bf16.mxu0 %vm1466_vm1, %v4423_v41  ;;  %v4309_v3 = vmax.f32 %v3871_v52, 0.0 }
 0x2df   : > { %v7673_v54 = vpop.f32.mrf.mxu0  ;;  %v3873_v55 = vpop.f32.mrf.mxu1  ;;  %7906 = vmatmul.mubr.msk.bf16.gmra.mxu0 %vm1466_vm1, %v4424_v43 }
 0x2e0   : > { %v3221_v56 = vmax.f32 %v3219_v40, %v3220_v48  ;;  %v3226_v58 = vmax.f32 %v2845_v44, %v2848_v49  ;;  %v4312_v42 = vmax.f32 %v3882_v50, 0.0  ;;  %v3874_v59 = vadd.f32 %v9227_v29, %v3873_v55 }
 0x2e1   : > { %v2860_v60 = vpop.f32.mrf.mxu0  ;;  %v7779_v61 = vpop.f32.mrf.mxu1  ;;  %7874 = vmatmul.mubr.msk.bf16.gmra.mxu1 %vm506_vm0, %v3547_v47  ;;  %v2869_v0 = vadd.f32 %v7673_v54, %v9123_v21 }
 0x2e2   : > { %v3222_v62 = vrot.slane %v3221_v56, 2  ;;  %v3227_v1 = vmax.f32 %v3226_v58, %v2853_v57  ;;  %v4310_v5 = vmax.f32 %v3874_v59, 0.0  ;;  %v2861_v53 = vadd.f32 %v9123_v21, %v2860_v60 }
 0x2e3   : > { %v7674_v6 = vpop.f32.mrf.mxu0  ;;  %v3886_v7 = vpop.f32.mrf.mxu1  ;;  %v4426_v10 = vpack.c.bf16 %v4312_v42, %v4311_v2  ;;  %v3895_v17 = vadd.f32 %v9227_v29, %v7779_v61 }
 0x2e4   : > { %v3223_v8 = vmax.f32 %v3221_v56, %v3222_v62  ;;  %v3228_v9 = vmax.f32 %v3227_v1, %v2856_v63  ;;  %v4425_v11 = vpack.c.bf16 %v4310_v5, %v4309_v3  ;;  %v3887_v16 = vadd.f32 %v9227_v29, %v3886_v7 }
 0x2e5   : > { %v2863_v12 = vpop.f32.mrf.mxu0  ;;  %v7780_v13 = vpop.f32.mrf.mxu1  ;;  %v2872_v28 = vadd.f32 %v7674_v6, %v9123_v21  ;;  %v4315_v34 = vmax.f32 %v3895_v17, 0.0 }
 0x2e6   : > { %v3224_v14 = vrot.slane %v3223_v8, 1  ;;  %v3229_v15 = vmax.f32 %v3228_v9, %v2861_v53  ;;  %v2864_v4 = vadd.f32 %v9123_v21, %v2863_v12  ;;  %v3898_v18 = vadd.f32 %v9227_v29, %v7780_v13  ;;  %7909 = vmatprep.mubr.msk.bf16.mxu0 %vm1466_vm1, %v4425_v11 }
 0x2e7   : > { %v7677_v19 = vpop.f32.mrf.mxu0  ;;  %v3889_v20 = vpop.f32.mrf.mxu1  ;;  %7910 = vmatmul.mubr.msk.bf16.gmra.mxu0 %vm1466_vm1, %v4426_v10  ;;  %v4313_v31 = vmax.f32 %v3887_v16, 0.0 }
 0x2e8   : > { %v3225_v23 = vmax.f32 %v3223_v8, %v3224_v14  ;;  %v3230_v22 = vmax.f32 %v3229_v15, %v2864_v4  ;;  %v3890_v24 = vadd.f32 %v9227_v29, %v3889_v20  ;;  %v4316_v25 = vmax.f32 %v3898_v18, 0.0 }
 0x2e9   : > { %v2876_v26 = vpop.f32.mrf.mxu0  ;;  %v7783_v27 = vpop.f32.mrf.mxu1 }
 0x2ea   : > { %v9350_v30 = vsel %vm3341_vm3, %v3225_v23, %v9295_v35  ;;  %v3231_v32 = vmax.f32 %v3230_v22, %v2869_v0  ;;  %v4314_v33 = vmax.f32 %v3890_v24, 0.0  ;;  %v2877_v39 = vadd.f32 %v9123_v21, %v2876_v26  ;;  %v9357_v35 = vld [vmem:[%s10014_s6] ss:$0 sm:$0xff] }
 0x2eb   : > { %v7678_v36 = vpop.f32.mrf.mxu0  ;;  %v3902_v37 = vpop.f32.mrf.mxu1  ;;  %v4428_v41 = vpack.c.bf16 %v4316_v25, %v4315_v34  ;;  %v3911_v21 = vadd.f32 %v9227_v29, %v7783_v27  ;;  %v2885_v51 = vadd.f32 %v9357_v35, %v7677_v19 }
 0x2ec   : > { %v4427_v38 = vpack.c.bf16 %v4314_v33, %v4313_v31  ;;  %v3232_v40 = vmax.f32 %v3231_v32, %v2872_v28  ;;  %v3903_v47 = vadd.f32 %v9227_v29, %v3902_v37  ;;  %v2888_v58 = vadd.f32 %v9357_v35, %v7678_v36 }
 0x2ed   : > { %v2879_v43 = vpop.f32.mrf.mxu0  ;;  %v7784_v45 = vpop.f32.mrf.mxu1  ;;  %v4319_v61 = vmax.f32 %v3911_v21, 0.0 }
 0x2ee   : > { %v3233_v46 = vmax.f32 %v3232_v40, %v2877_v39  ;;  %v2880_v48 = vadd.f32 %v9357_v35, %v2879_v43  ;;  %v3914_v44 = vadd.f32 %v9227_v29, %v7784_v45  ;;  %7913 = vmatprep.mubr.msk.bf16.mxu0 %vm1466_vm1, %v4427_v38  ;;  %v4317_v42 = vmax.f32 %v3903_v47, 0.0 }
 0x2ef   : > { %v7681_v49 = vpop.f32.mrf.mxu0  ;;  %v3905_v50 = vpop.f32.mrf.mxu1  ;;  %7914 = vmatmul.mubr.msk.bf16.gmra.mxu0 %vm1466_vm1, %v4428_v41 }
 0x2f0   : > { %v3234_v52 = vmax.f32 %v3233_v46, %v2880_v48  ;;  %v3906_v54 = vadd.f32 %v9227_v29, %v3905_v50  ;;  %v4320_v55 = vmax.f32 %v3914_v44, 0.0  ;;  %v2901_v14 = vadd.f32 %v9357_v35, %v7681_v49 }
 0x2f1   : > { %v2892_v56 = vpop.f32.mrf.mxu0  ;;  %v7787_v57 = vpop.f32.mrf.mxu1 }
 0x2f2   : > { %v3235_v59 = vmax.f32 %v3234_v52, %v2885_v51  ;;  %v4318_v60 = vmax.f32 %v3906_v54, 0.0  ;;  %v2893_v2 = vadd.f32 %v9357_v35, %v2892_v56  ;;  %v4430_v5 = vpack.c.bf16 %v4320_v55, %v4319_v61 }
 0x2f3   : > { %v7682_v62 = vpop.f32.mrf.mxu0  ;;  %v3918_v63 = vpop.f32.mrf.mxu1  ;;  %v3927_v11 = vadd.f32 %v9227_v29, %v7787_v57 }
 0x2f4   : > { %v4429_v1 = vpack.c.bf16 %v4318_v60, %v4317_v42  ;;  %v3236_v3 = vmax.f32 %v3235_v59, %v2888_v58  ;;  %v3919_v53 = vadd.f32 %v9227_v29, %v3918_v63  ;;  %v2904_v19 = vadd.f32 %v9357_v35, %v7682_v62 }
 0x2f5   : > { %v2895_v6 = vpop.f32.mrf.mxu0  ;;  %v7788_v7 = vpop.f32.mrf.mxu1  ;;  %v4323_v22 = vmax.f32 %v3927_v11, 0.0 }
 0x2f6   : > { %v3237_v8 = vmax.f32 %v3236_v3, %v2893_v2  ;;  %v2896_v9 = vadd.f32 %v9357_v35, %v2895_v6  ;;  %v3930_v10 = vadd.f32 %v9227_v29, %v7788_v7  ;;  %7917 = vmatprep.mubr.msk.bf16.mxu0 %vm1466_vm1, %v4429_v1  ;;  %v4321_v20 = vmax.f32 %v3919_v53, 0.0 }
 0x2f7   : > { %v7685_v12 = vpop.f32.mrf.mxu0  ;;  %v3921_v13 = vpop.f32.mrf.mxu1  ;;  %7918 = vmatmul.mubr.msk.bf16.gmra.mxu0 %vm1466_vm1, %v4430_v5 }
 0x2f8   : > { %v3238_v15 = vmax.f32 %v3237_v8, %v2896_v9  ;;  %v3922_v16 = vadd.f32 %v9227_v29, %v3921_v13  ;;  %v4324_v4 = vmax.f32 %v3930_v10, 0.0  ;;  %v2917_v45 = vadd.f32 %v9357_v35, %v7685_v12 }
 0x2f9   : > { %v2908_v17 = vpop.f32.mrf.mxu0  ;;  %v7791_v18 = vpop.f32.mrf.mxu1 }
 0x2fa   : > { %v3239_v23 = vmax.f32 %v3238_v15, %v2901_v14  ;;  %v4322_v0 = vmax.f32 %v3922_v16, 0.0  ;;  %v4432_v27 = vpack.c.bf16 %v4324_v4, %v4323_v22  ;;  %v2909_v34 = vadd.f32 %v9357_v35, %v2908_v17 }
 0x2fb   : > { %v7686_v24 = vpop.f32.mrf.mxu0  ;;  %v3934_v28 = vpop.f32.mrf.mxu1  ;;  %v3943_v38 = vadd.f32 %v9227_v29, %v7791_v18 }
 0x2fc   : > { %v3240_v25 = vmax.f32 %v3239_v23, %v2904_v19  ;;  %v4431_v26 = vpack.c.bf16 %v4322_v0, %v4321_v20  ;;  %v3935_v39 = vadd.f32 %v9227_v29, %v3934_v28  ;;  %v2920_v50 = vadd.f32 %v9357_v35, %v7686_v24 }
 0x2fd   : > { %v2911_v31 = vpop.f32.mrf.mxu0  ;;  %v7792_v32 = vpop.f32.mrf.mxu1  ;;  %v4327_v52 = vmax.f32 %v3943_v38, 0.0 }
 0x2fe   : > { %v3241_v33 = vrot.slane %v3240_v25, 4  ;;  %v2912_v36 = vadd.f32 %v9357_v35, %v2911_v31  ;;  %v3946_v37 = vadd.f32 %v9227_v29, %v7792_v32  ;;  %7921 = vmatprep.mubr.msk.bf16.mxu0 %vm1466_vm1, %v4431_v26  ;;  %v4325_v54 = vmax.f32 %v3935_v39, 0.0 }
 0x2ff   : > { %v7689_v40 = vpop.f32.mrf.mxu0  ;;  %v3937_v41 = vpop.f32.mrf.mxu1  ;;  %7922 = vmatmul.mubr.msk.bf16.gmra.mxu0 %vm1466_vm1, %v4432_v27 }
 0x300   : > { %v3242_v43 = vmax.f32 %v3240_v25, %v3241_v33  ;;  %v3247_v46 = vmax.f32 %v2909_v34, %v2912_v36  ;;  %v4328_v47 = vmax.f32 %v3946_v37, 0.0  ;;  %v3938_v48 = vadd.f32 %v9227_v29, %v3937_v41 }
 0x301   : > { %v2924_v44 = vpop.f32.mrf.mxu0  ;;  %v7795_v21 = vpop.f32.mrf.mxu1  ;;  %v2933_v10 = vadd.f32 %v9357_v35, %v7689_v40 }
 0x302   : > { %v3243_v49 = vrot.slane %v3242_v43, 2  ;;  %v3248_v51 = vmax.f32 %v3247_v46, %v2917_v45  ;;  %v4326_v55 = vmax.f32 %v3938_v48, 0.0  ;;  %v2925_v42 = vadd.f32 %v9357_v35, %v2924_v44 }
 0x303   : > { %v7690_v56 = vpop.f32.mrf.mxu0  ;;  %v3950_v57 = vpop.f32.mrf.mxu1  ;;  %v4434_v60 = vpack.c.bf16 %v4328_v47, %v4327_v52  ;;  %v3959_v6 = vadd.f32 %v9227_v29, %v7795_v21 }
 0x304   : > { %v3244_v58 = vmax.f32 %v3242_v43, %v3243_v49  ;;  %v3249_v59 = vmax.f32 %v3248_v51, %v2920_v50  ;;  %v4433_v61 = vpack.c.bf16 %v4326_v55, %v4325_v54  ;;  %v3951_v3 = vadd.f32 %v9227_v29, %v3950_v57 }
 0x305   : > { %v2927_v62 = vpop.f32.mrf.mxu0  ;;  %v7796_v63 = vpop.f32.mrf.mxu1  ;;  %v2936_v13 = vadd.f32 %v9357_v35, %v7690_v56  ;;  %v4331_v20 = vmax.f32 %v3959_v6, 0.0 }
 0x306   : > { %v3245_v1 = vrot.slane %v3244_v58, 1  ;;  %v3250_v2 = vmax.f32 %v3249_v59, %v2925_v42  ;;  %v2928_v5 = vadd.f32 %v9357_v35, %v2927_v62  ;;  %v3962_v7 = vadd.f32 %v9227_v29, %v7796_v63  ;;  %7925 = vmatprep.mubr.msk.bf16.mxu0 %vm1466_vm1, %v4433_v61 }
 0x307   : > { %v7693_v8 = vpop.f32.mrf.mxu0  ;;  %v3953_v53 = vpop.f32.mrf.mxu1  ;;  %7926 = vmatmul.mubr.msk.bf16.gmra.mxu0 %vm1466_vm1, %v4434_v60  ;;  %v4329_v17 = vmax.f32 %v3951_v3, 0.0 }
 0x308   : > { %v3246_v9 = vmax.f32 %v3244_v58, %v3245_v1  ;;  %v3251_v11 = vmax.f32 %v3250_v2, %v2928_v5  ;;  %v3954_v12 = vadd.f32 %v9227_v29, %v3953_v53  ;;  %v4332_v14 = vmax.f32 %v3962_v7, 0.0 }
 0x309   : > { %v2940_v15 = vpop.f32.mrf.mxu0  ;;  %v7799_v16 = vpop.f32.mrf.mxu1  ;;  %v2949_v38 = vadd.f32 %v9357_v35, %v7693_v8 }
 0x30a   : > { %v9399_v4 = vsel %vm3343_vm4, %v3246_v9, %v9350_v30  ;;  %v3252_v18 = vmax.f32 %v3251_v11, %v2933_v10  ;;  %v4330_v19 = vmax.f32 %v3954_v12, 0.0  ;;  %v2941_v24 = vadd.f32 %v9357_v35, %v2940_v15 }
 0x30b   : > { %v7694_v23 = vpop.f32.mrf.mxu0  ;;  %v3966_v0 = vpop.f32.mrf.mxu1  ;;  %v4436_v25 = vpack.c.bf16 %v4332_v14, %v4331_v20  ;;  %v3975_v34 = vadd.f32 %v9227_v29, %v7799_v16 }
 0x30c   : > { %v4435_v22 = vpack.c.bf16 %v4330_v19, %v4329_v17  ;;  %v3253_v28 = vmax.f32 %v3252_v18, %v2936_v13  ;;  %v3967_v32 = vadd.f32 %v9227_v29, %v3966_v0  ;;  %v2952_v46 = vadd.f32 %v9357_v35, %v7694_v23 }
 0x30d   : > { %v2943_v26 = vpop.f32.mrf.mxu0  ;;  %v7800_v27 = vpop.f32.mrf.mxu1  ;;  %v4335_v21 = vmax.f32 %v3975_v34, 0.0 }
 0x30e   : > { %v3254_v31 = vmax.f32 %v3253_v28, %v2941_v24  ;;  %v2944_v33 = vadd.f32 %v9357_v35, %v2943_v26  ;;  %v3978_v30 = vadd.f32 %v9227_v29, %v7800_v27  ;;  %7929 = vmatprep.mubr.msk.bf16.mxu0 %vm1466_vm1, %v4435_v22  ;;  %v4333_v47 = vmax.f32 %v3967_v32, 0.0 }
 0x30f   : > { %v7697_v36 = vpop.f32.mrf.mxu0  ;;  %v3969_v37 = vpop.f32.mrf.mxu1  ;;  %7930 = vmatmul.mubr.msk.bf16.gmra.mxu0 %vm1466_vm1, %v4436_v25 }
 0x310   : > { %v3255_v39 = vmax.f32 %v3254_v31, %v2944_v33  ;;  %v3970_v40 = vadd.f32 %v9227_v29, %v3969_v37  ;;  %v4336_v41 = vmax.f32 %v3978_v30, 0.0  ;;  %v2965_v1 = vadd.f32 %v9357_v35, %v7697_v36 }
 0x311   : > { %v2956_v43 = vpop.f32.mrf.mxu0  ;;  %v7803_v45 = vpop.f32.mrf.mxu1 }
 0x312   : > { %v3256_v48 = vmax.f32 %v3255_v39, %v2949_v38  ;;  %v4334_v44 = vmax.f32 %v3970_v40, 0.0  ;;  %v2957_v52 = vadd.f32 %v9357_v35, %v2956_v43  ;;  %v4438_v55 = vpack.c.bf16 %v4336_v41, %v4335_v21 }
 0x313   : > { %v7698_v49 = vpop.f32.mrf.mxu0  ;;  %v3982_v50 = vpop.f32.mrf.mxu1  ;;  %v3991_v61 = vadd.f32 %v9227_v29, %v7803_v45 }
 0x314   : > { %v4437_v51 = vpack.c.bf16 %v4334_v44, %v4333_v47  ;;  %v3257_v54 = vmax.f32 %v3256_v48, %v2952_v46  ;;  %v3983_v42 = vadd.f32 %v9227_v29, %v3982_v50  ;;  %v2968_v8 = vadd.f32 %v9357_v35, %v7698_v49 }
 0x315   : > { %v2959_v56 = vpop.f32.mrf.mxu0  ;;  %v7804_v57 = vpop.f32.mrf.mxu1  ;;  %v4339_v11 = vmax.f32 %v3991_v61, 0.0 }
 0x316   : > { %v3258_v58 = vmax.f32 %v3257_v54, %v2957_v52  ;;  %v2960_v59 = vadd.f32 %v9357_v35, %v2959_v56  ;;  %v3994_v60 = vadd.f32 %v9227_v29, %v7804_v57  ;;  %7933 = vmatprep.mubr.msk.bf16.mxu0 %vm1466_vm1, %v4437_v51  ;;  %v4337_v53 = vmax.f32 %v3983_v42, 0.0 }
 0x317   : > { %v7701_v62 = vpop.f32.mrf.mxu0  ;;  %v3985_v63 = vpop.f32.mrf.mxu1  ;;  %7934 = vmatmul.mubr.msk.bf16.gmra.mxu0 %vm1466_vm1, %v4438_v55 }
 0x318   : > { %v3259_v2 = vmax.f32 %v3258_v58, %v2960_v59  ;;  %v3986_v3 = vadd.f32 %v9227_v29, %v3985_v63  ;;  %v4340_v5 = vmax.f32 %v3994_v60, 0.0  ;;  %v2981_v27 = vadd.f32 %v9357_v35, %v7701_v62 }
 0x319   : > { %v2972_v6 = vpop.f32.mrf.mxu0  ;;  %v7807_v7 = vpop.f32.mrf.mxu1 }
 0x31a   : > { %v3260_v9 = vmax.f32 %v3259_v2, %v2965_v1  ;;  %v4338_v10 = vmax.f32 %v3986_v3, 0.0  ;;  %v4440_v16 = vpack.c.bf16 %v4340_v5, %v4339_v11  ;;  %v2973_v20 = vadd.f32 %v9357_v35, %v2972_v6 }
 0x31b   : > { %v7702_v12 = vpop.f32.mrf.mxu0  ;;  %v3998_v13 = vpop.f32.mrf.mxu1  ;;  %v4007_v22 = vadd.f32 %v9227_v29, %v7807_v7 }
 0x31c   : > { %v3261_v14 = vmax.f32 %v3260_v9, %v2968_v8  ;;  %v4439_v15 = vpack.c.bf16 %v4338_v10, %v4337_v53  ;;  %v3999_v24 = vadd.f32 %v9227_v29, %v3998_v13  ;;  %v2984_v37 = vadd.f32 %v9357_v35, %v7702_v12 }
 0x31d   : > { %v2975_v17 = vpop.f32.mrf.mxu0  ;;  %v7808_v18 = vpop.f32.mrf.mxu1  ;;  %v4343_v39 = vmax.f32 %v4007_v22, 0.0 }
 0x31e   : > { %v3262_v19 = vrot.slane %v3261_v14, 4  ;;  %v2976_v23 = vadd.f32 %v9357_v35, %v2975_v17  ;;  %v4010_v0 = vadd.f32 %v9227_v29, %v7808_v18  ;;  %7937 = vmatprep.mubr.msk.bf16.mxu0 %vm1466_vm1, %v4439_v15  ;;  %v4341_v40 = vmax.f32 %v3999_v24, 0.0  ;;  %v9449_v17 = vld [vmem:[%s10010_s2] ss:$0 sm:$0xff] }
 0x31f   : > { %v7705_v28 = vpop.f32.mrf.mxu0  ;;  %v4001_v25 = vpop.f32.mrf.mxu1  ;;  %7938 = vmatmul.mubr.msk.bf16.gmra.mxu0 %vm1466_vm1, %v4440_v16 }
 0x320   : > { %v3263_v26 = vmax.f32 %v3261_v14, %v3262_v19  ;;  %v3268_v31 = vmax.f32 %v2973_v20, %v2976_v23  ;;  %v4344_v32 = vmax.f32 %v4010_v0, 0.0  ;;  %v4002_v33 = vadd.f32 %v9227_v29, %v4001_v25 }
 0x321   : > { %v2988_v30 = vpop.f32.mrf.mxu0  ;;  %v7811_v34 = vpop.f32.mrf.mxu1  ;;  %v2997_v60 = vadd.f32 %v9357_v35, %v7705_v28 }
 0x322   : > { %v3264_v36 = vrot.slane %v3263_v26, 2  ;;  %v3269_v38 = vmax.f32 %v3268_v31, %v2981_v27  ;;  %v4342_v41 = vmax.f32 %v4002_v33, 0.0  ;;  %v2989_v47 = vadd.f32 %v9357_v35, %v2988_v30 }
 0x323   : > { %v7706_v43 = vpop.f32.mrf.mxu0  ;;  %v4014_v45 = vpop.f32.mrf.mxu1  ;;  %v4442_v44 = vpack.c.bf16 %v4344_v32, %v4343_v39  ;;  %v4023_v56 = vadd.f32 %v9227_v29, %v7811_v34 }
 0x324   : > { %v3265_v46 = vmax.f32 %v3263_v26, %v3264_v36  ;;  %v3270_v48 = vmax.f32 %v3269_v38, %v2984_v37  ;;  %v4441_v21 = vpack.c.bf16 %v4342_v41, %v4341_v40  ;;  %v4015_v54 = vadd.f32 %v9227_v29, %v4014_v45 }
 0x325   : > { %v2991_v49 = vpop.f32.mrf.mxu0  ;;  %v7812_v50 = vpop.f32.mrf.mxu1  ;;  %v3000_v63 = vadd.f32 %v9357_v35, %v7706_v43  ;;  %v4347_v53 = vmax.f32 %v4023_v56, 0.0 }
 0x326   : > { %v3266_v51 = vrot.slane %v3265_v46, 1  ;;  %v3271_v52 = vmax.f32 %v3270_v48, %v2989_v47  ;;  %v2992_v55 = vadd.f32 %v9357_v35, %v2991_v49  ;;  %v4026_v57 = vadd.f32 %v9227_v29, %v7812_v50  ;;  %7941 = vmatprep.mubr.msk.bf16.mxu0 %vm1466_vm1, %v4441_v21 }
 0x327   : > { %v7709_v58 = vpop.f32.mrf.mxu0  ;;  %v4017_v42 = vpop.f32.mrf.mxu1  ;;  %7942 = vmatmul.mubr.msk.bf16.gmra.mxu0 %vm1466_vm1, %v4442_v44  ;;  %v4345_v6 = vmax.f32 %v4015_v54, 0.0 }
 0x328   : > { %v3267_v59 = vmax.f32 %v3265_v46, %v3266_v51  ;;  %v3272_v61 = vmax.f32 %v3271_v52, %v2992_v55  ;;  %v4018_v62 = vadd.f32 %v9227_v29, %v4017_v42  ;;  %v4348_v1 = vmax.f32 %v4026_v57, 0.0 }
 0x329   : > { %v3004_v2 = vpop.f32.mrf.mxu0  ;;  %v7815_v3 = vpop.f32.mrf.mxu1  ;;  %v3013_v22 = vadd.f32 %v9357_v35, %v7709_v58 }
 0x32a   : > { %v9443_v5 = vsel %vm3345_vm5, %v3267_v59, %v9399_v4  ;;  %v3273_v7 = vmax.f32 %v3272_v61, %v2997_v60  ;;  %v4346_v8 = vmax.f32 %v4018_v62, 0.0  ;;  %v3005_v29 = vadd.f32 %v9357_v35, %v3004_v2 }
 0x32b   : > { %v7710_v9 = vpop.f32.mrf.mxu0  ;;  %v4030_v10 = vpop.f32.mrf.mxu1  ;;  %v4444_v13 = vpack.c.bf16 %v4348_v1, %v4347_v53  ;;  %v4039_v20 = vadd.f32 %v9449_v17, %v7815_v3 }
 0x32c   : > { %v4443_v11 = vpack.c.bf16 %v4346_v8, %v4345_v6  ;;  %v3274_v12 = vmax.f32 %v3273_v7, %v3000_v63  ;;  %v4031_v4 = vadd.f32 %v9449_v17, %v4030_v10  ;;  %v3016_v31 = vadd.f32 %v9357_v35, %v7710_v9 }
 0x32d   : > { %v3007_v14 = vpop.f32.mrf.mxu0  ;;  %v7816_v15 = vpop.f32.mrf.mxu1  ;;  %v4351_v34 = vmax.f32 %v4039_v20, 0.0 }
 0x32e   : > { %v3275_v16 = vmax.f32 %v3274_v12, %v3005_v29  ;;  %v3008_v18 = vadd.f32 %v9357_v35, %v3007_v14  ;;  %v4042_v19 = vadd.f32 %v9449_v17, %v7816_v15  ;;  %7945 = vmatprep.mubr.msk.bf16.mxu0 %vm1466_vm1, %v4443_v11  ;;  %v4349_v32 = vmax.f32 %v4031_v4, 0.0 }
 0x32f   : > { %v7713_v23 = vpop.f32.mrf.mxu0  ;;  %v4033_v0 = vpop.f32.mrf.mxu1  ;;  %7946 = vmatmul.mubr.msk.bf16.gmra.mxu0 %vm1466_vm1, %v4444_v13 }
 0x330   : > { %v3276_v24 = vmax.f32 %v3275_v16, %v3008_v18  ;;  %v4034_v28 = vadd.f32 %v9449_v17, %v4033_v0  ;;  %v4352_v25 = vmax.f32 %v4042_v19, 0.0  ;;  %v3029_v51 = vadd.f32 %v9357_v35, %v7713_v23 }
 0x331   : > { %v3020_v26 = vpop.f32.mrf.mxu0  ;;  %v7819_v27 = vpop.f32.mrf.mxu1 }
 0x332   : > { %v3277_v33 = vmax.f32 %v3276_v24, %v3013_v22  ;;  %v4350_v30 = vmax.f32 %v4034_v28, 0.0  ;;  %v3021_v39 = vadd.f32 %v9357_v35, %v3020_v26  ;;  %v4446_v41 = vpack.c.bf16 %v4352_v25, %v4351_v34 }
 0x333   : > { %v7714_v36 = vpop.f32.mrf.mxu0  ;;  %v4046_v37 = vpop.f32.mrf.mxu1  ;;  %v4055_v21 = vadd.f32 %v9449_v17, %v7819_v27 }
 0x334   : > { %v4445_v38 = vpack.c.bf16 %v4350_v30, %v4349_v32  ;;  %v3278_v40 = vmax.f32 %v3277_v33, %v3016_v31  ;;  %v4047_v47 = vadd.f32 %v9449_v17, %v4046_v37  ;;  %v3032_v58 = vadd.f32 %v9357_v35, %v7714_v36 }
 0x335   : > { %v3023_v43 = vpop.f32.mrf.mxu0  ;;  %v7820_v45 = vpop.f32.mrf.mxu1  ;;  %v4355_v61 = vmax.f32 %v4055_v21, 0.0 }
 0x336   : > { %v3279_v46 = vmax.f32 %v3278_v40, %v3021_v39  ;;  %v3024_v48 = vadd.f32 %v9357_v35, %v3023_v43  ;;  %v4058_v44 = vadd.f32 %v9449_v17, %v7820_v45  ;;  %7949 = vmatprep.mubr.msk.bf16.mxu0 %vm1466_vm1, %v4445_v38  ;;  %v4353_v42 = vmax.f32 %v4047_v47, 0.0 }
 0x337   : > { %v7717_v49 = vpop.f32.mrf.mxu0  ;;  %v4049_v50 = vpop.f32.mrf.mxu1  ;;  %7950 = vmatmul.mubr.msk.bf16.gmra.mxu0 %vm1466_vm1, %v4446_v41 }
 0x338   : > { %v3280_v52 = vmax.f32 %v3279_v46, %v3024_v48  ;;  %v4050_v54 = vadd.f32 %v9449_v17, %v4049_v50  ;;  %v4356_v55 = vmax.f32 %v4058_v44, 0.0  ;;  %v3045_v15 = vadd.f32 %v9357_v35, %v7717_v49 }
 0x339   : > { %v3036_v56 = vpop.f32.mrf.mxu0  ;;  %v7823_v57 = vpop.f32.mrf.mxu1 }
 0x33a   : > { %v3281_v59 = vmax.f32 %v3280_v52, %v3029_v51  ;;  %v4354_v60 = vmax.f32 %v4050_v54, 0.0  ;;  %v4448_v3 = vpack.c.bf16 %v4356_v55, %v4355_v61  ;;  %v3037_v53 = vadd.f32 %v9357_v35, %v3036_v56 }
 0x33b   : > { %v7718_v62 = vpop.f32.mrf.mxu0  ;;  %v4062_v63 = vpop.f32.mrf.mxu1  ;;  %v4071_v11 = vadd.f32 %v9449_v17, %v7823_v57 }
 0x33c   : > { %v3282_v1 = vmax.f32 %v3281_v59, %v3032_v58  ;;  %v4447_v2 = vpack.c.bf16 %v4354_v60, %v4353_v42  ;;  %v4063_v29 = vadd.f32 %v9449_v17, %v4062_v63  ;;  %v3048_v0 = vadd.f32 %v9357_v35, %v7718_v62 }
 0x33d   : > { %v3039_v6 = vpop.f32.mrf.mxu0  ;;  %v7824_v7 = vpop.f32.mrf.mxu1  ;;  %v4359_v24 = vmax.f32 %v4071_v11, 0.0 }
 0x33e   : > { %v3283_v8 = vrot.slane %v3282_v1, 4  ;;  %v3040_v9 = vadd.f32 %v9357_v35, %v3039_v6  ;;  %v4074_v10 = vadd.f32 %v9449_v17, %v7824_v7  ;;  %7953 = vmatprep.mubr.msk.bf16.mxu0 %vm1466_vm1, %v4447_v2  ;;  %v4357_v28 = vmax.f32 %v4063_v29, 0.0 }
 0x33f   : > { %v7721_v12 = vpop.f32.mrf.mxu0  ;;  %v4065_v13 = vpop.f32.mrf.mxu1  ;;  %7954 = vmatmul.mubr.msk.bf16.gmra.mxu0 %vm1466_vm1, %v4448_v3 }
 0x340   : > { %v3284_v14 = vmax.f32 %v3282_v1, %v3283_v8  ;;  %v3289_v16 = vmax.f32 %v3037_v53, %v3040_v9  ;;  %v4360_v4 = vmax.f32 %v4074_v10, 0.0  ;;  %v4066_v18 = vadd.f32 %v9449_v17, %v4065_v13 }
 0x341   : > { %v3052_v19 = vpop.f32.mrf.mxu0  ;;  %v7827_v20 = vpop.f32.mrf.mxu1  ;;  %v3061_v43 = vadd.f32 %v9357_v35, %v7721_v12 }
 0x342   : > { %v3285_v23 = vrot.slane %v3284_v14, 2  ;;  %v3290_v22 = vmax.f32 %v3289_v16, %v3045_v15  ;;  %v4358_v25 = vmax.f32 %v4066_v18, 0.0  ;;  %v3053_v32 = vadd.f32 %v9357_v35, %v3052_v19 }
 0x343   : > { %v7722_v26 = vpop.f32.mrf.mxu0  ;;  %v4078_v27 = vpop.f32.mrf.mxu1  ;;  %v4450_v30 = vpack.c.bf16 %v4360_v4, %v4359_v24  ;;  %v4087_v44 = vadd.f32 %v9449_v17, %v7827_v20 }
 0x344   : > { %v3286_v31 = vmax.f32 %v3284_v14, %v3285_v23  ;;  %v3291_v33 = vmax.f32 %v3290_v22, %v3048_v0  ;;  %v4449_v34 = vpack.c.bf16 %v4358_v25, %v4357_v28  ;;  %v4079_v40 = vadd.f32 %v9449_v17, %v4078_v27 }
 0x345   : > { %v3055_v36 = vpop.f32.mrf.mxu0  ;;  %v7828_v37 = vpop.f32.mrf.mxu1  ;;  %v3064_v57 = vadd.f32 %v9357_v35, %v7722_v26  ;;  %v4363_v60 = vmax.f32 %v4087_v44, 0.0 }
 0x346   : > { %v3287_v38 = vrot.slane %v3286_v31, 1  ;;  %v3292_v39 = vmax.f32 %v3291_v33, %v3053_v32  ;;  %v3056_v41 = vadd.f32 %v9357_v35, %v3055_v36  ;;  %v4090_v45 = vadd.f32 %v9449_v17, %v7828_v37  ;;  %7957 = vmatprep.mubr.msk.bf16.mxu0 %vm1466_vm1, %v4449_v34 }
 0x347   : > { %v7725_v46 = vpop.f32.mrf.mxu0  ;;  %v4081_v47 = vpop.f32.mrf.mxu1  ;;  %7958 = vmatmul.mubr.msk.bf16.gmra.mxu0 %vm1466_vm1, %v4450_v30  ;;  %v4361_v52 = vmax.f32 %v4079_v40, 0.0 }
 0x348   : > { %v3288_v48 = vmax.f32 %v3286_v31, %v3287_v38  ;;  %v3293_v21 = vmax.f32 %v3292_v39, %v3056_v41  ;;  %v4082_v49 = vadd.f32 %v9449_v17, %v4081_v47  ;;  %v4364_v55 = vmax.f32 %v4090_v45, 0.0 }
 0x349   : > { %v3068_v50 = vpop.f32.mrf.mxu0  ;;  %v7831_v51 = vpop.f32.mrf.mxu1  ;;  %v3077_v25 = vadd.f32 %v9357_v35, %v7725_v46 }
 0x34a   : > { %v3294_v54 = vmax.f32 %v3293_v21, %v3061_v43  ;;  %v4362_v56 = vmax.f32 %v4082_v49, 0.0  ;;  %v9492_v59 = vsel %vm3347_vm6, %v3288_v48, %v9443_v5  ;;  %v4452_v2 = vpack.c.bf16 %v4364_v55, %v4363_v60 }
 0x34b   : > { %v7726_v58 = vpop.f32.mrf.mxu0  ;;  %v4094_v42 = vpop.f32.mrf.mxu1  ;;  %v3069_v7 = vadd.f32 %v9357_v35, %v3068_v50  ;;  %v4103_v5 = vadd.f32 %v9449_v17, %v7831_v51 }
 0x34c   : > { %v4451_v61 = vpack.c.bf16 %v4362_v56, %v4361_v52  ;;  %v3295_v62 = vmax.f32 %v3294_v54, %v3064_v57  ;;  %v4095_v3 = vadd.f32 %v9449_v17, %v4094_v42  ;;  %v3080_v39 = vadd.f32 %v9357_v35, %v7726_v58 }
 0x34d   : > { %v3071_v63 = vpop.f32.mrf.mxu0  ;;  %v7832_v1 = vpop.f32.mrf.mxu1  ;;  %v4367_v18 = vmax.f32 %v4103_v5, 0.0 }
 0x34e   : > { %v4106_v6 = vadd.f32 %v9449_v17, %v7832_v1  ;;  %7961 = vmatprep.mubr.msk.bf16.mxu0 %vm1466_vm1, %v4451_v61  ;;  %v3296_v10 = vmax.f32 %v3295_v62, %v3069_v7  ;;  %v3072_v11 = vadd.f32 %v9357_v35, %v3071_v63  ;;  %v4365_v13 = vmax.f32 %v4095_v3, 0.0 }
 0x34f   : > { %v9498_v8 = vpop.f32.mrf.mxu0  ;;  %v4097_v53 = vpop.f32.mrf.mxu1  ;;  %7962 = vmatmul.mubr.msk.bf16.gmra.mxu0 %vm1466_vm1, %v4452_v2 }
 0x350   : > { %v4098_v9 = vadd.f32 %v9449_v17, %v4097_v53  ;;  %v4368_v14 = vmax.f32 %v4106_v6, 0.0  ;;  %v3297_v20 = vmax.f32 %v3296_v10, %v3072_v11 }
 0x351   : > { %v3084_v29 = vpop.f32.mrf.mxu0  ;;  %v7835_v12 = vpop.f32.mrf.mxu1 }
 0x352   : > { %v4366_v15 = vmax.f32 %v4098_v9, 0.0  ;;  %v4454_v22 = vpack.c.bf16 %v4368_v14, %v4367_v18  ;;  %v4119_v31 = vadd.f32 %v9449_v17, %v7835_v12  ;;  %v3298_v33 = vmax.f32 %v3297_v20, %v3077_v25 }
 0x353   : > { %v9504_v16 = vpop.f32.mrf.mxu0  ;;  %v4110_v4 = vpop.f32.mrf.mxu1  ;;  %v3085_v51 = vadd.f32 %v9357_v35, %v3084_v29  ;;  %v3093_v20 = vadd.f32 %v9357_v35, %v9498_v8 }
 0x354   : > { %v4453_v19 = vpack.c.bf16 %v4366_v15, %v4365_v13  ;;  %v4111_v24 = vadd.f32 %v9449_v17, %v4110_v4  ;;  %v4371_v43 = vmax.f32 %v4119_v31, 0.0  ;;  %v3299_v46 = vmax.f32 %v3298_v33, %v3080_v39 }
 0x355   : > { %v3087_v23 = vpop.f32.mrf.mxu0  ;;  %v7836_v0 = vpop.f32.mrf.mxu1 }
 0x356   : > { %v4122_v28 = vadd.f32 %v9449_v17, %v7836_v0  ;;  %7965 = vmatprep.mubr.msk.bf16.mxu0 %vm1466_vm1, %v4453_v19  ;;  %v4369_v36 = vmax.f32 %v4111_v24, 0.0  ;;  %v3300_v42 = vmax.f32 %v3299_v46, %v3085_v51  ;;  %v3088_v60 = vadd.f32 %v9357_v35, %v3087_v23 }
 0x357   : > { %v7733_v26 = vpop.f32.mrf.mxu0  ;;  %v4113_v27 = vpop.f32.mrf.mxu1  ;;  %7966 = vmatmul.mubr.msk.bf16.gmra.mxu0 %vm1466_vm1, %v4454_v22 }
 0x358   : > { %v4114_v32 = vadd.f32 %v9449_v17, %v4113_v27  ;;  %v4372_v37 = vmax.f32 %v4122_v28, 0.0  ;;  %v3109_v56 = vadd.f32 %v9357_v35, %v7733_v26  ;;  %v3301_v29 = vmax.f32 %v3300_v42, %v3088_v60 }
 0x359   : > { %v3100_v30 = vpop.f32.mrf.mxu0  ;;  %v7839_v34 = vpop.f32.mrf.mxu1 }
 0x35a   : > { %v4370_v38 = vmax.f32 %v4114_v32, 0.0  ;;  %v4456_v44 = vpack.c.bf16 %v4372_v37, %v4371_v43  ;;  %v3101_v21 = vadd.f32 %v9357_v35, %v3100_v30  ;;  %v4135_v57 = vadd.f32 %v9449_v17, %v7839_v34 }
 0x35b   : > { %v7734_v40 = vpop.f32.mrf.mxu0  ;;  %v4126_v41 = vpop.f32.mrf.mxu1  ;;  %v3302_v27 = vmax.f32 %v3301_v29, %v3093_v20  ;;  %v3096_v37 = vadd.f32 %v9357_v35, %v9504_v16 }
 0x35c   : > { %v4455_v45 = vpack.c.bf16 %v4370_v38, %v4369_v36  ;;  %v4127_v52 = vadd.f32 %v9449_v17, %v4126_v41  ;;  %v3112_v1 = vadd.f32 %v9357_v35, %v7734_v40  ;;  %v4375_v9 = vmax.f32 %v4135_v57, 0.0 }
 0x35d   : > { %v3103_v47 = vpop.f32.mrf.mxu0  ;;  %v7840_v48 = vpop.f32.mrf.mxu1  ;;  %v3303_v46 = vmax.f32 %v3302_v27, %v3096_v37 }
 0x35e   : > { %v3104_v49 = vadd.f32 %v9357_v35, %v3103_v47  ;;  %v4138_v50 = vadd.f32 %v9449_v17, %v7840_v48  ;;  %7969 = vmatprep.mubr.msk.bf16.mxu0 %vm1466_vm1, %v4455_v45  ;;  %v4373_v6 = vmax.f32 %v4127_v52, 0.0 }
 0x35f   : > { %v7737_v54 = vpop.f32.mrf.mxu0  ;;  %v4129_v55 = vpop.f32.mrf.mxu1  ;;  %7970 = vmatmul.mubr.msk.bf16.gmra.mxu0 %vm1466_vm1, %v4456_v44 }
 0x360   : > { %v3310_v58 = vmax.f32 %v3101_v21, %v3104_v49  ;;  %v4130_v61 = vadd.f32 %v9449_v17, %v4129_v55  ;;  %v4376_v3 = vmax.f32 %v4138_v50, 0.0  ;;  %v3125_v28 = vadd.f32 %v9357_v35, %v7737_v54 }
 0x361   : > { %v3116_v62 = vpop.f32.mrf.mxu0  ;;  %v7843_v63 = vpop.f32.mrf.mxu1 }
 0x362   : > { %v3311_v2 = vmax.f32 %v3310_v58, %v3109_v56  ;;  %v4374_v7 = vmax.f32 %v4130_v61, 0.0  ;;  %v3117_v10 = vadd.f32 %v9357_v35, %v3116_v62  ;;  %v4458_v15 = vpack.c.bf16 %v4376_v3, %v4375_v9 }
 0x363   : > { %v7738_v53 = vpop.f32.mrf.mxu0  ;;  %v4142_v5 = vpop.f32.mrf.mxu1  ;;  %v4151_v23 = vadd.f32 %v9449_v17, %v7843_v63  ;;  %v3304_v58 = vrot.slane %v3303_v46, 4 }
 0x364   : > { %v3312_v11 = vmax.f32 %v3311_v2, %v3112_v1  ;;  %v4457_v12 = vpack.c.bf16 %v4374_v7, %v4373_v6  ;;  %v4143_v18 = vadd.f32 %v9449_v17, %v4142_v5  ;;  %v3128_v8 = vadd.f32 %v9357_v35, %v7738_v53 }
 0x365   : > { %v3119_v13 = vpop.f32.mrf.mxu0  ;;  %v7844_v14 = vpop.f32.mrf.mxu1  ;;  %v4379_v38 = vmax.f32 %v4151_v23, 0.0 }
 0x366   : > { %v3313_v4 = vmax.f32 %v3312_v11, %v3117_v10  ;;  %v3120_v19 = vadd.f32 %v9357_v35, %v3119_v13  ;;  %v4154_v0 = vadd.f32 %v9449_v17, %v7844_v14  ;;  %7973 = vmatprep.mubr.msk.bf16.mxu0 %vm1466_vm1, %v4457_v12  ;;  %v4377_v30 = vmax.f32 %v4143_v18, 0.0 }
 0x367   : > { %v7741_v22 = vpop.f32.mrf.mxu0  ;;  %v4145_v24 = vpop.f32.mrf.mxu1  ;;  %7974 = vmatmul.mubr.msk.bf16.gmra.mxu0 %vm1466_vm1, %v4458_v15  ;;  %v3305_v10 = vmax.f32 %v3303_v46, %v3304_v58 }
 0x368   : > { %v3314_v25 = vmax.f32 %v3313_v4, %v3120_v19  ;;  %v4146_v26 = vadd.f32 %v9449_v17, %v4145_v24  ;;  %v4380_v31 = vmax.f32 %v4154_v0, 0.0  ;;  %v3141_v55 = vadd.f32 %v9357_v35, %v7741_v22 }
 0x369   : > { %v3132_v32 = vpop.f32.mrf.mxu0  ;;  %v7847_v33 = vpop.f32.mrf.mxu1  ;;  %v3306_v24 = vrot.slane %v3305_v10, 2 }
 0x36a   : > { %v3315_v34 = vmax.f32 %v3314_v25, %v3125_v28  ;;  %v4378_v36 = vmax.f32 %v4146_v26, 0.0  ;;  %v3133_v43 = vadd.f32 %v9357_v35, %v3132_v32  ;;  %v4460_v47 = vpack.c.bf16 %v4380_v31, %v4379_v38  ;;  %v9563_v38 = vld [vmem:[%s10012_s4] ss:$0 sm:$0xff] }
 0x36b   : > { %v7742_v39 = vpop.f32.mrf.mxu0  ;;  %v4158_v40 = vpop.f32.mrf.mxu1  ;;  %v4167_v16 = vadd.f32 %v9449_v17, %v7847_v33 }
 0x36c   : > { %v4459_v41 = vpack.c.bf16 %v4378_v36, %v4377_v30  ;;  %v3316_v45 = vmax.f32 %v3315_v34, %v3128_v8  ;;  %v4159_v49 = vadd.f32 %v9449_v17, %v4158_v40  ;;  %v3144_v62 = vadd.f32 %v9357_v35, %v7742_v39 }
 0x36d   : > { %v3135_v48 = vpop.f32.mrf.mxu0  ;;  %v7848_v44 = vpop.f32.mrf.mxu1  ;;  %v4383_v3 = vmax.f32 %v4167_v16, 0.0  ;;  %v3307_v40 = vmax.f32 %v3305_v10, %v3306_v24 }
 0x36e   : > { %v3317_v21 = vmax.f32 %v3316_v45, %v3133_v43  ;;  %v3136_v50 = vadd.f32 %v9357_v35, %v3135_v48  ;;  %v4170_v51 = vadd.f32 %v9449_v17, %v7848_v44  ;;  %7977 = vmatprep.mubr.msk.bf16.mxu0 %vm1466_vm1, %v4459_v41  ;;  %v4381_v63 = vmax.f32 %v4159_v49, 0.0 }
 0x36f   : > { %v7745_v52 = vpop.f32.mrf.mxu0  ;;  %v4161_v54 = vpop.f32.mrf.mxu1  ;;  %7978 = vmatmul.mubr.msk.bf16.gmra.mxu0 %vm1466_vm1, %v4460_v47 }
 0x370   : > { %v3318_v56 = vmax.f32 %v3317_v21, %v3136_v50  ;;  %v4162_v57 = vadd.f32 %v9449_v17, %v4161_v54  ;;  %v4384_v42 = vmax.f32 %v4170_v51, 0.0  ;;  %v3157_v20 = vadd.f32 %v9357_v35, %v7745_v52 }
 0x371   : > { %v3148_v60 = vpop.f32.mrf.mxu0  ;;  %v7851_v61 = vpop.f32.mrf.mxu1 }
 0x372   : > { %v3319_v1 = vmax.f32 %v3318_v56, %v3141_v55  ;;  %v4382_v2 = vmax.f32 %v4162_v57, 0.0  ;;  %v3149_v5 = vadd.f32 %v9357_v35, %v3148_v60  ;;  %v4462_v11 = vpack.c.bf16 %v4384_v42, %v4383_v3 }
 0x373   : > { %v7746_v6 = vpop.f32.mrf.mxu0  ;;  %v4174_v7 = vpop.f32.mrf.mxu1  ;;  %v4183_v23 = vadd.f32 %v9449_v17, %v7851_v61  ;;  %v3308_v55 = vrot.slane %v3307_v40, 1 }
 0x374   : > { %v4461_v53 = vpack.c.bf16 %v4382_v2, %v4381_v63  ;;  %v3320_v9 = vmax.f32 %v3319_v1, %v3144_v62  ;;  %v4175_v14 = vadd.f32 %v9449_v17, %v4174_v7  ;;  %v3160_v28 = vadd.f32 %v9357_v35, %v7746_v6 }
 0x375   : > { %v3151_v29 = vpop.f32.mrf.mxu0  ;;  %v7852_v12 = vpop.f32.mrf.mxu1  ;;  %v4387_v34 = vmax.f32 %v4183_v23, 0.0 }
 0x376   : > { %v3321_v13 = vmax.f32 %v3320_v9, %v3149_v5  ;;  %v3152_v15 = vadd.f32 %v9357_v35, %v3151_v29  ;;  %v4186_v4 = vadd.f32 %v9449_v17, %v7852_v12  ;;  %7981 = vmatprep.mubr.msk.bf16.mxu0 %vm1466_vm1, %v4461_v53  ;;  %v4385_v27 = vmax.f32 %v4175_v14, 0.0 }
 0x377   : > { %v4177_v18 = vpop.f32.mrf.mxu1  ;;  %v7887_v19 = vpop.f32.mrf.mxu0  ;;  %7982 = vmatmul.mubr.msk.bf16.gmra.mxu0 %vm1466_vm1, %v4462_v11  ;;  %v3309_v11 = vmax.f32 %v3307_v40, %v3308_v55 }
 0x378   : > { %v3322_v0 = vmax.f32 %v3321_v13, %v3152_v15  ;;  %v4178_v22 = vadd.f32 %v9449_v17, %v4177_v18  ;;  %v4388_v32 = vmax.f32 %v4186_v4, 0.0  ;;  %v4712_v35 = vadd.f32 %v9563_v38, %v7887_v19 }
 0x379   : > { %v7855_v25 = vpop.f32.mrf.mxu1  ;;  %v4703_v26 = vpop.f32.mrf.mxu0 }
 0x37a   : > { %v3323_v31 = vmax.f32 %v3322_v0, %v3157_v20  ;;  %v4386_v33 = vmax.f32 %v4178_v22, 0.0  ;;  %v4704_v41 = vadd.f32 %v9563_v38, %v4703_v26  ;;  %v4464_v47 = vpack.c.bf16 %v4388_v32, %v4387_v34 }
 0x37b   : > { %v4190_v8 = vpop.f32.mrf.mxu1  ;;  %v7888_v30 = vpop.f32.mrf.mxu0  ;;  %v4199_v21 = vadd.f32 %v9449_v17, %v7855_v25  ;;  %v5216_v62 = vmax.f32 %v4712_v35, 0.0 }
 0x37c   : > { %v3324_v36 = vmax.f32 %v3323_v31, %v3160_v28  ;;  %v4463_v37 = vpack.c.bf16 %v4386_v33, %v4385_v27  ;;  %v4715_v39 = vadd.f32 %v9563_v38, %v7888_v30  ;;  %v4191_v48 = vadd.f32 %v9449_v17, %v4190_v8 }
 0x37d   : > { %v7856_v43 = vpop.f32.mrf.mxu1  ;;  %v4706_v45 = vpop.f32.mrf.mxu0  ;;  %v5214_v56 = vmax.f32 %v4704_v41, 0.0  ;;  %v4391_v2 = vmax.f32 %v4199_v21, 0.0  ;;  %v3350_v8 = vsel %vm3349_vm7, %v3309_v11, %v9492_v59 }
 0x37e   : > { %v3325_v46 = vrot.slane %v3324_v36, 4  ;;  %v4202_v44 = vadd.f32 %v9449_v17, %v7856_v43  ;;  %7985 = vmatprep.mubr.msk.bf16.mxu0 %vm1466_vm1, %v4463_v37  ;;  %v4707_v49 = vadd.f32 %v9563_v38, %v4706_v45  ;;  %v5217_v52 = vmax.f32 %v4715_v39, 0.0 }
 0x37f   : > { %v4193_v50 = vpop.f32.mrf.mxu1  ;;  %v7891_v51 = vpop.f32.mrf.mxu0  ;;  %7986 = vmatmul.mubr.msk.bf16.gmra.mxu0 %vm1466_vm1, %v4464_v47  ;;  %v4389_v63 = vmax.f32 %v4191_v48, 0.0 }
 0x380   : > { %v3326_v16 = vmax.f32 %v3324_v36, %v3325_v46  ;;  %v4194_v54 = vadd.f32 %v9449_v17, %v4193_v50  ;;  %v4392_v57 = vmax.f32 %v4202_v44, 0.0  ;;  %v5215_v58 = vmax.f32 %v4707_v49, 0.0 }
 0x381   : > { %v7859_v42 = vpop.f32.mrf.mxu1  ;;  %v4719_v60 = vpop.f32.mrf.mxu0  ;;  %v5343_v9 = vpack.c.bf16 %v5217_v52, %v5216_v62  ;;  %v4728_v12 = vadd.f32 %v9563_v38, %v7891_v51 }
 0x382   : > { %v3327_v61 = vrot.slane %v3326_v16, 2  ;;  %v4390_v1 = vmax.f32 %v4194_v54, 0.0  ;;  %v5342_v3 = vpack.c.bf16 %v5215_v58, %v5214_v56  ;;  %v4720_v6 = vadd.f32 %v9563_v38, %v4719_v60 }
 0x383   : > { %v4206_v7 = vpop.f32.mrf.mxu1  ;;  %v7892_v53 = vpop.f32.mrf.mxu0  ;;  %v4466_v29 = vpack.c.bf16 %v4392_v57, %v4391_v2  ;;  %v4215_v23 = vadd.f32 %v9449_v17, %v7859_v42  ;;  %v5220_v30 = vmax.f32 %v4728_v12, 0.0 }
 0x384   : > { %v3328_v5 = vmax.f32 %v3326_v16, %v3327_v61  ;;  %v4465_v10 = vpack.c.bf16 %v4390_v1, %v4389_v63  ;;  %v4731_v13 = vadd.f32 %v9563_v38, %v7892_v53  ;;  %8021 = vmatprep.mubr.msk.bf16.mxu1 %vm1466_vm1, %v5342_v3  ;;  %v4207_v18 = vadd.f32 %v9449_v17, %v4206_v7 }
 0x385   : > { %v7860_v14 = vpop.f32.mrf.mxu1  ;;  %v4722_v15 = vpop.f32.mrf.mxu0  ;;  %8022 = vmatmul.mubr.msk.bf16.vlgmr.msra.gmra.mxu1 %vm1466_vm1, %v5343_v9  ;;  %v5218_v0 = vmax.f32 %v4720_v6, 0.0  ;;  %v4395_v39 = vmax.f32 %v4215_v23, 0.0 }
 0x386   : > { %v3329_v4 = vrot.slane %v3328_v5, 1  ;;  %v4218_v19 = vadd.f32 %v9449_v17, %v7860_v14  ;;  %v4723_v20 = vadd.f32 %v9563_v38, %v4722_v15  ;;  %7989 = vmatprep.mubr.msk.bf16.mxu0 %vm1466_vm1, %v4465_v10  ;;  %v5221_v25 = vmax.f32 %v4731_v13, 0.0 }
 0x387   : > { %v4209_v22 = vpop.f32.mrf.mxu1  ;;  %v7895_v24 = vpop.f32.mrf.mxu0  ;;  %7990 = vmatmul.mubr.msk.bf16.gmra.mxu0 %vm1466_vm1, %v4466_v29  ;;  %v4393_v34 = vmax.f32 %v4207_v18, 0.0 }
 0x388   : > { %v3330_v28 = vmax.f32 %v3328_v5, %v3329_v4  ;;  %v5219_v26 = vmax.f32 %v4723_v20, 0.0  ;;  %v4210_v27 = vadd.f32 %v9449_v17, %v4209_v22  ;;  %v4396_v31 = vmax.f32 %v4218_v19, 0.0 }
 0x389   : > { %v7863_v32 = vpop.f32.mrf.mxu1  ;;  %v4735_v33 = vpop.f32.mrf.mxu0  ;;  %v5345_v43 = vpack.c.bf16 %v5221_v25, %v5220_v30  ;;  %v4744_v48 = vadd.f32 %v9563_v38, %v7895_v24 }
 0x38a   : > { %v5344_v36 = vpack.c.bf16 %v5219_v26, %v5218_v0  ;;  %v4394_v37 = vmax.f32 %v4210_v27, 0.0  ;;  %v3352_v41 = vsel %vm3351_vm8, %v3330_v28, %v3350_v8  ;;  %v4736_v46 = vadd.f32 %v9563_v38, %v4735_v33 }
 0x38b   : > { %v4222_v40 = vpop.f32.mrf.mxu1  ;;  %v7896_v35 = vpop.f32.mrf.mxu0  ;;  %3354 = vst [vmem:[%s9596_s19] sm:$0xff] %v3352_v41  ;;  %v4468_v59 = vpack.c.bf16 %v4396_v31, %v4395_v39  ;;  %v4231_v16 = vadd.f32 %v9449_v17, %v7863_v32  ;;  %v5224_v62 = vmax.f32 %v4744_v48, 0.0 }
 0x38c   : > { %v4467_v45 = vpack.c.bf16 %v4394_v37, %v4393_v34  ;;  %v4747_v47 = vadd.f32 %v9563_v38, %v7896_v35  ;;  %8025 = vmatprep.mubr.msk.bf16.mxu1 %vm1466_vm1, %v5344_v36  ;;  %v4223_v49 = vadd.f32 %v9449_v17, %v4222_v40  ;;  %v5222_v55 = vmax.f32 %v4736_v46, 0.0 }
 0x38d   : > { %v7864_v44 = vpop.f32.mrf.mxu1  ;;  %v4738_v21 = vpop.f32.mrf.mxu0  ;;  %8026 = vmatmul.mubr.msk.bf16.gmra.mxu1 %vm1466_vm1, %v5345_v43  ;;  %v4399_v3 = vmax.f32 %v4231_v16, 0.0 }
 0x38e   : > { %v4234_v50 = vadd.f32 %v9449_v17, %v7864_v44  ;;  %v4739_v51 = vadd.f32 %v9563_v38, %v4738_v21  ;;  %7993 = vmatprep.mubr.msk.bf16.mxu0 %vm1466_vm1, %v4467_v45  ;;  %v5225_v56 = vmax.f32 %v4747_v47, 0.0  ;;  %v4397_v63 = vmax.f32 %v4223_v49, 0.0 }
 0x38f   : > { %v4225_v52 = vpop.f32.mrf.mxu1  ;;  %v7899_v54 = vpop.f32.mrf.mxu0  ;;  %7994 = vmatmul.mubr.msk.bf16.gmra.mxu0 %vm1466_vm1, %v4468_v59 }
 0x390   : > { %v5223_v57 = vmax.f32 %v4739_v51, 0.0  ;;  %v4226_v58 = vadd.f32 %v9449_v17, %v4225_v52  ;;  %v4400_v42 = vmax.f32 %v4234_v50, 0.0  ;;  %v5347_v53 = vpack.c.bf16 %v5225_v56, %v5224_v62 }
 0x391   : > { %v7867_v60 = vpop.f32.mrf.mxu1  ;;  %v4751_v61 = vpop.f32.mrf.mxu0  ;;  %v4760_v29 = vadd.f32 %v9563_v38, %v7899_v54 }
 0x392   : > { %v5346_v1 = vpack.c.bf16 %v5223_v57, %v5222_v55  ;;  %v4398_v2 = vmax.f32 %v4226_v58, 0.0  ;;  %v4752_v9 = vadd.f32 %v9563_v38, %v4751_v61  ;;  %v4470_v11 = vpack.c.bf16 %v4400_v42, %v4399_v3 }
 0x393   : > { %v4238_v6 = vpop.f32.mrf.mxu1  ;;  %v7900_v7 = vpop.f32.mrf.mxu0  ;;  %v4247_v18 = vadd.f32 %v9449_v17, %v7867_v60  ;;  %v5228_v27 = vmax.f32 %v4760_v29, 0.0 }
 0x394   : > { %v4469_v5 = vpack.c.bf16 %v4398_v2, %v4397_v63  ;;  %v4763_v10 = vadd.f32 %v9563_v38, %v7900_v7  ;;  %8029 = vmatprep.mubr.msk.bf16.mxu1 %vm1466_vm1, %v5346_v1  ;;  %v4239_v14 = vadd.f32 %v9449_v17, %v4238_v6  ;;  %v5226_v23 = vmax.f32 %v4752_v9, 0.0 }
 0x395   : > { %v7868_v12 = vpop.f32.mrf.mxu1  ;;  %v4754_v13 = vpop.f32.mrf.mxu0  ;;  %8030 = vmatmul.mubr.msk.bf16.gmra.mxu1 %vm1466_vm1, %v5347_v53  ;;  %v4403_v8 = vmax.f32 %v4247_v18, 0.0 }
 0x396   : > { %v4250_v15 = vadd.f32 %v9449_v17, %v7868_v12  ;;  %v4755_v4 = vadd.f32 %v9563_v38, %v4754_v13  ;;  %7997 = vmatprep.mubr.msk.bf16.mxu0 %vm1466_vm1, %v4469_v5  ;;  %v5229_v0 = vmax.f32 %v4763_v10, 0.0  ;;  %v4401_v31 = vmax.f32 %v4239_v14, 0.0 }
 0x397   : > { %v4241_v19 = vpop.f32.mrf.mxu1  ;;  %v7903_v20 = vpop.f32.mrf.mxu0  ;;  %7998 = vmatmul.mubr.msk.bf16.gmra.mxu0 %vm1466_vm1, %v4470_v11 }
 0x398   : > { %v5227_v22 = vmax.f32 %v4755_v4, 0.0  ;;  %v4242_v24 = vadd.f32 %v9449_v17, %v4241_v19  ;;  %v4404_v28 = vmax.f32 %v4250_v15, 0.0  ;;  %v5349_v36 = vpack.c.bf16 %v5229_v0, %v5228_v27 }
 0x399   : > { %v7871_v25 = vpop.f32.mrf.mxu1  ;;  %v4767_v26 = vpop.f32.mrf.mxu0  ;;  %v4776_v41 = vadd.f32 %v9563_v38, %v7903_v20 }
 0x39a   : > { %v5348_v32 = vpack.c.bf16 %v5227_v22, %v5226_v23  ;;  %v4402_v33 = vmax.f32 %v4242_v24, 0.0  ;;  %v4768_v39 = vadd.f32 %v9563_v38, %v4767_v26  ;;  %v4472_v35 = vpack.c.bf16 %v4404_v28, %v4403_v8 }
 0x39b   : > { %v4254_v30 = vpop.f32.mrf.mxu1  ;;  %v7904_v34 = vpop.f32.mrf.mxu0  ;;  %v4263_v48 = vadd.f32 %v9449_v17, %v7871_v25  ;;  %v5232_v56 = vmax.f32 %v4776_v41, 0.0 }
 0x39c   : > { %v4471_v37 = vpack.c.bf16 %v4402_v33, %v4401_v31  ;;  %v4779_v40 = vadd.f32 %v9563_v38, %v7904_v34  ;;  %8033 = vmatprep.mubr.msk.bf16.mxu1 %vm1466_vm1, %v5348_v32  ;;  %v4255_v46 = vadd.f32 %v9449_v17, %v4254_v30  ;;  %v5230_v49 = vmax.f32 %v4768_v39, 0.0 }
 0x39d   : > { %v7872_v43 = vpop.f32.mrf.mxu1  ;;  %v4770_v45 = vpop.f32.mrf.mxu0  ;;  %8034 = vmatmul.mubr.msk.bf16.gmra.mxu1 %vm1466_vm1, %v5349_v36  ;;  %v4407_v60 = vmax.f32 %v4263_v48, 0.0 }
 0x39e   : > { %v4266_v47 = vadd.f32 %v9449_v17, %v7872_v43  ;;  %v4771_v59 = vadd.f32 %v9563_v38, %v4770_v45  ;;  %8001 = vmatprep.mubr.msk.bf16.mxu0 %vm1466_vm1, %v4471_v37  ;;  %v5233_v50 = vmax.f32 %v4779_v40, 0.0  ;;  %v4405_v57 = vmax.f32 %v4255_v46, 0.0 }
 0x39f   : > { %v4257_v44 = vpop.f32.mrf.mxu1  ;;  %v7907_v21 = vpop.f32.mrf.mxu0  ;;  %8002 = vmatmul.mubr.msk.bf16.gmra.mxu0 %vm1466_vm1, %v4472_v35 }
 0x3a0   : > { %v5231_v51 = vmax.f32 %v4771_v59, 0.0  ;;  %v4258_v16 = vadd.f32 %v9449_v17, %v4257_v44  ;;  %v4408_v52 = vmax.f32 %v4266_v47, 0.0  ;;  %v5351_v63 = vpack.c.bf16 %v5233_v50, %v5232_v56 }
 0x3a1   : > { %v7875_v54 = vpop.f32.mrf.mxu1  ;;  %v4783_v55 = vpop.f32.mrf.mxu0  ;;  %v4792_v7 = vadd.f32 %v9563_v38, %v7907_v21 }
 0x3a2   : > { %v5350_v58 = vpack.c.bf16 %v5231_v51, %v5230_v49  ;;  %v4406_v42 = vmax.f32 %v4258_v16, 0.0  ;;  %v4784_v2 = vadd.f32 %v9563_v38, %v4783_v55  ;;  %v4474_v6 = vpack.c.bf16 %v4408_v52, %v4407_v60 }
 0x3a3   : > { %v4270_v61 = vpop.f32.mrf.mxu1  ;;  %v7908_v62 = vpop.f32.mrf.mxu0  ;;  %v4279_v29 = vadd.f32 %v9449_v17, %v7875_v54  ;;  %v5236_v19 = vmax.f32 %v4792_v7, 0.0 }
 0x3a4   : > { %v4473_v1 = vpack.c.bf16 %v4406_v42, %v4405_v57  ;;  %v4795_v3 = vadd.f32 %v9563_v38, %v7908_v62  ;;  %8037 = vmatprep.mubr.msk.bf16.mxu1 %vm1466_vm1, %v5350_v58  ;;  %v4271_v9 = vadd.f32 %v9449_v17, %v4270_v61  ;;  %v5234_v13 = vmax.f32 %v4784_v2, 0.0 }
 0x3a5   : > { %v7876_v53 = vpop.f32.mrf.mxu1  ;;  %v4786_v5 = vpop.f32.mrf.mxu0  ;;  %8038 = vmatmul.mubr.msk.bf16.gmra.mxu1 %vm1466_vm1, %v5351_v63  ;;  %v4411_v28 = vmax.f32 %v4279_v29, 0.0 }
 0x3a6   : > { %v4282_v10 = vadd.f32 %v9449_v17, %v7876_v53  ;;  %v4787_v11 = vadd.f32 %v9563_v38, %v4786_v5  ;;  %8005 = vmatprep.mubr.msk.bf16.mxu0 %vm1466_vm1, %v4473_v1  ;;  %v5237_v14 = vmax.f32 %v4795_v3, 0.0  ;;  %v4409_v20 = vmax.f32 %v4271_v9, 0.0 }
 0x3a7   : > { %v4273_v12 = vpop.f32.mrf.mxu1  ;;  %v7911_v18 = vpop.f32.mrf.mxu0  ;;  %8006 = vmatmul.mubr.msk.bf16.gmra.mxu0 %vm1466_vm1, %v4474_v6 }
 0x3a8   : > { %v5235_v15 = vmax.f32 %v4787_v11, 0.0  ;;  %v4274_v4 = vadd.f32 %v9449_v17, %v4273_v12  ;;  %v4412_v23 = vmax.f32 %v4282_v10, 0.0  ;;  %v5353_v25 = vpack.c.bf16 %v5237_v14, %v5236_v19 }
 0x3a9   : > { %v4799_v24 = vpop.f32.mrf.mxu0  ;;  %v4808_v33 = vadd.f32 %v9563_v38, %v7911_v18 }
 0x3aa   : > { %v5352_v0 = vpack.c.bf16 %v5235_v15, %v5234_v13  ;;  %v4410_v22 = vmax.f32 %v4274_v4, 0.0  ;;  %v4800_v31 = vadd.f32 %v9563_v38, %v4799_v24  ;;  %v4476_v17 = vpack.c.bf16 %v4412_v23, %v4411_v28 }
 0x3ab   : > { %v7912_v27 = vpop.f32.mrf.mxu0  ;;  %v5240_v40 = vmax.f32 %v4808_v33, 0.0 }
 0x3ac   : > { %v4475_v26 = vpack.c.bf16 %v4410_v22, %v4409_v20  ;;  %8041 = vmatprep.mubr.msk.bf16.mxu1 %vm1466_vm1, %v5352_v0  ;;  %v4811_v32 = vadd.f32 %v9563_v38, %v7912_v27  ;;  %v5238_v37 = vmax.f32 %v4800_v31, 0.0 }
 0x3ad   : > { %v4802_v8 = vpop.f32.mrf.mxu0  ;;  %8042 = vmatmul.mubr.msk.bf16.gmra.mxu1 %vm1466_vm1, %v5353_v25 }
 0x3ae   : > { %8009 = vmatprep.mubr.msk.bf16.mxu0 %vm1466_vm1, %v4475_v26  ;;  %v4803_v30 = vadd.f32 %v9563_v38, %v4802_v8  ;;  %v5241_v34 = vmax.f32 %v4811_v32, 0.0 }
 0x3af   : > { %v7915_v36 = vpop.f32.mrf.mxu0  ;;  %8010 = vmatmul.mubr.msk.bf16.gmra.mxu0 %vm1466_vm1, %v4476_v17 }
 0x3b0   : > { %v5239_v39 = vmax.f32 %v4803_v30, 0.0  ;;  %v5355_v43 = vpack.c.bf16 %v5241_v34, %v5240_v40  ;;  %v4824_v59 = vadd.f32 %v9563_v38, %v7915_v36 }
 0x3b1   : > { %v4815_v35 = vpop.f32.mrf.mxu0 }
 0x3b2   : > { %v5354_v41 = vpack.c.bf16 %v5239_v39, %v5238_v37  ;;  %v4816_v46 = vadd.f32 %v9563_v38, %v4815_v35  ;;  %v5244_v16 = vmax.f32 %v4824_v59, 0.0 }
 0x3b3   : > { %v7916_v45 = vpop.f32.mrf.mxu0 }
 0x3b4   : > { %v4827_v47 = vadd.f32 %v9563_v38, %v7916_v45  ;;  %8045 = vmatprep.mubr.msk.bf16.mxu1 %vm1466_vm1, %v5354_v41  ;;  %v5242_v50 = vmax.f32 %v4816_v46, 0.0 }
 0x3b5   : > { %v4818_v48 = vpop.f32.mrf.mxu0  ;;  %8046 = vmatmul.mubr.msk.bf16.gmra.mxu1 %vm1466_vm1, %v5355_v43 }
 0x3b6   : > { %v4819_v44 = vadd.f32 %v9563_v38, %v4818_v48  ;;  %v5245_v21 = vmax.f32 %v4827_v47, 0.0 }
 0x3b7   : > { %v7919_v49 = vpop.f32.mrf.mxu0 }
 0x3b8   : > { %v5243_v51 = vmax.f32 %v4819_v44, 0.0  ;;  %v5357_v55 = vpack.c.bf16 %v5245_v21, %v5244_v16  ;;  %v4840_v42 = vadd.f32 %v9563_v38, %v7919_v49 }
 0x3b9   : > { %v4831_v52 = vpop.f32.mrf.mxu0 }
 0x3ba   : > { %v5356_v54 = vpack.c.bf16 %v5243_v51, %v5242_v50  ;;  %v4832_v57 = vadd.f32 %v9563_v38, %v4831_v52  ;;  %v5248_v3 = vmax.f32 %v4840_v42, 0.0 }
 0x3bb   : > { %v7920_v56 = vpop.f32.mrf.mxu0 }
 0x3bc   : > { %v4843_v58 = vadd.f32 %v9563_v38, %v7920_v56  ;;  %8049 = vmatprep.mubr.msk.bf16.mxu1 %vm1466_vm1, %v5356_v54  ;;  %v5246_v1 = vmax.f32 %v4832_v57, 0.0 }
 0x3bd   : > { %v4834_v60 = vpop.f32.mrf.mxu0  ;;  %8050 = vmatmul.mubr.msk.bf16.gmra.mxu1 %vm1466_vm1, %v5357_v55 }
 0x3be   : > { %v4835_v61 = vadd.f32 %v9563_v38, %v4834_v60  ;;  %v5249_v62 = vmax.f32 %v4843_v58, 0.0 }
 0x3bf   : > { %v7923_v63 = vpop.f32.mrf.mxu0 }
 0x3c0   : > { %v5247_v2 = vmax.f32 %v4835_v61, 0.0  ;;  %v5359_v53 = vpack.c.bf16 %v5249_v62, %v5248_v3  ;;  %v4856_v11 = vadd.f32 %v9563_v38, %v7923_v63 }
 0x3c1   : > { %v4847_v6 = vpop.f32.mrf.mxu0 }
 0x3c2   : > { %v5358_v7 = vpack.c.bf16 %v5247_v2, %v5246_v1  ;;  %v4848_v9 = vadd.f32 %v9563_v38, %v4847_v6  ;;  %v5252_v18 = vmax.f32 %v4856_v11, 0.0 }
 0x3c3   : > { %v7924_v5 = vpop.f32.mrf.mxu0 }
 0x3c4   : > { %v4859_v10 = vadd.f32 %v9563_v38, %v7924_v5  ;;  %8053 = vmatprep.mubr.msk.bf16.mxu1 %vm1466_vm1, %v5358_v7  ;;  %v5250_v15 = vmax.f32 %v4848_v9, 0.0 }
 0x3c5   : > { %v4850_v29 = vpop.f32.mrf.mxu0  ;;  %8054 = vmatmul.mubr.msk.bf16.gmra.mxu1 %vm1466_vm1, %v5359_v53 }
 0x3c6   : > { %v4851_v12 = vadd.f32 %v9563_v38, %v4850_v29  ;;  %v5253_v13 = vmax.f32 %v4859_v10, 0.0 }
 0x3c7   : > { %v7927_v14 = vpop.f32.mrf.mxu0 }
 0x3c8   : > { %v5251_v4 = vmax.f32 %v4851_v12, 0.0  ;;  %v5361_v23 = vpack.c.bf16 %v5253_v13, %v5252_v18  ;;  %v4872_v28 = vadd.f32 %v9563_v38, %v7927_v14 }
 0x3c9   : > { %v4863_v19 = vpop.f32.mrf.mxu0 }
 0x3ca   : > { %v5360_v20 = vpack.c.bf16 %v5251_v4, %v5250_v15  ;;  %v4864_v22 = vadd.f32 %v9563_v38, %v4863_v19  ;;  %v5256_v33 = vmax.f32 %v4872_v28, 0.0 }
 0x3cb   : > { %v7928_v0 = vpop.f32.mrf.mxu0 }
 0x3cc   : > { %v4875_v24 = vadd.f32 %v9563_v38, %v7928_v0  ;;  %8057 = vmatprep.mubr.msk.bf16.mxu1 %vm1466_vm1, %v5360_v20  ;;  %v5254_v32 = vmax.f32 %v4864_v22, 0.0 }
 0x3cd   : > { %v4866_v25 = vpop.f32.mrf.mxu0  ;;  %8058 = vmatmul.mubr.msk.bf16.gmra.mxu1 %vm1466_vm1, %v5361_v23 }
 0x3ce   : > { %v4867_v26 = vadd.f32 %v9563_v38, %v4866_v25  ;;  %v5257_v27 = vmax.f32 %v4875_v24, 0.0 }
 0x3cf   : > { %v7931_v31 = vpop.f32.mrf.mxu0 }
 0x3d0   : > { %v5255_v17 = vmax.f32 %v4867_v26, 0.0  ;;  %v5363_v34 = vpack.c.bf16 %v5257_v27, %v5256_v33  ;;  %v4888_v40 = vadd.f32 %v9563_v38, %v7931_v31 }
 0x3d1   : > { %v4879_v8 = vpop.f32.mrf.mxu0 }
 0x3d2   : > { %v5362_v30 = vpack.c.bf16 %v5255_v17, %v5254_v32  ;;  %v4880_v37 = vadd.f32 %v9563_v38, %v4879_v8  ;;  %v5260_v59 = vmax.f32 %v4888_v40, 0.0 }
 0x3d3   : > { %v7932_v36 = vpop.f32.mrf.mxu0 }
 0x3d4   : > { %v4891_v39 = vadd.f32 %v9563_v38, %v7932_v36  ;;  %8061 = vmatprep.mubr.msk.bf16.mxu1 %vm1466_vm1, %v5362_v30  ;;  %v5258_v46 = vmax.f32 %v4880_v37, 0.0 }
 0x3d5   : > { %v4882_v35 = vpop.f32.mrf.mxu0  ;;  %8062 = vmatmul.mubr.msk.bf16.gmra.mxu1 %vm1466_vm1, %v5363_v34 }
 0x3d6   : > { %v4883_v41 = vadd.f32 %v9563_v38, %v4882_v35  ;;  %v5261_v43 = vmax.f32 %v4891_v39, 0.0 }
 0x3d7   : > { %v7935_v45 = vpop.f32.mrf.mxu0 }
 0x3d8   : > { %v5259_v47 = vmax.f32 %v4883_v41, 0.0  ;;  %v5365_v21 = vpack.c.bf16 %v5261_v43, %v5260_v59  ;;  %v4904_v16 = vadd.f32 %v9563_v38, %v7935_v45 }
 0x3d9   : > { %v4895_v48 = vpop.f32.mrf.mxu0 }
 0x3da   : > { %v5364_v44 = vpack.c.bf16 %v5259_v47, %v5258_v46  ;;  %v4896_v50 = vadd.f32 %v9563_v38, %v4895_v48  ;;  %v5264_v42 = vmax.f32 %v4904_v16, 0.0 }
 0x3db   : > { %v7936_v49 = vpop.f32.mrf.mxu0 }
 0x3dc   : > { %v4907_v51 = vadd.f32 %v9563_v38, %v7936_v49  ;;  %8065 = vmatprep.mubr.msk.bf16.mxu1 %vm1466_vm1, %v5364_v44  ;;  %v5262_v57 = vmax.f32 %v4896_v50, 0.0 }
 0x3dd   : > { %v4898_v52 = vpop.f32.mrf.mxu0  ;;  %8066 = vmatmul.mubr.msk.bf16.gmra.mxu1 %vm1466_vm1, %v5365_v21 }
 0x3de   : > { %v4899_v54 = vadd.f32 %v9563_v38, %v4898_v52  ;;  %v5265_v55 = vmax.f32 %v4907_v51, 0.0 }
 0x3df   : > { %v7939_v56 = vpop.f32.mrf.mxu0 }
 0x3e0   : > { %v5263_v58 = vmax.f32 %v4899_v54, 0.0  ;;  %v5367_v62 = vpack.c.bf16 %v5265_v55, %v5264_v42  ;;  %v4920_v3 = vadd.f32 %v9563_v38, %v7939_v56 }
 0x3e1   : > { %v4911_v60 = vpop.f32.mrf.mxu0 }
 0x3e2   : > { %v5366_v61 = vpack.c.bf16 %v5263_v58, %v5262_v57  ;;  %v4912_v1 = vadd.f32 %v9563_v38, %v4911_v60  ;;  %v5268_v11 = vmax.f32 %v4920_v3, 0.0 }
 0x3e3   : > { %v7940_v63 = vpop.f32.mrf.mxu0 }
 0x3e4   : > { %v4923_v2 = vadd.f32 %v9563_v38, %v7940_v63  ;;  %8069 = vmatprep.mubr.msk.bf16.mxu1 %vm1466_vm1, %v5366_v61  ;;  %v5266_v9 = vmax.f32 %v4912_v1, 0.0 }
 0x3e5   : > { %v4914_v6 = vpop.f32.mrf.mxu0  ;;  %8070 = vmatmul.mubr.msk.bf16.gmra.mxu1 %vm1466_vm1, %v5367_v62 }
 0x3e6   : > { %v4915_v7 = vadd.f32 %v9563_v38, %v4914_v6  ;;  %v5269_v53 = vmax.f32 %v4923_v2, 0.0 }
 0x3e7   : > { %v7943_v5 = vpop.f32.mrf.mxu0 }
 0x3e8   : > { %v5267_v10 = vmax.f32 %v4915_v7, 0.0  ;;  %v5369_v13 = vpack.c.bf16 %v5269_v53, %v5268_v11  ;;  %v4936_v18 = vadd.f32 %v9563_v38, %v7943_v5 }
 0x3e9   : > { %v4927_v29 = vpop.f32.mrf.mxu0 }
 0x3ea   : > { %v5368_v12 = vpack.c.bf16 %v5267_v10, %v5266_v9  ;;  %v4928_v15 = vadd.f32 %v9563_v38, %v4927_v29  ;;  %v5272_v28 = vmax.f32 %v4936_v18, 0.0 }
 0x3eb   : > { %v7944_v14 = vpop.f32.mrf.mxu0 }
 0x3ec   : > { %v4939_v4 = vadd.f32 %v9563_v38, %v7944_v14  ;;  %8073 = vmatprep.mubr.msk.bf16.mxu1 %vm1466_vm1, %v5368_v12  ;;  %v5270_v22 = vmax.f32 %v4928_v15, 0.0 }
 0x3ed   : > { %v4930_v19 = vpop.f32.mrf.mxu0  ;;  %8074 = vmatmul.mubr.msk.bf16.gmra.mxu1 %vm1466_vm1, %v5369_v13 }
 0x3ee   : > { %v4931_v20 = vadd.f32 %v9563_v38, %v4930_v19  ;;  %v5273_v23 = vmax.f32 %v4939_v4, 0.0 }
 0x3ef   : > { %v7947_v0 = vpop.f32.mrf.mxu0 }
 0x3f0   : > { %v5271_v24 = vmax.f32 %v4931_v20, 0.0  ;;  %v5371_v27 = vpack.c.bf16 %v5273_v23, %v5272_v28  ;;  %v4952_v33 = vadd.f32 %v9563_v38, %v7947_v0 }
 0x3f1   : > { %v4943_v25 = vpop.f32.mrf.mxu0 }
 0x3f2   : > { %v5370_v26 = vpack.c.bf16 %v5271_v24, %v5270_v22  ;;  %v4944_v32 = vadd.f32 %v9563_v38, %v4943_v25  ;;  %v5276_v40 = vmax.f32 %v4952_v33, 0.0 }
 0x3f3   : > { %v7948_v31 = vpop.f32.mrf.mxu0 }
 0x3f4   : > { %v4955_v17 = vadd.f32 %v9563_v38, %v7948_v31  ;;  %8077 = vmatprep.mubr.msk.bf16.mxu1 %vm1466_vm1, %v5370_v26  ;;  %v5274_v37 = vmax.f32 %v4944_v32, 0.0 }
 0x3f5   : > { %v4946_v8 = vpop.f32.mrf.mxu0  ;;  %8078 = vmatmul.mubr.msk.bf16.gmra.mxu1 %vm1466_vm1, %v5371_v27 }
 0x3f6   : > { %v4947_v30 = vadd.f32 %v9563_v38, %v4946_v8  ;;  %v5277_v34 = vmax.f32 %v4955_v17, 0.0 }
 0x3f7   : > { %v7951_v36 = vpop.f32.mrf.mxu0 }
 0x3f8   : > { %v5275_v39 = vmax.f32 %v4947_v30, 0.0  ;;  %v5373_v43 = vpack.c.bf16 %v5277_v34, %v5276_v40  ;;  %v4968_v59 = vadd.f32 %v9563_v38, %v7951_v36 }
 0x3f9   : > { %v4959_v35 = vpop.f32.mrf.mxu0 }
 0x3fa   : > { %v5372_v41 = vpack.c.bf16 %v5275_v39, %v5274_v37  ;;  %v4960_v46 = vadd.f32 %v9563_v38, %v4959_v35  ;;  %v5280_v16 = vmax.f32 %v4968_v59, 0.0 }
 0x3fb   : > { %v7952_v45 = vpop.f32.mrf.mxu0 }
 0x3fc   : > { %v4971_v47 = vadd.f32 %v9563_v38, %v7952_v45  ;;  %8081 = vmatprep.mubr.msk.bf16.mxu1 %vm1466_vm1, %v5372_v41  ;;  %v5278_v50 = vmax.f32 %v4960_v46, 0.0 }
 0x3fd   : > { %v4962_v48 = vpop.f32.mrf.mxu0  ;;  %8082 = vmatmul.mubr.msk.bf16.gmra.mxu1 %vm1466_vm1, %v5373_v43 }
 0x3fe   : > { %v4963_v44 = vadd.f32 %v9563_v38, %v4962_v48  ;;  %v5281_v21 = vmax.f32 %v4971_v47, 0.0 }
 0x3ff   : > { %v7955_v49 = vpop.f32.mrf.mxu0 }
 0x400   : > { %v5279_v51 = vmax.f32 %v4963_v44, 0.0  ;;  %v5375_v55 = vpack.c.bf16 %v5281_v21, %v5280_v16  ;;  %v4984_v42 = vadd.f32 %v9563_v38, %v7955_v49 }
 0x401   : > { %v4975_v52 = vpop.f32.mrf.mxu0 }
 0x402   : > { %v5374_v54 = vpack.c.bf16 %v5279_v51, %v5278_v50  ;;  %v4976_v57 = vadd.f32 %v9563_v38, %v4975_v52  ;;  %v5284_v3 = vmax.f32 %v4984_v42, 0.0 }
 0x403   : > { %v7956_v56 = vpop.f32.mrf.mxu0 }
 0x404   : > { %v4987_v58 = vadd.f32 %v9563_v38, %v7956_v56  ;;  %8085 = vmatprep.mubr.msk.bf16.mxu1 %vm1466_vm1, %v5374_v54  ;;  %v5282_v1 = vmax.f32 %v4976_v57, 0.0 }
 0x405   : > { %v4978_v60 = vpop.f32.mrf.mxu0  ;;  %8086 = vmatmul.mubr.msk.bf16.gmra.mxu1 %vm1466_vm1, %v5375_v55 }
 0x406   : > { %v4979_v61 = vadd.f32 %v9563_v38, %v4978_v60  ;;  %v5285_v62 = vmax.f32 %v4987_v58, 0.0 }
 0x407   : > { %v7959_v63 = vpop.f32.mrf.mxu0 }
 0x408   : > { %v5283_v2 = vmax.f32 %v4979_v61, 0.0  ;;  %v5377_v53 = vpack.c.bf16 %v5285_v62, %v5284_v3  ;;  %v5000_v11 = vadd.f32 %v9563_v38, %v7959_v63 }
 0x409   : > { %v4991_v6 = vpop.f32.mrf.mxu0 }
 0x40a   : > { %v5376_v7 = vpack.c.bf16 %v5283_v2, %v5282_v1  ;;  %v4992_v9 = vadd.f32 %v9563_v38, %v4991_v6  ;;  %v5288_v18 = vmax.f32 %v5000_v11, 0.0 }
 0x40b   : > { %v7960_v5 = vpop.f32.mrf.mxu0 }
 0x40c   : > { %v5003_v10 = vadd.f32 %v9563_v38, %v7960_v5  ;;  %8089 = vmatprep.mubr.msk.bf16.mxu1 %vm1466_vm1, %v5376_v7  ;;  %v5286_v15 = vmax.f32 %v4992_v9, 0.0 }
 0x40d   : > { %v4994_v29 = vpop.f32.mrf.mxu0  ;;  %8090 = vmatmul.mubr.msk.bf16.gmra.mxu1 %vm1466_vm1, %v5377_v53 }
 0x40e   : > { %v4995_v12 = vadd.f32 %v9563_v38, %v4994_v29  ;;  %v5289_v13 = vmax.f32 %v5003_v10, 0.0 }
 0x40f   : > { %v7963_v14 = vpop.f32.mrf.mxu0 }
 0x410   : > { %v5287_v4 = vmax.f32 %v4995_v12, 0.0  ;;  %v5379_v23 = vpack.c.bf16 %v5289_v13, %v5288_v18  ;;  %v5016_v28 = vadd.f32 %v9563_v38, %v7963_v14 }
 0x411   : > { %v5007_v19 = vpop.f32.mrf.mxu0 }
 0x412   : > { %v5378_v20 = vpack.c.bf16 %v5287_v4, %v5286_v15  ;;  %v5008_v22 = vadd.f32 %v9563_v38, %v5007_v19  ;;  %v5292_v33 = vmax.f32 %v5016_v28, 0.0 }
 0x413   : > { %v7964_v0 = vpop.f32.mrf.mxu0 }
 0x414   : > { %v5019_v24 = vadd.f32 %v9563_v38, %v7964_v0  ;;  %8093 = vmatprep.mubr.msk.bf16.mxu1 %vm1466_vm1, %v5378_v20  ;;  %v5290_v32 = vmax.f32 %v5008_v22, 0.0 }
 0x415   : > { %v5010_v25 = vpop.f32.mrf.mxu0  ;;  %8094 = vmatmul.mubr.msk.bf16.gmra.mxu1 %vm1466_vm1, %v5379_v23 }
 0x416   : > { %v5011_v26 = vadd.f32 %v9563_v38, %v5010_v25  ;;  %v5293_v27 = vmax.f32 %v5019_v24, 0.0 }
 0x417   : > { %v7967_v31 = vpop.f32.mrf.mxu0 }
 0x418   : > { %v5291_v17 = vmax.f32 %v5011_v26, 0.0  ;;  %v5381_v34 = vpack.c.bf16 %v5293_v27, %v5292_v33  ;;  %v5032_v40 = vadd.f32 %v9563_v38, %v7967_v31 }
 0x419   : > { %v5023_v8 = vpop.f32.mrf.mxu0 }
 0x41a   : > { %v5380_v30 = vpack.c.bf16 %v5291_v17, %v5290_v32  ;;  %v5024_v37 = vadd.f32 %v9563_v38, %v5023_v8  ;;  %v5296_v59 = vmax.f32 %v5032_v40, 0.0 }
 0x41b   : > { %v7968_v36 = vpop.f32.mrf.mxu0 }
 0x41c   : > { %v5035_v39 = vadd.f32 %v9563_v38, %v7968_v36  ;;  %8097 = vmatprep.mubr.msk.bf16.mxu1 %vm1466_vm1, %v5380_v30  ;;  %v5294_v46 = vmax.f32 %v5024_v37, 0.0 }
 0x41d   : > { %v5026_v35 = vpop.f32.mrf.mxu0  ;;  %8098 = vmatmul.mubr.msk.bf16.gmra.mxu1 %vm1466_vm1, %v5381_v34 }
 0x41e   : > { %v5027_v41 = vadd.f32 %v9563_v38, %v5026_v35  ;;  %v5297_v43 = vmax.f32 %v5035_v39, 0.0 }
 0x41f   : > { %v7971_v45 = vpop.f32.mrf.mxu0 }
 0x420   : > { %v5295_v47 = vmax.f32 %v5027_v41, 0.0  ;;  %v5383_v21 = vpack.c.bf16 %v5297_v43, %v5296_v59  ;;  %v5048_v16 = vadd.f32 %v9563_v38, %v7971_v45 }
 0x421   : > { %v5039_v48 = vpop.f32.mrf.mxu0 }
 0x422   : > { %v5382_v44 = vpack.c.bf16 %v5295_v47, %v5294_v46  ;;  %v5040_v50 = vadd.f32 %v9563_v38, %v5039_v48  ;;  %v5300_v42 = vmax.f32 %v5048_v16, 0.0  ;;  %v9763_v46 = vld [vmem:[%s10012_s4] ss:$0 sm:$0xff] }
 0x423   : > { %v7972_v49 = vpop.f32.mrf.mxu0 }
 0x424   : > { %v5051_v51 = vadd.f32 %v9563_v38, %v7972_v49  ;;  %8101 = vmatprep.mubr.msk.bf16.mxu1 %vm1466_vm1, %v5382_v44  ;;  %v5298_v57 = vmax.f32 %v5040_v50, 0.0 }
 0x425   : > { %v5042_v52 = vpop.f32.mrf.mxu0  ;;  %8102 = vmatmul.mubr.msk.bf16.gmra.mxu1 %vm1466_vm1, %v5383_v21 }
 0x426   : > { %v5043_v54 = vadd.f32 %v9563_v38, %v5042_v52  ;;  %v5301_v55 = vmax.f32 %v5051_v51, 0.0 }
 0x427   : > { %v7975_v56 = vpop.f32.mrf.mxu0 }
 0x428   : > { %v5299_v58 = vmax.f32 %v5043_v54, 0.0  ;;  %v5385_v62 = vpack.c.bf16 %v5301_v55, %v5300_v42  ;;  %v5064_v3 = vadd.f32 %v9563_v38, %v7975_v56 }
 0x429   : > { %v5055_v60 = vpop.f32.mrf.mxu0 }
 0x42a   : > { %v5384_v61 = vpack.c.bf16 %v5299_v58, %v5298_v57  ;;  %v5056_v1 = vadd.f32 %v9563_v38, %v5055_v60  ;;  %v5304_v11 = vmax.f32 %v5064_v3, 0.0 }
 0x42b   : > { %v7976_v63 = vpop.f32.mrf.mxu0 }
 0x42c   : > { %v5067_v2 = vadd.f32 %v9563_v38, %v7976_v63  ;;  %8105 = vmatprep.mubr.msk.bf16.mxu1 %vm1466_vm1, %v5384_v61  ;;  %v5302_v9 = vmax.f32 %v5056_v1, 0.0  ;;  %v9774_v61 = vld [vmem:[%s10014_s6] ss:$0 sm:$0xff] }
 0x42d   : > { %v5058_v6 = vpop.f32.mrf.mxu0  ;;  %8106 = vmatmul.mubr.msk.bf16.gmra.mxu1 %vm1466_vm1, %v5385_v62 }
 0x42e   : > { %v5059_v7 = vadd.f32 %v9563_v38, %v5058_v6  ;;  %v5305_v53 = vmax.f32 %v5067_v2, 0.0 }
 0x42f   : > { %v7979_v5 = vpop.f32.mrf.mxu0 }
 0x430   : > { %v5303_v10 = vmax.f32 %v5059_v7, 0.0  ;;  %v5387_v13 = vpack.c.bf16 %v5305_v53, %v5304_v11  ;;  %v5080_v18 = vadd.f32 %v9563_v38, %v7979_v5 }
 0x431   : > { %v5071_v29 = vpop.f32.mrf.mxu0 }
 0x432   : > { %v5386_v12 = vpack.c.bf16 %v5303_v10, %v5302_v9  ;;  %v5072_v15 = vadd.f32 %v9563_v38, %v5071_v29  ;;  %v5308_v28 = vmax.f32 %v5080_v18, 0.0 }
 0x433   : > { %v7980_v14 = vpop.f32.mrf.mxu0 }
 0x434   : > { %v5083_v4 = vadd.f32 %v9563_v38, %v7980_v14  ;;  %8109 = vmatprep.mubr.msk.bf16.mxu1 %vm1466_vm1, %v5386_v12  ;;  %v5306_v22 = vmax.f32 %v5072_v15, 0.0 }
 0x435   : > { %v5074_v19 = vpop.f32.mrf.mxu0  ;;  %8110 = vmatmul.mubr.msk.bf16.gmra.mxu1 %vm1466_vm1, %v5387_v13 }
 0x436   : > { %v5075_v20 = vadd.f32 %v9563_v38, %v5074_v19  ;;  %v5309_v23 = vmax.f32 %v5083_v4, 0.0 }
 0x437   : > { %v7983_v0 = vpop.f32.mrf.mxu0 }
 0x438   : > { %v5307_v24 = vmax.f32 %v5075_v20, 0.0  ;;  %v5389_v27 = vpack.c.bf16 %v5309_v23, %v5308_v28  ;;  %v5096_v33 = vadd.f32 %v9563_v38, %v7983_v0 }
 0x439   : > { %v5087_v25 = vpop.f32.mrf.mxu0 }
 0x43a   : > { %v5388_v26 = vpack.c.bf16 %v5307_v24, %v5306_v22  ;;  %v5088_v32 = vadd.f32 %v9563_v38, %v5087_v25  ;;  %v5312_v40 = vmax.f32 %v5096_v33, 0.0 }
 0x43b   : > { %v7984_v31 = vpop.f32.mrf.mxu0 }
 0x43c   : > { %v5099_v17 = vadd.f32 %v9563_v38, %v7984_v31  ;;  %8113 = vmatprep.mubr.msk.bf16.mxu1 %vm1466_vm1, %v5388_v26  ;;  %v5310_v37 = vmax.f32 %v5088_v32, 0.0 }
 0x43d   : > { %v5090_v8 = vpop.f32.mrf.mxu0  ;;  %8114 = vmatmul.mubr.msk.bf16.gmra.mxu1 %vm1466_vm1, %v5389_v27 }
 0x43e   : > { %v5091_v30 = vadd.f32 %v9563_v38, %v5090_v8  ;;  %v5313_v34 = vmax.f32 %v5099_v17, 0.0 }
 0x43f   : > { %v7987_v36 = vpop.f32.mrf.mxu0 }
 0x440   : > { %v5311_v39 = vmax.f32 %v5091_v30, 0.0  ;;  %v5391_v43 = vpack.c.bf16 %v5313_v34, %v5312_v40  ;;  %v5112_v38 = vadd.f32 %v9763_v46, %v7987_v36 }
 0x441   : > { %v5103_v35 = vpop.f32.mrf.mxu0 }
 0x442   : > { %v5390_v41 = vpack.c.bf16 %v5311_v39, %v5310_v37  ;;  %v5104_v47 = vadd.f32 %v9763_v46, %v5103_v35  ;;  %v5316_v54 = vmax.f32 %v5112_v38, 0.0 }
 0x443   : > { %v7988_v45 = vpop.f32.mrf.mxu0 }
 0x444   : > { %v5115_v59 = vadd.f32 %v9763_v46, %v7988_v45  ;;  %8117 = vmatprep.mubr.msk.bf16.mxu1 %vm1466_vm1, %v5390_v41  ;;  %v5314_v16 = vmax.f32 %v5104_v47, 0.0 }
 0x445   : > { %v5106_v48 = vpop.f32.mrf.mxu0  ;;  %v8023_v44 = vpop.f32.mrf.mxu1  ;;  %8118 = vmatmul.mubr.msk.bf16.gmra.mxu1 %vm1466_vm1, %v5391_v43 }
 0x446   : > { %v5107_v21 = vadd.f32 %v9763_v46, %v5106_v48  ;;  %v5317_v49 = vmax.f32 %v5115_v59, 0.0  ;;  %v5641_v53 = vadd.f32 %v9774_v61, %v8023_v44 }
 0x447   : > { %v7991_v50 = vpop.f32.mrf.mxu0  ;;  %v5632_v51 = vpop.f32.mrf.mxu1 }
 0x448   : > { %v5315_v52 = vmax.f32 %v5107_v21, 0.0  ;;  %v5393_v58 = vpack.c.bf16 %v5317_v49, %v5316_v54  ;;  %v5633_v62 = vadd.f32 %v9774_v61, %v5632_v51  ;;  %v5128_v3 = vadd.f32 %v9763_v46, %v7991_v50 }
 0x449   : > { %v5119_v55 = vpop.f32.mrf.mxu0  ;;  %v8024_v56 = vpop.f32.mrf.mxu1 }
 0x44a   : > { %v5392_v57 = vpack.c.bf16 %v5315_v52, %v5314_v16  ;;  %v5120_v63 = vadd.f32 %v9763_v46, %v5119_v55  ;;  %v5644_v13 = vadd.f32 %v9774_v61, %v8024_v56  ;;  %v5320_v4 = vmax.f32 %v5128_v3, 0.0 }
 0x44b   : > { %v7992_v42 = vpop.f32.mrf.mxu0  ;;  %v5635_v60 = vpop.f32.mrf.mxu1 }
 0x44c   : > { %v5131_v1 = vadd.f32 %v9763_v46, %v7992_v42  ;;  %v5636_v2 = vadd.f32 %v9774_v61, %v5635_v60  ;;  %8121 = vmatprep.mubr.msk.bf16.mxu1 %vm1466_vm1, %v5392_v57  ;;  %v5318_v12 = vmax.f32 %v5120_v63, 0.0 }
 0x44d   : > { %v5122_v6 = vpop.f32.mrf.mxu0  ;;  %v8027_v7 = vpop.f32.mrf.mxu1  ;;  %8122 = vmatmul.mubr.msk.bf16.gmra.mxu1 %vm1466_vm1, %v5393_v58 }
 0x44e   : > { %v6143_v5 = vmax.f32 %v5633_v62, %v5636_v2  ;;  %v5123_v9 = vadd.f32 %v9763_v46, %v5122_v6  ;;  %v5321_v10 = vmax.f32 %v5131_v1, 0.0  ;;  %v5657_v8 = vadd.f32 %v9774_v61, %v8027_v7 }
 0x44f   : > { %v7995_v11 = vpop.f32.mrf.mxu0  ;;  %v5648_v29 = vpop.f32.mrf.mxu1 }
 0x450   : > { %v6144_v14 = vmax.f32 %v6143_v5, %v5641_v53  ;;  %v5319_v15 = vmax.f32 %v5123_v9, 0.0  ;;  %v5649_v23 = vadd.f32 %v9774_v61, %v5648_v29  ;;  %v5395_v22 = vpack.c.bf16 %v5321_v10, %v5320_v4 }
 0x451   : > { %v5135_v18 = vpop.f32.mrf.mxu0  ;;  %v8028_v19 = vpop.f32.mrf.mxu1  ;;  %v5144_v32 = vadd.f32 %v9763_v46, %v7995_v11 }
 0x452   : > { %v5394_v20 = vpack.c.bf16 %v5319_v15, %v5318_v12  ;;  %v6145_v0 = vmax.f32 %v6144_v14, %v5644_v13  ;;  %v5136_v26 = vadd.f32 %v9763_v46, %v5135_v18  ;;  %v5660_v35 = vadd.f32 %v9774_v61, %v8028_v19 }
 0x453   : > { %v7996_v24 = vpop.f32.mrf.mxu0  ;;  %v5651_v28 = vpop.f32.mrf.mxu1  ;;  %v5324_v45 = vmax.f32 %v5144_v32, 0.0 }
 0x454   : > { %v6146_v25 = vmax.f32 %v6145_v0, %v5649_v23  ;;  %v5147_v27 = vadd.f32 %v9763_v46, %v7996_v24  ;;  %v5652_v31 = vadd.f32 %v9774_v61, %v5651_v28  ;;  %8125 = vmatprep.mubr.msk.bf16.mxu1 %vm1466_vm1, %v5394_v20  ;;  %v5322_v40 = vmax.f32 %v5136_v26, 0.0 }
 0x455   : > { %v5138_v17 = vpop.f32.mrf.mxu0  ;;  %v8031_v33 = vpop.f32.mrf.mxu1  ;;  %8126 = vmatmul.mubr.msk.bf16.gmra.mxu1 %vm1466_vm1, %v5395_v22 }
 0x456   : > { %v6147_v30 = vmax.f32 %v6146_v25, %v5652_v31  ;;  %v5139_v34 = vadd.f32 %v9763_v46, %v5138_v17  ;;  %v5325_v36 = vmax.f32 %v5147_v27, 0.0  ;;  %v5673_v58 = vadd.f32 %v9774_v61, %v8031_v33 }
 0x457   : > { %v7999_v37 = vpop.f32.mrf.mxu0  ;;  %v5664_v39 = vpop.f32.mrf.mxu1 }
 0x458   : > { %v6148_v41 = vmax.f32 %v6147_v30, %v5657_v8  ;;  %v5323_v43 = vmax.f32 %v5139_v34, 0.0  ;;  %v5665_v48 = vadd.f32 %v9774_v61, %v5664_v39  ;;  %v5397_v21 = vpack.c.bf16 %v5325_v36, %v5324_v45 }
 0x459   : > { %v5151_v47 = vpop.f32.mrf.mxu0  ;;  %v8032_v59 = vpop.f32.mrf.mxu1  ;;  %v5160_v55 = vadd.f32 %v9763_v46, %v7999_v37 }
 0x45a   : > { %v5396_v38 = vpack.c.bf16 %v5323_v43, %v5322_v40  ;;  %v6149_v44 = vmax.f32 %v6148_v41, %v5660_v35  ;;  %v5152_v16 = vadd.f32 %v9763_v46, %v5151_v47  ;;  %v5676_v3 = vadd.f32 %v9774_v61, %v8032_v59 }
 0x45b   : > { %v8000_v49 = vpop.f32.mrf.mxu0  ;;  %v5667_v50 = vpop.f32.mrf.mxu1  ;;  %v5328_v53 = vmax.f32 %v5160_v55, 0.0 }
 0x45c   : > { %v6150_v51 = vmax.f32 %v6149_v44, %v5665_v48  ;;  %v5163_v52 = vadd.f32 %v9763_v46, %v8000_v49  ;;  %v5668_v54 = vadd.f32 %v9774_v61, %v5667_v50  ;;  %8129 = vmatprep.mubr.msk.bf16.mxu1 %vm1466_vm1, %v5396_v38  ;;  %v5326_v2 = vmax.f32 %v5152_v16, 0.0 }
 0x45d   : > { %v5154_v56 = vpop.f32.mrf.mxu0  ;;  %v8035_v57 = vpop.f32.mrf.mxu1  ;;  %8130 = vmatmul.mubr.msk.bf16.gmra.mxu1 %vm1466_vm1, %v5397_v21 }
 0x45e   : > { %v6151_v42 = vmax.f32 %v6150_v51, %v5668_v54  ;;  %v5155_v60 = vadd.f32 %v9763_v46, %v5154_v56  ;;  %v5329_v62 = vmax.f32 %v5163_v52, 0.0  ;;  %v5689_v22 = vadd.f32 %v9774_v61, %v8035_v57 }
 0x45f   : > { %v8003_v63 = vpop.f32.mrf.mxu0  ;;  %v5680_v1 = vpop.f32.mrf.mxu1 }
 0x460   : > { %v6152_v6 = vmax.f32 %v6151_v42, %v5673_v58  ;;  %v5327_v7 = vmax.f32 %v5155_v60, 0.0  ;;  %v5681_v11 = vadd.f32 %v9774_v61, %v5680_v1  ;;  %v5399_v12 = vpack.c.bf16 %v5329_v62, %v5328_v53 }
 0x461   : > { %v5167_v5 = vpop.f32.mrf.mxu0  ;;  %v8036_v9 = vpop.f32.mrf.mxu1  ;;  %v5176_v20 = vadd.f32 %v9763_v46, %v8003_v63 }
 0x462   : > { %v5398_v10 = vpack.c.bf16 %v5327_v7, %v5326_v2  ;;  %v6153_v29 = vmax.f32 %v6152_v6, %v5676_v3  ;;  %v5168_v4 = vadd.f32 %v9763_v46, %v5167_v5  ;;  %v5692_v32 = vadd.f32 %v9774_v61, %v8036_v9 }
 0x463   : > { %v8004_v13 = vpop.f32.mrf.mxu0  ;;  %v5683_v14 = vpop.f32.mrf.mxu1  ;;  %v5332_v8 = vmax.f32 %v5176_v20, 0.0 }
 0x464   : > { %v6154_v15 = vmax.f32 %v6153_v29, %v5681_v11  ;;  %v5179_v18 = vadd.f32 %v9763_v46, %v8004_v13  ;;  %v5684_v19 = vadd.f32 %v9774_v61, %v5683_v14  ;;  %8133 = vmatprep.mubr.msk.bf16.mxu1 %vm1466_vm1, %v5398_v10  ;;  %v5330_v31 = vmax.f32 %v5168_v4, 0.0 }
 0x465   : > { %v5170_v23 = vpop.f32.mrf.mxu0  ;;  %v8039_v0 = vpop.f32.mrf.mxu1  ;;  %8134 = vmatmul.mubr.msk.bf16.gmra.mxu1 %vm1466_vm1, %v5399_v12 }
 0x466   : > { %v6155_v24 = vmax.f32 %v6154_v15, %v5684_v19  ;;  %v5171_v28 = vadd.f32 %v9763_v46, %v5170_v23  ;;  %v5333_v25 = vmax.f32 %v5179_v18, 0.0  ;;  %v5705_v44 = vadd.f32 %v9774_v61, %v8039_v0 }
 0x467   : > { %v8007_v26 = vpop.f32.mrf.mxu0  ;;  %v5696_v27 = vpop.f32.mrf.mxu1 }
 0x468   : > { %v6156_v17 = vmax.f32 %v6155_v24, %v5689_v22  ;;  %v5331_v33 = vmax.f32 %v5171_v28, 0.0  ;;  %v5401_v39 = vpack.c.bf16 %v5333_v25, %v5332_v8  ;;  %v5697_v41 = vadd.f32 %v9774_v61, %v5696_v27 }
 0x469   : > { %v5183_v30 = vpop.f32.mrf.mxu0  ;;  %v8040_v34 = vpop.f32.mrf.mxu1  ;;  %v5192_v59 = vadd.f32 %v9763_v46, %v8007_v26 }
 0x46a   : > { %v9816_v36 = vmax.f32 %v6156_v17, %v5692_v32  ;;  %v5400_v37 = vpack.c.bf16 %v5331_v33, %v5330_v31  ;;  %v5184_v43 = vadd.f32 %v9763_v46, %v5183_v30  ;;  %v5708_v54 = vadd.f32 %v9774_v61, %v8040_v34 }
 0x46b   : > { %v8008_v40 = vpop.f32.mrf.mxu0  ;;  %v5699_v35 = vpop.f32.mrf.mxu1  ;;  %v5336_v57 = vmax.f32 %v5192_v59, 0.0 }
 0x46c   : > { %v5195_v45 = vadd.f32 %v9763_v46, %v8008_v40  ;;  %v5700_v47 = vadd.f32 %v9774_v61, %v5699_v35  ;;  %8137 = vmatprep.mubr.msk.bf16.mxu1 %vm1466_vm1, %v5400_v37  ;;  %v5334_v52 = vmax.f32 %v5184_v43, 0.0  ;;  %v6158_v37 = vrot.slane %v9816_v36, 4 }
 0x46d   : > { %v5186_v38 = vpop.f32.mrf.mxu0  ;;  %v8043_v48 = vpop.f32.mrf.mxu1  ;;  %8138 = vmatmul.mubr.msk.bf16.gmra.mxu1 %vm1466_vm1, %v5401_v39 }
 0x46e   : > { %v6164_v21 = vmax.f32 %v5697_v41, %v5700_v47  ;;  %v5187_v49 = vadd.f32 %v9763_v46, %v5186_v38  ;;  %v5337_v50 = vmax.f32 %v5195_v45, 0.0  ;;  %v5721_v12 = vadd.f32 %v9774_v61, %v8043_v48 }
 0x46f   : > { %v8011_v51 = vpop.f32.mrf.mxu0  ;;  %v5712_v16 = vpop.f32.mrf.mxu1  ;;  %v6159_v47 = vmax.f32 %v9816_v36, %v6158_v37 }
 0x470   : > { %v6165_v55 = vmax.f32 %v6164_v21, %v5705_v44  ;;  %v5335_v56 = vmax.f32 %v5187_v49, 0.0  ;;  %v5713_v62 = vadd.f32 %v9774_v61, %v5712_v16  ;;  %v5403_v1 = vpack.c.bf16 %v5337_v50, %v5336_v57 }
 0x471   : > { %v5199_v58 = vpop.f32.mrf.mxu0  ;;  %v8044_v42 = vpop.f32.mrf.mxu1  ;;  %v5208_v5 = vadd.f32 %v9763_v46, %v8011_v51  ;;  %v6160_v50 = vrot.slane %v6159_v47, 2 }
 0x472   : > { %v5402_v60 = vpack.c.bf16 %v5335_v56, %v5334_v52  ;;  %v6166_v63 = vmax.f32 %v6165_v55, %v5708_v54  ;;  %v5200_v7 = vadd.f32 %v9763_v46, %v5199_v58  ;;  %v5724_v20 = vadd.f32 %v9774_v61, %v8044_v42 }
 0x473   : > { %v8012_v2 = vpop.f32.mrf.mxu0  ;;  %v5715_v3 = vpop.f32.mrf.mxu1  ;;  %v5340_v19 = vmax.f32 %v5208_v5, 0.0  ;;  %v6161_v58 = vmax.f32 %v6159_v47, %v6160_v50 }
 0x474   : > { %v6167_v6 = vmax.f32 %v6166_v63, %v5713_v62  ;;  %v5211_v53 = vadd.f32 %v9763_v46, %v8012_v2  ;;  %8141 = vmatprep.mubr.msk.bf16.mxu1 %vm1466_vm1, %v5402_v60  ;;  %v5716_v9 = vadd.f32 %v9774_v61, %v5715_v3  ;;  %v5338_v4 = vmax.f32 %v5200_v7, 0.0 }
 0x475   : > { %v5202_v10 = vpop.f32.mrf.mxu0  ;;  %v8047_v11 = vpop.f32.mrf.mxu1  ;;  %8142 = vmatmul.mubr.msk.bf16.gmra.mxu1 %vm1466_vm1, %v5403_v1  ;;  %v6162_v7 = vrot.slane %v6161_v58, 1 }
 0x476   : > { %v5203_v29 = vadd.f32 %v9763_v46, %v5202_v10  ;;  %v5341_v13 = vmax.f32 %v5211_v53, 0.0  ;;  %v6168_v14 = vmax.f32 %v6167_v6, %v5716_v9  ;;  %v5737_v32 = vadd.f32 %v9774_v61, %v8047_v11 }
 0x477   : > { %v5728_v15 = vpop.f32.mrf.mxu1 }
 0x478   : > { %v5339_v18 = vmax.f32 %v5203_v29, 0.0  ;;  %v6169_v23 = vmax.f32 %v6168_v14, %v5721_v12  ;;  %v5405_v24 = vpack.c.bf16 %v5341_v13, %v5340_v19  ;;  %v5729_v28 = vadd.f32 %v9774_v61, %v5728_v15 }
 0x479   : > { %v8048_v0 = vpop.f32.mrf.mxu1  ;;  %v6163_v14 = vmax.f32 %v6161_v58, %v6162_v7 }
 0x47a   : > { %v5404_v22 = vpack.c.bf16 %v5339_v18, %v5338_v4  ;;  %v6170_v25 = vmax.f32 %v6169_v23, %v5724_v20  ;;  %v5740_v8 = vadd.f32 %v9774_v61, %v8048_v0 }
 0x47b   : > { %v5731_v26 = vpop.f32.mrf.mxu1 }
 0x47c   : > { %v5732_v46 = vadd.f32 %v9774_v61, %v5731_v26  ;;  %8145 = vmatprep.mubr.msk.bf16.mxu1 %vm1466_vm1, %v5404_v22  ;;  %v6171_v27 = vmax.f32 %v6170_v25, %v5729_v28 }
 0x47d   : > { %v8051_v31 = vpop.f32.mrf.mxu1  ;;  %8146 = vmatmul.mubr.msk.bf16.gmra.mxu1 %vm1466_vm1, %v5405_v24 }
 0x47e   : > { %v6172_v17 = vmax.f32 %v6171_v27, %v5732_v46  ;;  %v5753_v59 = vadd.f32 %v9774_v61, %v8051_v31 }
 0x47f   : > { %v5744_v33 = vpop.f32.mrf.mxu1 }
 0x480   : > { %v6173_v30 = vmax.f32 %v6172_v17, %v5737_v32  ;;  %v5745_v39 = vadd.f32 %v9774_v61, %v5744_v33 }
 0x481   : > { %v8052_v34 = vpop.f32.mrf.mxu1 }
 0x482   : > { %v6174_v40 = vmax.f32 %v6173_v30, %v5740_v8  ;;  %v5756_v44 = vadd.f32 %v9774_v61, %v8052_v34 }
 0x483   : > { %v5747_v35 = vpop.f32.mrf.mxu1 }
 0x484   : > { %v5748_v41 = vadd.f32 %v9774_v61, %v5747_v35  ;;  %v6175_v43 = vmax.f32 %v6174_v40, %v5745_v39 }
 0x485   : > { %v8055_v45 = vpop.f32.mrf.mxu1 }
 0x486   : > { %v6176_v38 = vmax.f32 %v6175_v43, %v5748_v41  ;;  %v5769_v57 = vadd.f32 %v9774_v61, %v8055_v45 }
 0x487   : > { %v5760_v48 = vpop.f32.mrf.mxu1 }
 0x488   : > { %v6177_v21 = vmax.f32 %v6176_v38, %v5753_v59  ;;  %v5761_v52 = vadd.f32 %v9774_v61, %v5760_v48 }
 0x489   : > { %v8056_v49 = vpop.f32.mrf.mxu1 }
 0x48a   : > { %v6178_v51 = vmax.f32 %v6177_v21, %v5756_v44  ;;  %v5772_v62 = vadd.f32 %v9774_v61, %v8056_v49 }
 0x48b   : > { %v5763_v16 = vpop.f32.mrf.mxu1 }
 0x48c   : > { %v5764_v54 = vadd.f32 %v9774_v61, %v5763_v16  ;;  %v6179_v55 = vrot.slane %v6178_v51, 4 }
 0x48d   : > { %v8059_v56 = vpop.f32.mrf.mxu1 }
 0x48e   : > { %v6185_v36 = vmax.f32 %v5761_v52, %v5764_v54  ;;  %v6180_v42 = vmax.f32 %v6178_v51, %v6179_v55  ;;  %v5785_v12 = vadd.f32 %v9774_v61, %v8059_v56 }
 0x48f   : > { %v5776_v60 = vpop.f32.mrf.mxu1 }
 0x490   : > { %v6186_v63 = vmax.f32 %v6185_v36, %v5769_v57  ;;  %v6181_v1 = vrot.slane %v6180_v42, 2  ;;  %v5777_v3 = vadd.f32 %v9774_v61, %v5776_v60 }
 0x491   : > { %v8060_v2 = vpop.f32.mrf.mxu1 }
 0x492   : > { %v6187_v6 = vmax.f32 %v6186_v63, %v5772_v62  ;;  %v6182_v53 = vmax.f32 %v6180_v42, %v6181_v1  ;;  %v5788_v18 = vadd.f32 %v9774_v61, %v8060_v2 }
 0x493   : > { %v5779_v5 = vpop.f32.mrf.mxu1 }
 0x494   : > { %v6188_v9 = vmax.f32 %v6187_v6, %v5777_v3  ;;  %v5780_v10 = vadd.f32 %v9774_v61, %v5779_v5  ;;  %v6183_v11 = vrot.slane %v6182_v53, 1 }
 0x495   : > { %v8063_v29 = vpop.f32.mrf.mxu1 }
 0x496   : > { %v6189_v13 = vmax.f32 %v6188_v9, %v5780_v10  ;;  %v6184_v15 = vmax.f32 %v6182_v53, %v6183_v11  ;;  %v5801_v46 = vadd.f32 %v9774_v61, %v8063_v29 }
 0x497   : > { %v5792_v4 = vpop.f32.mrf.mxu1 }
 0x498   : > { %v6190_v19 = vmax.f32 %v6189_v13, %v5785_v12  ;;  %v6319_v20 = vsel %vm3339_vm2, %v6184_v15, %v6163_v14  ;;  %v5793_v0 = vadd.f32 %v9774_v61, %v5792_v4 }
 0x499   : > { %v8064_v23 = vpop.f32.mrf.mxu1 }
 0x49a   : > { %v6191_v22 = vmax.f32 %v6190_v19, %v5788_v18  ;;  %v5804_v32 = vadd.f32 %v9774_v61, %v8064_v23 }
 0x49b   : > { %v5795_v24 = vpop.f32.mrf.mxu1 }
 0x49c   : > { %v6192_v28 = vmax.f32 %v6191_v22, %v5793_v0  ;;  %v5796_v25 = vadd.f32 %v9774_v61, %v5795_v24 }
 0x49d   : > { %v8067_v26 = vpop.f32.mrf.mxu1 }
 0x49e   : > { %v6193_v27 = vmax.f32 %v6192_v28, %v5796_v25  ;;  %v5817_v35 = vadd.f32 %v9774_v61, %v8067_v26 }
 0x49f   : > { %v5808_v31 = vpop.f32.mrf.mxu1 }
 0x4a0   : > { %v6194_v17 = vmax.f32 %v6193_v27, %v5801_v46  ;;  %v5809_v8 = vadd.f32 %v9774_v61, %v5808_v31 }
 0x4a1   : > { %v8068_v33 = vpop.f32.mrf.mxu1 }
 0x4a2   : > { %v6195_v30 = vmax.f32 %v6194_v17, %v5804_v32  ;;  %v5820_v45 = vadd.f32 %v9774_v61, %v8068_v33 }
 0x4a3   : > { %v5811_v34 = vpop.f32.mrf.mxu1 }
 0x4a4   : > { %v6196_v37 = vmax.f32 %v6195_v30, %v5809_v8  ;;  %v5812_v39 = vadd.f32 %v9774_v61, %v5811_v34 }
 0x4a5   : > { %v8071_v40 = vpop.f32.mrf.mxu1 }
 0x4a6   : > { %v6197_v41 = vmax.f32 %v6196_v37, %v5812_v39  ;;  %v5833_v16 = vadd.f32 %v9774_v61, %v8071_v40 }
 0x4a7   : > { %v5824_v43 = vpop.f32.mrf.mxu1 }
 0x4a8   : > { %v6198_v47 = vmax.f32 %v6197_v41, %v5817_v35  ;;  %v5825_v21 = vadd.f32 %v9774_v61, %v5824_v43 }
 0x4a9   : > { %v8072_v59 = vpop.f32.mrf.mxu1 }
 0x4aa   : > { %v6199_v38 = vmax.f32 %v6198_v47, %v5820_v45  ;;  %v5836_v56 = vadd.f32 %v9774_v61, %v8072_v59 }
 0x4ab   : > { %v5827_v48 = vpop.f32.mrf.mxu1 }
 0x4ac   : > { %v6200_v44 = vrot.slane %v6199_v38, 4  ;;  %v5828_v49 = vadd.f32 %v9774_v61, %v5827_v48 }
 0x4ad   : > { %v8075_v50 = vpop.f32.mrf.mxu1 }
 0x4ae   : > { %v6201_v51 = vmax.f32 %v6199_v38, %v6200_v44  ;;  %v6206_v52 = vmax.f32 %v5825_v21, %v5828_v49  ;;  %v5849_v7 = vadd.f32 %v9774_v61, %v8075_v50 }
 0x4af   : > { %v5840_v54 = vpop.f32.mrf.mxu1 }
 0x4b0   : > { %v6202_v55 = vrot.slane %v6201_v51, 2  ;;  %v6207_v57 = vmax.f32 %v6206_v52, %v5833_v16  ;;  %v5841_v42 = vadd.f32 %v9774_v61, %v5840_v54 }
 0x4b1   : > { %v8076_v36 = vpop.f32.mrf.mxu1 }
 0x4b2   : > { %v6203_v58 = vmax.f32 %v6201_v51, %v6202_v55  ;;  %v6208_v60 = vmax.f32 %v6207_v57, %v5836_v56  ;;  %v5852_v10 = vadd.f32 %v9774_v61, %v8076_v36 }
 0x4b3   : > { %v5843_v62 = vpop.f32.mrf.mxu1 }
 0x4b4   : > { %v6204_v63 = vrot.slane %v6203_v58, 1  ;;  %v6209_v1 = vmax.f32 %v6208_v60, %v5841_v42  ;;  %v5844_v2 = vadd.f32 %v9774_v61, %v5843_v62 }
 0x4b5   : > { %v8079_v3 = vpop.f32.mrf.mxu1 }
 0x4b6   : > { %v6205_v6 = vmax.f32 %v6203_v58, %v6204_v63  ;;  %v6210_v53 = vmax.f32 %v6209_v1, %v5844_v2  ;;  %v5865_v19 = vadd.f32 %v9774_v61, %v8079_v3 }
 0x4b7   : > { %v5856_v5 = vpop.f32.mrf.mxu1 }
 0x4b8   : > { %v6320_v9 = vsel %vm3341_vm3, %v6205_v6, %v6319_v20  ;;  %v6211_v11 = vmax.f32 %v6210_v53, %v5849_v7  ;;  %v5857_v12 = vadd.f32 %v9774_v61, %v5856_v5 }
 0x4b9   : > { %v8080_v29 = vpop.f32.mrf.mxu1 }
 0x4ba   : > { %v6212_v13 = vmax.f32 %v6211_v11, %v5852_v10  ;;  %v5868_v22 = vadd.f32 %v9774_v61, %v8080_v29 }
 0x4bb   : > { %v5859_v14 = vpop.f32.mrf.mxu1 }
 0x4bc   : > { %v6213_v15 = vmax.f32 %v6212_v13, %v5857_v12  ;;  %v5860_v4 = vadd.f32 %v9774_v61, %v5859_v14 }
 0x4bd   : > { %v8083_v18 = vpop.f32.mrf.mxu1 }
 0x4be   : > { %v6214_v23 = vmax.f32 %v6213_v15, %v5860_v4  ;;  %v5881_v32 = vadd.f32 %v9774_v61, %v8083_v18 }
 0x4bf   : > { %v5872_v0 = vpop.f32.mrf.mxu1 }
 0x4c0   : > { %v6215_v24 = vmax.f32 %v6214_v23, %v5865_v19  ;;  %v5873_v28 = vadd.f32 %v9774_v61, %v5872_v0 }
 0x4c1   : > { %v8084_v20 = vpop.f32.mrf.mxu1 }
 0x4c2   : > { %v6216_v25 = vmax.f32 %v6215_v24, %v5868_v22  ;;  %v5884_v8 = vadd.f32 %v9774_v61, %v8084_v20 }
 0x4c3   : > { %v5875_v26 = vpop.f32.mrf.mxu1 }
 0x4c4   : > { %v6217_v46 = vmax.f32 %v6216_v25, %v5873_v28  ;;  %v5876_v27 = vadd.f32 %v9774_v61, %v5875_v26 }
 0x4c5   : > { %v8087_v31 = vpop.f32.mrf.mxu1 }
 0x4c6   : > { %v6218_v17 = vmax.f32 %v6217_v46, %v5876_v27  ;;  %v5897_v47 = vadd.f32 %v9774_v61, %v8087_v31 }
 0x4c7   : > { %v5888_v33 = vpop.f32.mrf.mxu1 }
 0x4c8   : > { %v6219_v30 = vmax.f32 %v6218_v17, %v5881_v32  ;;  %v5889_v35 = vadd.f32 %v9774_v61, %v5888_v33 }
 0x4c9   : > { %v8088_v34 = vpop.f32.mrf.mxu1 }
 0x4ca   : > { %v6220_v37 = vmax.f32 %v6219_v30, %v5884_v8  ;;  %v5900_v44 = vadd.f32 %v9774_v61, %v8088_v34 }
 0x4cb   : > { %v5891_v39 = vpop.f32.mrf.mxu1 }
 0x4cc   : > { %v6221_v40 = vrot.slane %v6220_v37, 4  ;;  %v5892_v41 = vadd.f32 %v9774_v61, %v5891_v39 }
 0x4cd   : > { %v8091_v43 = vpop.f32.mrf.mxu1 }
 0x4ce   : > { %v6222_v45 = vmax.f32 %v6220_v37, %v6221_v40  ;;  %v6227_v59 = vmax.f32 %v5889_v35, %v5892_v41  ;;  %v5913_v58 = vadd.f32 %v9774_v61, %v8091_v43 }
 0x4cf   : > { %v5904_v38 = vpop.f32.mrf.mxu1 }
 0x4d0   : > { %v6223_v48 = vrot.slane %v6222_v45, 2  ;;  %v6228_v21 = vmax.f32 %v6227_v59, %v5897_v47  ;;  %v5905_v51 = vadd.f32 %v9774_v61, %v5904_v38 }
 0x4d1   : > { %v8092_v49 = vpop.f32.mrf.mxu1 }
 0x4d2   : > { %v6224_v50 = vmax.f32 %v6222_v45, %v6223_v48  ;;  %v6229_v16 = vmax.f32 %v6228_v21, %v5900_v44  ;;  %v5916_v63 = vadd.f32 %v9774_v61, %v8092_v49 }
 0x4d3   : > { %v5907_v52 = vpop.f32.mrf.mxu1 }
 0x4d4   : > { %v6225_v54 = vrot.slane %v6224_v50, 1  ;;  %v6230_v55 = vmax.f32 %v6229_v16, %v5905_v51  ;;  %v5908_v56 = vadd.f32 %v9774_v61, %v5907_v52 }
 0x4d5   : > { %v8095_v57 = vpop.f32.mrf.mxu1 }
 0x4d6   : > { %v6226_v36 = vmax.f32 %v6224_v50, %v6225_v54  ;;  %v6231_v42 = vmax.f32 %v6230_v55, %v5908_v56  ;;  %v5929_v11 = vadd.f32 %v9774_v61, %v8095_v57 }
 0x4d7   : > { %v5920_v60 = vpop.f32.mrf.mxu1 }
 0x4d8   : > { %v6321_v62 = vsel %vm3343_vm4, %v6226_v36, %v6320_v9  ;;  %v6232_v1 = vmax.f32 %v6231_v42, %v5913_v58  ;;  %v5921_v3 = vadd.f32 %v9774_v61, %v5920_v60 }
 0x4d9   : > { %v8096_v2 = vpop.f32.mrf.mxu1 }
 0x4da   : > { %v6233_v6 = vmax.f32 %v6232_v1, %v5916_v63  ;;  %v5932_v13 = vadd.f32 %v9774_v61, %v8096_v2 }
 0x4db   : > { %v5923_v7 = vpop.f32.mrf.mxu1 }
 0x4dc   : > { %v6234_v53 = vmax.f32 %v6233_v6, %v5921_v3  ;;  %v5924_v5 = vadd.f32 %v9774_v61, %v5923_v7 }
 0x4dd   : > { %v8099_v10 = vpop.f32.mrf.mxu1 }
 0x4de   : > { %v6235_v29 = vmax.f32 %v6234_v53, %v5924_v5  ;;  %v5945_v22 = vadd.f32 %v9774_v61, %v8099_v10 }
 0x4df   : > { %v5936_v12 = vpop.f32.mrf.mxu1 }
 0x4e0   : > { %v6236_v14 = vmax.f32 %v6235_v29, %v5929_v11  ;;  %v5937_v15 = vadd.f32 %v9774_v61, %v5936_v12 }
 0x4e1   : > { %v8100_v9 = vpop.f32.mrf.mxu1 }
 0x4e2   : > { %v6237_v4 = vmax.f32 %v6236_v14, %v5932_v13  ;;  %v5948_v28 = vadd.f32 %v9774_v61, %v8100_v9 }
 0x4e3   : > { %v5939_v18 = vpop.f32.mrf.mxu1 }
 0x4e4   : > { %v6238_v19 = vmax.f32 %v6237_v4, %v5937_v15  ;;  %v5940_v23 = vadd.f32 %v9774_v61, %v5939_v18 }
 0x4e5   : > { %v8103_v0 = vpop.f32.mrf.mxu1 }
 0x4e6   : > { %v6239_v24 = vmax.f32 %v6238_v19, %v5940_v23  ;;  %v5961_v30 = vadd.f32 %v9774_v61, %v8103_v0 }
 0x4e7   : > { %v5952_v20 = vpop.f32.mrf.mxu1 }
 0x4e8   : > { %v6240_v25 = vmax.f32 %v6239_v24, %v5945_v22  ;;  %v5953_v32 = vadd.f32 %v9774_v61, %v5952_v20 }
 0x4e9   : > { %v8104_v26 = vpop.f32.mrf.mxu1 }
 0x4ea   : > { %v6241_v46 = vmax.f32 %v6240_v25, %v5948_v28  ;;  %v5964_v40 = vadd.f32 %v9774_v61, %v8104_v26 }
 0x4eb   : > { %v5955_v27 = vpop.f32.mrf.mxu1 }
 0x4ec   : > { %v6242_v31 = vrot.slane %v6241_v46, 4  ;;  %v5956_v17 = vadd.f32 %v9774_v61, %v5955_v27 }
 0x4ed   : > { %v8107_v33 = vpop.f32.mrf.mxu1 }
 0x4ee   : > { %v6243_v8 = vmax.f32 %v6241_v46, %v6242_v31  ;;  %v6248_v34 = vmax.f32 %v5953_v32, %v5956_v17  ;;  %v5977_v50 = vadd.f32 %v9774_v61, %v8107_v33 }
 0x4ef   : > { %v5968_v37 = vpop.f32.mrf.mxu1 }
 0x4f0   : > { %v6244_v39 = vrot.slane %v6243_v8, 2  ;;  %v6249_v35 = vmax.f32 %v6248_v34, %v5961_v30  ;;  %v5969_v45 = vadd.f32 %v9774_v61, %v5968_v37 }
 0x4f1   : > { %v8108_v41 = vpop.f32.mrf.mxu1 }
 0x4f2   : > { %v6245_v43 = vmax.f32 %v6243_v8, %v6244_v39  ;;  %v6250_v47 = vmax.f32 %v6249_v35, %v5964_v40  ;;  %v5980_v54 = vadd.f32 %v9774_v61, %v8108_v41 }
 0x4f3   : > { %v5971_v59 = vpop.f32.mrf.mxu1 }
 0x4f4   : > { %v6246_v38 = vrot.slane %v6245_v43, 1  ;;  %v6251_v48 = vmax.f32 %v6250_v47, %v5969_v45  ;;  %v5972_v44 = vadd.f32 %v9774_v61, %v5971_v59 }
 0x4f5   : > { %v8111_v21 = vpop.f32.mrf.mxu1 }
 0x4f6   : > { %v6247_v49 = vmax.f32 %v6245_v43, %v6246_v38  ;;  %v6252_v51 = vmax.f32 %v6251_v48, %v5972_v44  ;;  %v5993_v1 = vadd.f32 %v9774_v61, %v8111_v21 }
 0x4f7   : > { %v5984_v16 = vpop.f32.mrf.mxu1 }
 0x4f8   : > { %v6322_v52 = vsel %vm3345_vm5, %v6247_v49, %v6321_v62  ;;  %v6253_v55 = vmax.f32 %v6252_v51, %v5977_v50  ;;  %v5985_v57 = vadd.f32 %v9774_v61, %v5984_v16 }
 0x4f9   : > { %v8112_v56 = vpop.f32.mrf.mxu1 }
 0x4fa   : > { %v6254_v36 = vmax.f32 %v6253_v55, %v5980_v54  ;;  %v5996_v6 = vadd.f32 %v9774_v61, %v8112_v56 }
 0x4fb   : > { %v5987_v58 = vpop.f32.mrf.mxu1 }
 0x4fc   : > { %v6255_v42 = vmax.f32 %v6254_v36, %v5985_v57  ;;  %v5988_v60 = vadd.f32 %v9774_v61, %v5987_v58 }
 0x4fd   : > { %v8115_v63 = vpop.f32.mrf.mxu1 }
 0x4fe   : > { %v6256_v2 = vmax.f32 %v6255_v42, %v5988_v60  ;;  %v6009_v13 = vadd.f32 %v9774_v61, %v8115_v63 }
 0x4ff   : > { %v6000_v3 = vpop.f32.mrf.mxu1 }
 0x500   : > { %v6257_v7 = vmax.f32 %v6256_v2, %v5993_v1  ;;  %v6001_v53 = vadd.f32 %v9774_v61, %v6000_v3 }
 0x501   : > { %v8116_v62 = vpop.f32.mrf.mxu1 }
 0x502   : > { %v6258_v5 = vmax.f32 %v6257_v7, %v5996_v6  ;;  %v6012_v15 = vadd.f32 %v9774_v61, %v8116_v62 }
 0x503   : > { %v6003_v10 = vpop.f32.mrf.mxu1 }
 0x504   : > { %v6259_v11 = vmax.f32 %v6258_v5, %v6001_v53  ;;  %v6004_v29 = vadd.f32 %v9774_v61, %v6003_v10 }
 0x505   : > { %v8119_v12 = vpop.f32.mrf.mxu1 }
 0x506   : > { %v6260_v14 = vmax.f32 %v6259_v11, %v6004_v29  ;;  %v6025_v25 = vadd.f32 %v9774_v61, %v8119_v12 }
 0x507   : > { %v6016_v9 = vpop.f32.mrf.mxu1 }
 0x508   : > { %v6261_v4 = vmax.f32 %v6260_v14, %v6009_v13  ;;  %v6017_v22 = vadd.f32 %v9774_v61, %v6016_v9 }
 0x509   : > { %v8120_v18 = vpop.f32.mrf.mxu1 }
 0x50a   : > { %v6262_v19 = vmax.f32 %v6261_v4, %v6012_v15  ;;  %v6028_v31 = vadd.f32 %v9774_v61, %v8120_v18 }
 0x50b   : > { %v6019_v23 = vpop.f32.mrf.mxu1 }
 0x50c   : > { %v6263_v0 = vrot.slane %v6262_v19, 4  ;;  %v6020_v24 = vadd.f32 %v9774_v61, %v6019_v23 }
 0x50d   : > { %v8123_v20 = vpop.f32.mrf.mxu1 }
 0x50e   : > { %v6264_v28 = vmax.f32 %v6262_v19, %v6263_v0  ;;  %v6269_v26 = vmax.f32 %v6017_v22, %v6020_v24  ;;  %v6041_v43 = vadd.f32 %v9774_v61, %v8123_v20 }
 0x50f   : > { %v6032_v46 = vpop.f32.mrf.mxu1 }
 0x510   : > { %v6265_v27 = vrot.slane %v6264_v28, 2  ;;  %v6270_v32 = vmax.f32 %v6269_v26, %v6025_v25  ;;  %v6033_v8 = vadd.f32 %v9774_v61, %v6032_v46 }
 0x511   : > { %v8124_v17 = vpop.f32.mrf.mxu1 }
 0x512   : > { %v6266_v33 = vmax.f32 %v6264_v28, %v6265_v27  ;;  %v6271_v30 = vmax.f32 %v6270_v32, %v6028_v31  ;;  %v6044_v48 = vadd.f32 %v9774_v61, %v8124_v17 }
 0x513   : > { %v6035_v34 = vpop.f32.mrf.mxu1 }
 0x514   : > { %v6267_v37 = vrot.slane %v6266_v33, 1  ;;  %v6272_v39 = vmax.f32 %v6271_v30, %v6033_v8  ;;  %v6036_v40 = vadd.f32 %v9774_v61, %v6035_v34 }
 0x515   : > { %v8127_v35 = vpop.f32.mrf.mxu1 }
 0x516   : > { %v6268_v41 = vmax.f32 %v6266_v33, %v6267_v37  ;;  %v6273_v45 = vmax.f32 %v6272_v39, %v6036_v40  ;;  %v6057_v58 = vadd.f32 %v9774_v61, %v8127_v35 }
 0x517   : > { %v6048_v47 = vpop.f32.mrf.mxu1 }
 0x518   : > { %v9926_v59 = vsel %vm3347_vm6, %v6268_v41, %v6322_v52  ;;  %v6274_v38 = vmax.f32 %v6273_v45, %v6041_v43  ;;  %v6049_v50 = vadd.f32 %v9774_v61, %v6048_v47 }
 0x519   : > { %v8128_v44 = vpop.f32.mrf.mxu1 }
 0x51a   : > { %v6275_v21 = vmax.f32 %v6274_v38, %v6044_v48  ;;  %v6060_v63 = vadd.f32 %v9774_v61, %v8128_v44 }
 0x51b   : > { %v6051_v49 = vpop.f32.mrf.mxu1 }
 0x51c   : > { %v6276_v16 = vmax.f32 %v6275_v21, %v6049_v50  ;;  %v6052_v54 = vadd.f32 %v9774_v61, %v6051_v49 }
 0x51d   : > { %v8131_v51 = vpop.f32.mrf.mxu1 }
 0x51e   : > { %v6277_v57 = vmax.f32 %v6276_v16, %v6052_v54  ;;  %v6073_v22 = vadd.f32 %v9774_v61, %v8131_v51 }
 0x51f   : > { %v6064_v55 = vpop.f32.mrf.mxu1 }
 0x520   : > { %v6278_v42 = vmax.f32 %v6277_v57, %v6057_v58  ;;  %v6065_v62 = vadd.f32 %v9774_v61, %v6064_v55 }
 0x521   : > { %v8132_v56 = vpop.f32.mrf.mxu1 }
 0x522   : > { %v6279_v2 = vmax.f32 %v6278_v42, %v6060_v63  ;;  %v6076_v31 = vadd.f32 %v9774_v61, %v8132_v56 }
 0x523   : > { %v6067_v36 = vpop.f32.mrf.mxu1 }
 0x524   : > { %v6280_v11 = vmax.f32 %v6279_v2, %v6065_v62  ;;  %v6068_v29 = vadd.f32 %v9774_v61, %v6067_v36 }
 0x525   : > { %v8135_v52 = vpop.f32.mrf.mxu1 }
 0x526   : > { %v6089_v5 = vadd.f32 %v9774_v61, %v8135_v52  ;;  %v6281_v18 = vmax.f32 %v6280_v11, %v6068_v29 }
 0x527   : > { %v6080_v60 = vpop.f32.mrf.mxu1 }
 0x528   : > { %v6081_v6 = vadd.f32 %v9774_v61, %v6080_v60  ;;  %v6282_v25 = vmax.f32 %v6281_v18, %v6073_v22 }
 0x529   : > { %v8136_v1 = vpop.f32.mrf.mxu1 }
 0x52a   : > { %v6092_v13 = vadd.f32 %v9774_v61, %v8136_v1  ;;  %v6283_v8 = vmax.f32 %v6282_v25, %v6076_v31 }
 0x52b   : > { %v6083_v3 = vpop.f32.mrf.mxu1 }
 0x52c   : > { %v6084_v7 = vadd.f32 %v9774_v61, %v6083_v3  ;;  %v6284_v41 = vrot.slane %v6283_v8, 4 }
 0x52d   : > { %v8139_v53 = vpop.f32.mrf.mxu1 }
 0x52e   : > { %v6290_v10 = vmax.f32 %v6081_v6, %v6084_v7  ;;  %v6105_v20 = vadd.f32 %v9774_v61, %v8139_v53  ;;  %v6285_v21 = vmax.f32 %v6283_v8, %v6284_v41 }
 0x52f   : > { %v6096_v12 = vpop.f32.mrf.mxu1 }
 0x530   : > { %v6291_v14 = vmax.f32 %v6290_v10, %v6089_v5  ;;  %v6097_v15 = vadd.f32 %v9774_v61, %v6096_v12  ;;  %v6286_v55 = vrot.slane %v6285_v21, 2 }
 0x531   : > { %v8140_v9 = vpop.f32.mrf.mxu1 }
 0x532   : > { %v6292_v4 = vmax.f32 %v6291_v14, %v6092_v13  ;;  %v6108_v46 = vadd.f32 %v9774_v61, %v8140_v9  ;;  %v6287_v58 = vmax.f32 %v6285_v21, %v6286_v55 }
 0x533   : > { %v6099_v19 = vpop.f32.mrf.mxu1 }
 0x534   : > { %v6293_v23 = vmax.f32 %v6292_v4, %v6097_v15  ;;  %v6100_v0 = vadd.f32 %v9774_v61, %v6099_v19  ;;  %v6288_v60 = vrot.slane %v6287_v58, 1 }
 0x535   : > { %v8143_v24 = vpop.f32.mrf.mxu1 }
 0x536   : > { %v6294_v28 = vmax.f32 %v6293_v23, %v6100_v0  ;;  %v6121_v40 = vadd.f32 %v9774_v61, %v8143_v24  ;;  %v6289_v2 = vmax.f32 %v6287_v58, %v6288_v60 }
 0x537   : > { %v6112_v26 = vpop.f32.mrf.mxu1 }
 0x538   : > { %v6295_v27 = vmax.f32 %v6294_v28, %v6105_v20  ;;  %v6113_v17 = vadd.f32 %v9774_v61, %v6112_v26 }
 0x539   : > { %v8144_v32 = vpop.f32.mrf.mxu1 }
 0x53a   : > { %v6296_v33 = vmax.f32 %v6295_v27, %v6108_v46  ;;  %v6124_v45 = vadd.f32 %v9774_v61, %v8144_v32 }
 0x53b   : > { %v6115_v30 = vpop.f32.mrf.mxu1 }
 0x53c   : > { %v6297_v34 = vmax.f32 %v6296_v33, %v6113_v17  ;;  %v6116_v37 = vadd.f32 %v9774_v61, %v6115_v30 }
 0x53d   : > { %v8147_v39 = vpop.f32.mrf.mxu1 }
 0x53e   : > { %v6298_v35 = vmax.f32 %v6297_v34, %v6116_v37  ;;  %v6137_v16 = vadd.f32 %v9774_v61, %v8147_v39 }
 0x53f   : > { %v6128_v43 = vpop.f32.mrf.mxu1 }
 0x540   : > { %v6299_v47 = vmax.f32 %v6298_v35, %v6121_v40  ;;  %v6129_v48 = vadd.f32 %v9774_v61, %v6128_v43 }
 0x541   : > { %v8148_v38 = vpop.f32.mrf.mxu1 }
 0x542   : > { %v6300_v44 = vmax.f32 %v6299_v47, %v6124_v45  ;;  %v6140_v56 = vadd.f32 %v9774_v61, %v8148_v38 }
 0x543   : > { %v6131_v49 = vpop.f32.mrf.mxu1 }
 0x544   : > { %v6301_v50 = vmax.f32 %v6300_v44, %v6129_v48  ;;  %v6132_v51 = vadd.f32 %v9774_v61, %v6131_v49  ;;  %v6324_v61 = vsel %vm3349_vm7, %v6289_v2, %v9926_v59 }
 0x546   : > { %v6302_v54 = vmax.f32 %v6301_v50, %v6132_v51 }
 0x548   : > { %v6303_v57 = vmax.f32 %v6302_v54, %v6137_v16 }
 0x54a   : > { %v6304_v36 = vmax.f32 %v6303_v57, %v6140_v56 }
 0x54c   : > { %v6305_v52 = vrot.slane %v6304_v36, 4 }
 0x54e   : > { %v6306_v42 = vmax.f32 %v6304_v36, %v6305_v52 }
 0x550   : > { %v6307_v63 = vrot.slane %v6306_v42, 2 }
 0x552   : > { %v6308_v1 = vmax.f32 %v6306_v42, %v6307_v63 }
 0x554   : > { %v6309_v3 = vrot.slane %v6308_v1, 1 }
 0x556   : > { %v6310_v6 = vmax.f32 %v6308_v1, %v6309_v3 }
 0x558   : > { %v6325_v7 = vsel %vm3351_vm8, %v6310_v6, %v6324_v61 }
 0x559   : > { %6936 = vst [vmem:[%s9596_s19 + $0x8] sm:$0xff] %v6325_v7 }
 0x55a   : > { %8228 = shalt.err (!%p8225_p3)
}
 0x55b   : > { %s8229_s17 = scalar_lea.hbm %s9958_s9, 256  ;;  %s8233_s22 = scalar_lea.hbm %s10015_s7, 1024 }
 0x55c   : > { %p8230_p4 = scmp.ne.s32.totalorder %s9958_s9, %s8229_s17  ;;  %p8234_p9 = scmp.lt.s32.totalorder %s9958_s9, %s10015_s7 }
 0x55d   : > { %p8235_p10 = scmp.lt.s32.totalorder %s8233_s22, %s8229_s17 }
 0x55e   : > { %p8231_p7 = pnand %p8230_p4, %p8355_p5 }
 0x55f   : > { %p8236_p11 = por %p8235_p10, %p8234_p9 }
 0x560   : > { %p8232_p8 = pneg %p8231_p7 }
 0x562   : > { %p8237_p12 = pnand %p8236_p11, %p8232_p8 }
 0x564   : > { %8240 = shalt.err (!%p8237_p12)
}
 0x565   : > { %s8278_s20 = smov 128   ;;  %s8279_s8 = smov 8  }
 0x566   : > { %8149 = dma.vmem_to_hbm [thread:$0]  (%p8355_p5), %s9962_s29, 256, %s9958_s9, %s9968_s13, %s8278_s20, %s8278_s20, %s8279_s8  }
 0x567 PF: > { %p8155_p13 = scmp.ge.s32.totalorder %s8275_s27, 2  ;;  %s6358_s14 = sand.u32 1, %s8263_s24  }
 0x568   : > { %s6359_s15 = scalar_lea.sflag [#allocation3], %s6358_s14 }
 0x569   : > { %p8152_p0 = pnand %p8155_p13, %p8359_p6 }
 0x56b   : > { %p8153_p1 = pneg %p8152_p0 }
 0x56d   : > { %8258 = dma.done.wait (%p8153_p1), %s6359_s15, 256  }
 0x56e   : > { %8260 = vsyncadd (%p8153_p1), %s6359_s15, 4294967040  ;;  %p17_p2 = scmp.ge.s32.totalorder %s8343_s30, 6   ;;  %s10018_s24 = smov %s8267_s25 }
 0x56f   : > { %s10019_s25 = smov %s8271_s26  ;;  %s10020_s26 = smov %s8353_s10 }
 0x570   : > { %s10021_s27 = smov %s8343_s30  ;;  %19 = sbr.rel (!%p17_p2) target bundleno = 3 (0x3), region = 85 }
 0x575   :  { %6364 = vsyncpa [#allocation3], 1 }
 0x576   :  { %6366 = vsyncpa [#allocation3 + $0x1], 1 }

</bundles_post_ra>
